<compile_context>
chip_gen: v7x
topology: tpu7x:2x2x1
jax: 0.10.0
libtpu: 0.0.40
codegen_flags: <defaults>
</compile_context>

<pallas_src>
import math
from functools import partial

import jax
import jax.numpy as jnp
from jax.experimental import pallas as pl
from jax.experimental.pallas import tpu as pltpu


# ---------------------------------------------------------------------------
# In-kernel helpers
# ---------------------------------------------------------------------------

def _conv3x3_grouped(src, w_ref, *, rows, Wp, start):
    """3x3 conv over a zero-padded, flattened activation held in VMEM (f32).

    Taps are packed along K three at a time (one group per kernel row dy), so the
    MXU runs 3 dense K=3*C matmuls instead of 9 lane-sparse K=C ones.
    `start` is the flat offset of tap (dy=0, dx=0) for output row 0.
    """
    acc = None
    for dy in range(3):
        off = start + dy * Wp
        lhs = jnp.concatenate(
            [src[pl.ds(off + dx, rows), :] for dx in range(3)], axis=-1
        ).astype(jnp.bfloat16)
        part = jnp.dot(lhs, w_ref[dy], preferred_element_type=jnp.float32)
        acc = part if acc is None else acc + part
    return acc


def _store_padded_act(ybuf, y, *, base, rows):
    """Write the activation into the padded flat scratch, zeroing only the halos."""
    pad_rows, c = ybuf.shape
    ybuf[pl.ds(0, base), :] = jnp.zeros((base, c), jnp.float32)
    ybuf[pl.ds(base, rows), :] = y
    tail = pad_rows - base - rows
    ybuf[pl.ds(base + rows, tail), :] = jnp.zeros((tail, c), jnp.float32)


def _mask_junk_cols(y, *, rows, Wp, W):
    """Zero the 2 junk columns per image row (conv2's left/right zero padding)."""
    col = jax.lax.broadcasted_iota(jnp.int32, y.shape, 0) % Wp
    return jnp.where(col < W, y, 0.0)


def _epilogue_store(acc, b2, rbuf, o_ref, *, H, W, Wp):
    out = jnp.maximum(acc + b2, 0.0)            # relu(bn2(conv2(.)))
    out = jnp.maximum(out + rbuf[...], 0.0)     # + conv1x1 residual, final ReLU
    for i in range(H):                          # drop the 2 junk cols per image row
        o_ref[0, i] = out[i * Wp:i * Wp + W, :]


# ---------------------------------------------------------------------------
# Fused kernels
# ---------------------------------------------------------------------------

def _fused_packed_kernel(xcat_ref, w1r_ref, b1r_ref, w2_ref, b2_ref, o_ref,
                         ybuf, rbuf, *, H, W, Wp, base):
    """Small-Cin path: conv1 taps im2col-packed along K; conv1 + 1x1 residual merged
    into a single 2*Cout-lane-dense matmul; conv2 fused behind it."""
    rows = H * Wp
    cout = o_ref.shape[-1]

    yr = jnp.dot(xcat_ref[0], w1r_ref[...], preferred_element_type=jnp.float32)
    yr = yr + b1r_ref[...]
    rbuf[...] = yr[:, cout:]                        # conv1x1(x) + bias (residual)
    y1 = jnp.maximum(yr[:, :cout], 0.0)             # relu(bn1(conv1(x)))

    y1 = _mask_junk_cols(y1, rows=rows, Wp=Wp, W=W)
    _store_padded_act(ybuf, y1, base=base, rows=rows)

    acc = _conv3x3_grouped(ybuf, w2_ref, rows=rows, Wp=Wp, start=base - (Wp + 1))
    _epilogue_store(acc, b2_ref[...], rbuf, o_ref, H=H, W=W, Wp=Wp)


def _fused_general_kernel(xf_ref, w1g_ref, b1_ref, wr_ref, br_ref, w2_ref, b2_ref,
                          o_ref, xbuf, ybuf, rbuf, *, H, W, Wp, base):
    """Large-Cin path: bf16 padded input staged once as f32 in VMEM (unaligned tap
    slices stay plain 32-bit loads); conv1 and conv2 both use 3-tap K groups."""
    rows = H * Wp

    xbuf[...] = xf_ref[0].astype(jnp.float32)

    acc1 = _conv3x3_grouped(xbuf, w1g_ref, rows=rows, Wp=Wp, start=0)
    center = xbuf[pl.ds(Wp + 1, rows), :].astype(jnp.bfloat16)
    rbuf[...] = (jnp.dot(center, wr_ref[...], preferred_element_type=jnp.float32)
                 + br_ref[...])

    y1 = jnp.maximum(acc1 + b1_ref[...], 0.0)       # relu(bn1(conv1(x)))
    y1 = _mask_junk_cols(y1, rows=rows, Wp=Wp, W=W)
    _store_padded_act(ybuf, y1, base=base, rows=rows)

    acc = _conv3x3_grouped(ybuf, w2_ref, rows=rows, Wp=Wp, start=base - (Wp + 1))
    _epilogue_store(acc, b2_ref[...], rbuf, o_ref, H=H, W=W, Wp=Wp)


# ---------------------------------------------------------------------------
# conv_block forward (NHWC)
# ---------------------------------------------------------------------------

def conv_block_forward(x_nhwc, p, eps=1e-5):
    """x: (N, H, W, Cin) f32 -> (N, H, W, Cout) f32."""
    N, H, W, Cin = x_nhwc.shape
    Cout = p["w_conv1"].shape[-1]
    Wp = W + 2                        # padded row width (1 left + 1 right)
    rows = H * Wp                     # flattened output rows (2 junk cols per row)
    pad_rows = (H + 3) * Wp           # 1 top + 2 bottom pad rows

    # Start offset of the valid interior in the padded activation scratch.
    # Any value in [Wp+1, 2*Wp-1] works; prefer a multiple of 8 (aligned f32 store).
    base = ((Wp + 1 + 7) // 8) * 8
    if base > 2 * Wp - 1:
        base = Wp + 1

    # ---- fold eval-mode BatchNorm into conv weights / bias (f32, cast once) ----
    def fold(w, conv_b, bn):
        s = bn["gamma"] / jnp.sqrt(bn["var"] + eps)
        return w * s, (conv_b - bn["mean"]) * s + bn["beta"]

    w1f, b1f = fold(p["w_conv1"], p["b_conv1"], p["bn1"])      # (3,3,Cin,Cout) f32
    w2f, b2f = fold(p["w_conv2"], p["b_conv2"], p["bn2"])      # (3,3,Cout,Cout) f32
    w2g = w2f.reshape(3, 3 * Cout, Cout).astype(jnp.bfloat16)  # taps grouped per ky
    b2 = b2f.reshape(1, Cout).astype(jnp.float32)

    # padded (+1 top, +2 bottom, +1 left, +1 right), flattened, bf16 input
    xp = jnp.pad(x_nhwc, ((0, 0), (1, 2), (1, 1), (0, 0)))
    xf = xp.reshape(N, pad_rows, Cin).astype(jnp.bfloat16)

    cparams = pltpu.CompilerParams(
        dimension_semantics=("parallel",),        # batch split across TCs on v7x
        vmem_limit_bytes=32 * 1024 * 1024)
    out_shape = jax.ShapeDtypeStruct((N, H, W, Cout), jnp.float32)
    out_spec = pl.BlockSpec((1, H, W, Cout), lambda n: (n, 0, 0, 0))

    # TODO(synk): for large H*W add a row-tile grid axis (with a 2*Wp input halo) so
    # VMEM use becomes image-size invariant (v7x: 64 MiB physical) and each core gets
    # multiple pipelined steps; at these shapes one image per step is already tiny.

    if 9 * Cin <= 256:
        # im2col in the wrapper so conv1 is one dense-K matmul; merge the 1x1
        # residual into the same matmul (128-lane-dense output when Cout=64).
        xcat = jnp.concatenate(
            [xf[:, dy * Wp + dx: dy * Wp + dx + rows, :]
             for dy in range(3) for dx in range(3)], axis=-1)       # (N, rows, 9*Cin)
        w1r = jnp.concatenate(
            [w1f.reshape(9 * Cin, Cout),
             jnp.zeros((9 * Cin, Cout), jnp.float32).at[4 * Cin:5 * Cin]
             .set(p["w1x1"].astype(jnp.float32))],
            axis=-1).astype(jnp.bfloat16)                            # (9*Cin, 2*Cout)
        b1r = jnp.concatenate([b1f, p["b1x1"]]).reshape(1, 2 * Cout)
        b1r = b1r.astype(jnp.float32)

        return pl.pallas_call(
            partial(_fused_packed_kernel, H=H, W=W, Wp=Wp, base=base),
            out_shape=out_shape,
            grid=(N,),
            in_specs=[
                pl.BlockSpec((1, rows, 9 * Cin), lambda n: (n, 0, 0)),
                pl.BlockSpec((9 * Cin, 2 * Cout), lambda n: (0, 0)),
                pl.BlockSpec((1, 2 * Cout), lambda n: (0, 0)),
                pl.BlockSpec((3, 3 * Cout, Cout), lambda n: (0, 0, 0)),
                pl.BlockSpec((1, Cout), lambda n: (0, 0)),
            ],
            out_specs=out_spec,
            scratch_shapes=[
                pltpu.VMEM((pad_rows, Cout), jnp.float32),   # padded conv1 act
                pltpu.VMEM((rows, Cout), jnp.float32),       # 1x1 residual
            ],
            compiler_params=cparams,
        )(xcat, w1r, b1r, w2g, b2)

    # large Cin: read the padded bf16 input once, stage in VMEM, 3-tap K groups.
    w1g = w1f.reshape(3, 3 * Cin, Cout).astype(jnp.bfloat16)
    b1 = b1f.reshape(1, Cout).astype(jnp.float32)
    wr = p["w1x1"].astype(jnp.bfloat16)
    br = p["b1x1"].reshape(1, Cout).astype(jnp.float32)

    return pl.pallas_call(
        partial(_fused_general_kernel, H=H, W=W, Wp=Wp, base=base),
        out_shape=out_shape,
        grid=(N,),
        in_specs=[
            pl.BlockSpec((1, pad_rows, Cin), lambda n: (n, 0, 0)),
            pl.BlockSpec((3, 3 * Cin, Cout), lambda n: (0, 0, 0)),
            pl.BlockSpec((1, Cout), lambda n: (0, 0)),
            pl.BlockSpec((Cin, Cout), lambda n: (0, 0)),
            pl.BlockSpec((1, Cout), lambda n: (0, 0)),
            pl.BlockSpec((3, 3 * Cout, Cout), lambda n: (0, 0, 0)),
            pl.BlockSpec((1, Cout), lambda n: (0, 0)),
        ],
        out_specs=out_spec,
        scratch_shapes=[
            pltpu.VMEM((pad_rows, Cin), jnp.float32),
            pltpu.VMEM((pad_rows, Cout), jnp.float32),
            pltpu.VMEM((rows, Cout), jnp.float32),
        ],
        compiler_params=cparams,
    )(xf, w1g, b1, wr, br, w2g, b2)


# ---------------------------------------------------------------------------
# Pure-JAX reference (f32) of the PyTorch conv_block forward (eval-mode BN)
# ---------------------------------------------------------------------------

def conv_block_reference(x_nhwc, p, eps=1e-5):
    def conv3x3(x, w, b):
        y = jax.lax.conv_general_dilated(
            x, w, window_strides=(1, 1), padding=((1, 1), (1, 1)),
            dimension_numbers=("NHWC", "HWIO", "NHWC"))
        return y + b

    def bn(x, q):
        return (x - q["mean"]) / jnp.sqrt(q["var"] + eps) * q["gamma"] + q["beta"]

    residual = jnp.einsum("nhwc,cd->nhwd", x_nhwc, p["w1x1"]) + p["b1x1"]
    out = jax.nn.relu(bn(conv3x3(x_nhwc, p["w_conv1"], p["b_conv1"]), p["bn1"]))
    out = jax.nn.relu(bn(conv3x3(out, p["w_conv2"], p["b_conv2"]), p["bn2"]))
    return jax.nn.relu(out + residual)


# ---------------------------------------------------------------------------
# Deterministic parameter initialization (synthetic weights)
# ---------------------------------------------------------------------------

def _init_bn(key, ch):
    k1, k2, k3, k4 = jax.random.split(key, 4)
    return {
        "gamma": 1.0 + 0.1 * jax.random.normal(k1, (ch,), jnp.float32),
        "beta": 0.05 * jax.random.normal(k2, (ch,), jnp.float32),
        "mean": 0.05 * jax.random.normal(k3, (ch,), jnp.float32),
        "var": 1.0 + 0.1 * jnp.abs(jax.random.normal(k4, (ch,), jnp.float32)),
    }


def init_conv_block(key, ch_in, ch_out):
    ks = jax.random.split(key, 8)
    f1 = 1.0 / math.sqrt(9 * ch_in)
    f2 = 1.0 / math.sqrt(9 * ch_out)
    f3 = 1.0 / math.sqrt(ch_in)
    return {
        "w_conv1": f1 * jax.random.normal(ks[0], (3, 3, ch_in, ch_out), jnp.float32),
        "b_conv1": 0.01 * jax.random.normal(ks[1], (ch_out,), jnp.float32),
        "w_conv2": f2 * jax.random.normal(ks[2], (3, 3, ch_out, ch_out), jnp.float32),
        "b_conv2": 0.01 * jax.random.normal(ks[3], (ch_out,), jnp.float32),
        "w1x1": f3 * jax.random.normal(ks[4], (ch_in, ch_out), jnp.float32),
        "b1x1": 0.01 * jax.random.normal(ks[5], (ch_out,), jnp.float32),
        "bn1": _init_bn(ks[6], ch_out),
        "bn2": _init_bn(ks[7], ch_out),
    }


# ---------------------------------------------------------------------------
# Demo
# ---------------------------------------------------------------------------

if __name__ == "__main__":
    key = jax.random.PRNGKey(0)
    kx, kp = jax.random.split(key)

    ch_in, ch_out = 4, 64
    N, H, W = 2, 16, 16

    params = init_conv_block(kp, ch_in, ch_out)
    x_nchw = jax.random.normal(kx, (N, ch_in, H, W), jnp.float32)   # PyTorch layout
    x_nhwc = jnp.transpose(x_nchw, (0, 2, 3, 1))                    # NCHW -> NHWC

    fwd = jax.jit(conv_block_forward)
    y_nhwc = fwd(x_nhwc, params)
    y = jnp.transpose(y_nhwc, (0, 3, 1, 2))                         # back to NCHW
    jax.block_until_ready(y)

    assert y.shape == (N, ch_out, H, W), y.shape
    assert bool(jnp.all(jnp.isfinite(y)))

    # loose-tolerance check vs the f32 reference (kernel matmuls run in bf16)
    y_ref = jnp.transpose(conv_block_reference(x_nhwc, params), (0, 3, 1, 2))
    err = float(jnp.max(jnp.abs(y - y_ref)))
    scale = float(jnp.max(jnp.abs(y_ref)))
    assert err <= 0.08 * max(1.0, scale), (err, scale)

    print("KERNEL_OK")
</pallas_src>

<mosaic_0001>
module attributes {stable_mosaic.version = 11 : i64} {
  func.func @_fused_packed_kernel(%arg0: i32, %arg1: memref<1x288x36xbf16, #tpu.memory_space<vmem>>, %arg2: memref<36x128xbf16, #tpu.memory_space<vmem>>, %arg3: memref<1x128xf32, #tpu.memory_space<vmem>>, %arg4: memref<3x192x64xbf16, #tpu.memory_space<vmem>>, %arg5: memref<1x64xf32, #tpu.memory_space<vmem>>, %arg6: memref<1x16x16x64xf32, #tpu.memory_space<vmem>>, %arg7: memref<342x64xf32, #tpu.memory_space<vmem>>, %arg8: memref<288x64xf32, #tpu.memory_space<vmem>>) attributes {dimension_semantics = [#tpu.dimension_semantics<parallel>], iteration_bounds = array<i64: 2>, scalar_prefetch = 0 : i64, scratch_operands = 2 : i64, tpu.core_type = #tpu.core_type<tc>, window_params = [{transform_indices = @transform_0, window_bounds = array<i64: 1, 288, 36>}, {pipeline_mode = #tpu.pipeline_mode<synchronous>, transform_indices = @transform_1, window_bounds = array<i64: 36, 128>}, {pipeline_mode = #tpu.pipeline_mode<synchronous>, transform_indices = @transform_2, window_bounds = array<i64: 1, 128>}, {pipeline_mode = #tpu.pipeline_mode<synchronous>, transform_indices = @transform_3, window_bounds = array<i64: 3, 192, 64>}, {pipeline_mode = #tpu.pipeline_mode<synchronous>, transform_indices = @transform_4, window_bounds = array<i64: 1, 64>}, {transform_indices = @transform_5, window_bounds = array<i64: 1, 16, 16, 64>}]} {
    %c0 = arith.constant 0 : index
    %c0_0 = arith.constant 0 : index
    %c0_1 = arith.constant 0 : index
    %0 = vector.load %arg1[%c0, %c0_0, %c0_1] : memref<1x288x36xbf16, #tpu.memory_space<vmem>>, vector<1x288x36xbf16>
    %1 = vector.shape_cast %0 : vector<1x288x36xbf16> to vector<288x36xbf16>
    %c0_2 = arith.constant 0 : index
    %c0_3 = arith.constant 0 : index
    %2 = vector.load %arg2[%c0_2, %c0_3] : memref<36x128xbf16, #tpu.memory_space<vmem>>, vector<36x128xbf16>
    %cst = arith.constant dense<0.000000e+00> : vector<288x128xf32>
    %3 = tpu.matmul %1, %2, %cst {dimension_numbers = #tpu.dot_dimension_numbers<[1], [0], [0], [1], [0, 0, 1, 1], [], []>} : vector<288x36xbf16>, vector<36x128xbf16>, vector<288x128xf32> -> vector<288x128xf32>
    %c0_4 = arith.constant 0 : index
    %c0_5 = arith.constant 0 : index
    %4 = vector.load %arg3[%c0_4, %c0_5] : memref<1x128xf32, #tpu.memory_space<vmem>>, vector<1x128xf32>
    %5 = vector.broadcast %4 : vector<1x128xf32> to vector<288x128xf32>
    %6 = arith.addf %3, %5 : vector<288x128xf32>
    %7 = vector.extract_strided_slice %6 {offsets = [0, 64], sizes = [288, 64], strides = [1, 1]} : vector<288x128xf32> to vector<288x64xf32>
    %c0_6 = arith.constant 0 : index
    %c0_7 = arith.constant 0 : index
    %8 = vector.load %arg8[%c0_6, %c0_7] : memref<288x64xf32, #tpu.memory_space<vmem>>, vector<288x64xf32>
    tpu.vector_store %arg8[%c0_6, %c0_7], %7 {strides = array<i32>} : memref<288x64xf32, #tpu.memory_space<vmem>>, vector<288x64xf32>,
    %9 = vector.extract_strided_slice %6 {offsets = [0, 0], sizes = [288, 64], strides = [1, 1]} : vector<288x128xf32> to vector<288x64xf32>
    %cst_8 = arith.constant 0.000000e+00 : f32
    %10 = vector.broadcast %cst_8 : f32 to vector<288x64xf32>
    %11 = arith.maximumf %9, %10 : vector<288x64xf32>
    %12 = tpu.iota {dimensions = array<i32: 0>} : vector<288x64xi32>
    %c18_i32 = arith.constant 18 : i32
    %c0_i32 = arith.constant 0 : i32
    %13 = arith.cmpi eq, %c18_i32, %c0_i32 : i32
    %c1_i32 = arith.constant 1 : i32
    %14 = arith.select %13, %c1_i32, %c18_i32 : i32
    %15 = vector.broadcast %14 : i32 to vector<288x64xi32>
    %16 = arith.remsi %12, %15 : vector<288x64xi32>
    %c0_i32_9 = arith.constant 0 : i32
    %17 = vector.broadcast %c0_i32_9 : i32 to vector<288x64xi32>
    %18 = arith.cmpi ne, %16, %17 : vector<288x64xi32>
    %c0_i32_10 = arith.constant 0 : i32
    %19 = vector.broadcast %c0_i32_10 : i32 to vector<288x64xi32>
    %20 = arith.cmpi slt, %16, %19 : vector<288x64xi32>
    %c0_i32_11 = arith.constant 0 : i32
    %21 = arith.cmpi slt, %14, %c0_i32_11 : i32
    %22 = vector.broadcast %21 : i1 to vector<288x64xi1>
    %23 = vector.broadcast %22 : vector<288x64xi1> to vector<288x64xi1>
    %24 = arith.xori %20, %23 : vector<288x64xi1>
    %25 = arith.andi %24, %18 : vector<288x64xi1>
    %26 = vector.broadcast %14 : i32 to vector<288x64xi32>
    %27 = arith.addi %16, %26 : vector<288x64xi32>
    %28 = arith.select %25, %27, %16 : vector<288x64xi1>, vector<288x64xi32>
    %c16_i32 = arith.constant 16 : i32
    %29 = vector.broadcast %c16_i32 : i32 to vector<288x64xi32>
    %30 = arith.cmpi slt, %28, %29 : vector<288x64xi32>
    %cst_12 = arith.constant 0.000000e+00 : f32
    %31 = vector.broadcast %cst_12 : f32 to vector<288x64xf32>
    %32 = arith.select %30, %11, %31 : vector<288x64xi1>, vector<288x64xf32>
    %cst_13 = arith.constant 0.000000e+00 : f32
    %33 = vector.broadcast %cst_13 : f32 to vector<24x64xf32>
    %c0_14 = arith.constant 0 : index
    %c0_15 = arith.constant 0 : index
    %34 = vector.load %arg7[%c0_14, %c0_15] : memref<342x64xf32, #tpu.memory_space<vmem>>, vector<24x64xf32>
    tpu.vector_store %arg7[%c0_14, %c0_15], %33 {strides = array<i32>} : memref<342x64xf32, #tpu.memory_space<vmem>>, vector<24x64xf32>,
    %c24 = arith.constant 24 : index
    %c0_16 = arith.constant 0 : index
    %35 = vector.load %arg7[%c24, %c0_16] : memref<342x64xf32, #tpu.memory_space<vmem>>, vector<288x64xf32>
    tpu.vector_store %arg7[%c24, %c0_16], %32 {strides = array<i32>} : memref<342x64xf32, #tpu.memory_space<vmem>>, vector<288x64xf32>,
    %cst_17 = arith.constant 0.000000e+00 : f32
    %36 = vector.broadcast %cst_17 : f32 to vector<30x64xf32>
    %c312 = arith.constant 312 : index
    %c0_18 = arith.constant 0 : index
    %37 = vector.load %arg7[%c312, %c0_18] : memref<342x64xf32, #tpu.memory_space<vmem>>, vector<30x64xf32>
    tpu.vector_store %arg7[%c312, %c0_18], %36 {strides = array<i32>} : memref<342x64xf32, #tpu.memory_space<vmem>>, vector<30x64xf32>,
    %c5 = arith.constant 5 : index
    %c0_19 = arith.constant 0 : index
    %38 = vector.load %arg7[%c5, %c0_19] : memref<342x64xf32, #tpu.memory_space<vmem>>, vector<288x64xf32>
    %c6 = arith.constant 6 : index
    %c0_20 = arith.constant 0 : index
    %39 = vector.load %arg7[%c6, %c0_20] : memref<342x64xf32, #tpu.memory_space<vmem>>, vector<288x64xf32>
    %c7 = arith.constant 7 : index
    %c0_21 = arith.constant 0 : index
    %40 = vector.load %arg7[%c7, %c0_21] : memref<342x64xf32, #tpu.memory_space<vmem>>, vector<288x64xf32>
    %41 = tpu.concatenate %38, %39, %40 in 1 : vector<288x64xf32>, vector<288x64xf32>, vector<288x64xf32> -> vector<288x192xf32>
    %42 = arith.truncf %41 : vector<288x192xf32> to vector<288x192xbf16>
    %c0_22 = arith.constant 0 : index
    %c0_23 = arith.constant 0 : index
    %c0_24 = arith.constant 0 : index
    %43 = vector.load %arg4[%c0_22, %c0_23, %c0_24] : memref<3x192x64xbf16, #tpu.memory_space<vmem>>, vector<1x192x64xbf16>
    %44 = vector.shape_cast %43 : vector<1x192x64xbf16> to vector<192x64xbf16>
    %cst_25 = arith.constant dense<0.000000e+00> : vector<288x64xf32>
    %45 = tpu.matmul %42, %44, %cst_25 {dimension_numbers = #tpu.dot_dimension_numbers<[1], [0], [0], [1], [0, 0, 1, 1], [], []>} : vector<288x192xbf16>, vector<192x64xbf16>, vector<288x64xf32> -> vector<288x64xf32>
    %c23 = arith.constant 23 : index
    %c0_26 = arith.constant 0 : index
    %46 = vector.load %arg7[%c23, %c0_26] : memref<342x64xf32, #tpu.memory_space<vmem>>, vector<288x64xf32>
    %c24_27 = arith.constant 24 : index
    %c0_28 = arith.constant 0 : index
    %47 = vector.load %arg7[%c24_27, %c0_28] : memref<342x64xf32, #tpu.memory_space<vmem>>, vector<288x64xf32>
    %c25 = arith.constant 25 : index
    %c0_29 = arith.constant 0 : index
    %48 = vector.load %arg7[%c25, %c0_29] : memref<342x64xf32, #tpu.memory_space<vmem>>, vector<288x64xf32>
    %49 = tpu.concatenate %46, %47, %48 in 1 : vector<288x64xf32>, vector<288x64xf32>, vector<288x64xf32> -> vector<288x192xf32>
    %50 = arith.truncf %49 : vector<288x192xf32> to vector<288x192xbf16>
    %c1 = arith.constant 1 : index
    %c0_30 = arith.constant 0 : index
    %c0_31 = arith.constant 0 : index
    %51 = vector.load %arg4[%c1, %c0_30, %c0_31] : memref<3x192x64xbf16, #tpu.memory_space<vmem>>, vector<1x192x64xbf16>
    %52 = vector.shape_cast %51 : vector<1x192x64xbf16> to vector<192x64xbf16>
    %cst_32 = arith.constant dense<0.000000e+00> : vector<288x64xf32>
    %53 = tpu.matmul %50, %52, %cst_32 {dimension_numbers = #tpu.dot_dimension_numbers<[1], [0], [0], [1], [0, 0, 1, 1], [], []>} : vector<288x192xbf16>, vector<192x64xbf16>, vector<288x64xf32> -> vector<288x64xf32>
    %54 = arith.addf %45, %53 : vector<288x64xf32>
    %c41 = arith.constant 41 : index
    %c0_33 = arith.constant 0 : index
    %55 = vector.load %arg7[%c41, %c0_33] : memref<342x64xf32, #tpu.memory_space<vmem>>, vector<288x64xf32>
    %c42 = arith.constant 42 : index
    %c0_34 = arith.constant 0 : index
    %56 = vector.load %arg7[%c42, %c0_34] : memref<342x64xf32, #tpu.memory_space<vmem>>, vector<288x64xf32>
    %c43 = arith.constant 43 : index
    %c0_35 = arith.constant 0 : index
    %57 = vector.load %arg7[%c43, %c0_35] : memref<342x64xf32, #tpu.memory_space<vmem>>, vector<288x64xf32>
    %58 = tpu.concatenate %55, %56, %57 in 1 : vector<288x64xf32>, vector<288x64xf32>, vector<288x64xf32> -> vector<288x192xf32>
    %59 = arith.truncf %58 : vector<288x192xf32> to vector<288x192xbf16>
    %c2 = arith.constant 2 : index
    %c0_36 = arith.constant 0 : index
    %c0_37 = arith.constant 0 : index
    %60 = vector.load %arg4[%c2, %c0_36, %c0_37] : memref<3x192x64xbf16, #tpu.memory_space<vmem>>, vector<1x192x64xbf16>
    %61 = vector.shape_cast %60 : vector<1x192x64xbf16> to vector<192x64xbf16>
    %cst_38 = arith.constant dense<0.000000e+00> : vector<288x64xf32>
    %62 = tpu.matmul %59, %61, %cst_38 {dimension_numbers = #tpu.dot_dimension_numbers<[1], [0], [0], [1], [0, 0, 1, 1], [], []>} : vector<288x192xbf16>, vector<192x64xbf16>, vector<288x64xf32> -> vector<288x64xf32>
    %63 = arith.addf %54, %62 : vector<288x64xf32>
    %c0_39 = arith.constant 0 : index
    %c0_40 = arith.constant 0 : index
    %64 = vector.load %arg5[%c0_39, %c0_40] : memref<1x64xf32, #tpu.memory_space<vmem>>, vector<1x64xf32>
    %65 = vector.broadcast %64 : vector<1x64xf32> to vector<288x64xf32>
    %66 = arith.addf %63, %65 : vector<288x64xf32>
    %cst_41 = arith.constant 0.000000e+00 : f32
    %67 = vector.broadcast %cst_41 : f32 to vector<288x64xf32>
    %68 = arith.maximumf %66, %67 : vector<288x64xf32>
    %c0_42 = arith.constant 0 : index
    %c0_43 = arith.constant 0 : index
    %69 = vector.load %arg8[%c0_42, %c0_43] : memref<288x64xf32, #tpu.memory_space<vmem>>, vector<288x64xf32>
    %70 = arith.addf %68, %69 : vector<288x64xf32>
    %cst_44 = arith.constant 0.000000e+00 : f32
    %71 = vector.broadcast %cst_44 : f32 to vector<288x64xf32>
    %72 = arith.maximumf %70, %71 : vector<288x64xf32>
    %73 = vector.extract_strided_slice %72 {offsets = [0, 0], sizes = [16, 64], strides = [1, 1]} : vector<288x64xf32> to vector<16x64xf32>
    %c0_45 = arith.constant 0 : index
    %c0_46 = arith.constant 0 : index
    %c0_47 = arith.constant 0 : index
    %c0_48 = arith.constant 0 : index
    %74 = vector.load %arg6[%c0_45, %c0_46, %c0_47, %c0_48] : memref<1x16x16x64xf32, #tpu.memory_space<vmem>>, vector<1x1x16x64xf32>
    %75 = vector.shape_cast %74 : vector<1x1x16x64xf32> to vector<16x64xf32>
    %76 = vector.shape_cast %73 : vector<16x64xf32> to vector<1x1x16x64xf32>
    tpu.vector_store %arg6[%c0_45, %c0_46, %c0_47, %c0_48], %76 {strides = array<i32>} : memref<1x16x16x64xf32, #tpu.memory_space<vmem>>, vector<1x1x16x64xf32>,
    %77 = vector.extract_strided_slice %72 {offsets = [18, 0], sizes = [16, 64], strides = [1, 1]} : vector<288x64xf32> to vector<16x64xf32>
    %c0_49 = arith.constant 0 : index
    %c1_50 = arith.constant 1 : index
    %c0_51 = arith.constant 0 : index
    %c0_52 = arith.constant 0 : index
    %78 = vector.load %arg6[%c0_49, %c1_50, %c0_51, %c0_52] : memref<1x16x16x64xf32, #tpu.memory_space<vmem>>, vector<1x1x16x64xf32>
    %79 = vector.shape_cast %78 : vector<1x1x16x64xf32> to vector<16x64xf32>
    %80 = vector.shape_cast %77 : vector<16x64xf32> to vector<1x1x16x64xf32>
    tpu.vector_store %arg6[%c0_49, %c1_50, %c0_51, %c0_52], %80 {strides = array<i32>} : memref<1x16x16x64xf32, #tpu.memory_space<vmem>>, vector<1x1x16x64xf32>,
    %81 = vector.extract_strided_slice %72 {offsets = [36, 0], sizes = [16, 64], strides = [1, 1]} : vector<288x64xf32> to vector<16x64xf32>
    %c0_53 = arith.constant 0 : index
    %c2_54 = arith.constant 2 : index
    %c0_55 = arith.constant 0 : index
    %c0_56 = arith.constant 0 : index
    %82 = vector.load %arg6[%c0_53, %c2_54, %c0_55, %c0_56] : memref<1x16x16x64xf32, #tpu.memory_space<vmem>>, vector<1x1x16x64xf32>
    %83 = vector.shape_cast %82 : vector<1x1x16x64xf32> to vector<16x64xf32>
    %84 = vector.shape_cast %81 : vector<16x64xf32> to vector<1x1x16x64xf32>
    tpu.vector_store %arg6[%c0_53, %c2_54, %c0_55, %c0_56], %84 {strides = array<i32>} : memref<1x16x16x64xf32, #tpu.memory_space<vmem>>, vector<1x1x16x64xf32>,
    %85 = vector.extract_strided_slice %72 {offsets = [54, 0], sizes = [16, 64], strides = [1, 1]} : vector<288x64xf32> to vector<16x64xf32>
    %c0_57 = arith.constant 0 : index
    %c3 = arith.constant 3 : index
    %c0_58 = arith.constant 0 : index
    %c0_59 = arith.constant 0 : index
    %86 = vector.load %arg6[%c0_57, %c3, %c0_58, %c0_59] : memref<1x16x16x64xf32, #tpu.memory_space<vmem>>, vector<1x1x16x64xf32>
    %87 = vector.shape_cast %86 : vector<1x1x16x64xf32> to vector<16x64xf32>
    %88 = vector.shape_cast %85 : vector<16x64xf32> to vector<1x1x16x64xf32>
    tpu.vector_store %arg6[%c0_57, %c3, %c0_58, %c0_59], %88 {strides = array<i32>} : memref<1x16x16x64xf32, #tpu.memory_space<vmem>>, vector<1x1x16x64xf32>,
    %89 = vector.extract_strided_slice %72 {offsets = [72, 0], sizes = [16, 64], strides = [1, 1]} : vector<288x64xf32> to vector<16x64xf32>
    %c0_60 = arith.constant 0 : index
    %c4 = arith.constant 4 : index
    %c0_61 = arith.constant 0 : index
    %c0_62 = arith.constant 0 : index
    %90 = vector.load %arg6[%c0_60, %c4, %c0_61, %c0_62] : memref<1x16x16x64xf32, #tpu.memory_space<vmem>>, vector<1x1x16x64xf32>
    %91 = vector.shape_cast %90 : vector<1x1x16x64xf32> to vector<16x64xf32>
    %92 = vector.shape_cast %89 : vector<16x64xf32> to vector<1x1x16x64xf32>
    tpu.vector_store %arg6[%c0_60, %c4, %c0_61, %c0_62], %92 {strides = array<i32>} : memref<1x16x16x64xf32, #tpu.memory_space<vmem>>, vector<1x1x16x64xf32>,
    %93 = vector.extract_strided_slice %72 {offsets = [90, 0], sizes = [16, 64], strides = [1, 1]} : vector<288x64xf32> to vector<16x64xf32>
    %c0_63 = arith.constant 0 : index
    %c5_64 = arith.constant 5 : index
    %c0_65 = arith.constant 0 : index
    %c0_66 = arith.constant 0 : index
    %94 = vector.load %arg6[%c0_63, %c5_64, %c0_65, %c0_66] : memref<1x16x16x64xf32, #tpu.memory_space<vmem>>, vector<1x1x16x64xf32>
    %95 = vector.shape_cast %94 : vector<1x1x16x64xf32> to vector<16x64xf32>
    %96 = vector.shape_cast %93 : vector<16x64xf32> to vector<1x1x16x64xf32>
    tpu.vector_store %arg6[%c0_63, %c5_64, %c0_65, %c0_66], %96 {strides = array<i32>} : memref<1x16x16x64xf32, #tpu.memory_space<vmem>>, vector<1x1x16x64xf32>,
    %97 = vector.extract_strided_slice %72 {offsets = [108, 0], sizes = [16, 64], strides = [1, 1]} : vector<288x64xf32> to vector<16x64xf32>
    %c0_67 = arith.constant 0 : index
    %c6_68 = arith.constant 6 : index
    %c0_69 = arith.constant 0 : index
    %c0_70 = arith.constant 0 : index
    %98 = vector.load %arg6[%c0_67, %c6_68, %c0_69, %c0_70] : memref<1x16x16x64xf32, #tpu.memory_space<vmem>>, vector<1x1x16x64xf32>
    %99 = vector.shape_cast %98 : vector<1x1x16x64xf32> to vector<16x64xf32>
    %100 = vector.shape_cast %97 : vector<16x64xf32> to vector<1x1x16x64xf32>
    tpu.vector_store %arg6[%c0_67, %c6_68, %c0_69, %c0_70], %100 {strides = array<i32>} : memref<1x16x16x64xf32, #tpu.memory_space<vmem>>, vector<1x1x16x64xf32>,
    %101 = vector.extract_strided_slice %72 {offsets = [126, 0], sizes = [16, 64], strides = [1, 1]} : vector<288x64xf32> to vector<16x64xf32>
    %c0_71 = arith.constant 0 : index
    %c7_72 = arith.constant 7 : index
    %c0_73 = arith.constant 0 : index
    %c0_74 = arith.constant 0 : index
    %102 = vector.load %arg6[%c0_71, %c7_72, %c0_73, %c0_74] : memref<1x16x16x64xf32, #tpu.memory_space<vmem>>, vector<1x1x16x64xf32>
    %103 = vector.shape_cast %102 : vector<1x1x16x64xf32> to vector<16x64xf32>
    %104 = vector.shape_cast %101 : vector<16x64xf32> to vector<1x1x16x64xf32>
    tpu.vector_store %arg6[%c0_71, %c7_72, %c0_73, %c0_74], %104 {strides = array<i32>} : memref<1x16x16x64xf32, #tpu.memory_space<vmem>>, vector<1x1x16x64xf32>,
    %105 = vector.extract_strided_slice %72 {offsets = [144, 0], sizes = [16, 64], strides = [1, 1]} : vector<288x64xf32> to vector<16x64xf32>
    %c0_75 = arith.constant 0 : index
    %c8 = arith.constant 8 : index
    %c0_76 = arith.constant 0 : index
    %c0_77 = arith.constant 0 : index
    %106 = vector.load %arg6[%c0_75, %c8, %c0_76, %c0_77] : memref<1x16x16x64xf32, #tpu.memory_space<vmem>>, vector<1x1x16x64xf32>
    %107 = vector.shape_cast %106 : vector<1x1x16x64xf32> to vector<16x64xf32>
    %108 = vector.shape_cast %105 : vector<16x64xf32> to vector<1x1x16x64xf32>
    tpu.vector_store %arg6[%c0_75, %c8, %c0_76, %c0_77], %108 {strides = array<i32>} : memref<1x16x16x64xf32, #tpu.memory_space<vmem>>, vector<1x1x16x64xf32>,
    %109 = vector.extract_strided_slice %72 {offsets = [162, 0], sizes = [16, 64], strides = [1, 1]} : vector<288x64xf32> to vector<16x64xf32>
    %c0_78 = arith.constant 0 : index
    %c9 = arith.constant 9 : index
    %c0_79 = arith.constant 0 : index
    %c0_80 = arith.constant 0 : index
    %110 = vector.load %arg6[%c0_78, %c9, %c0_79, %c0_80] : memref<1x16x16x64xf32, #tpu.memory_space<vmem>>, vector<1x1x16x64xf32>
    %111 = vector.shape_cast %110 : vector<1x1x16x64xf32> to vector<16x64xf32>
    %112 = vector.shape_cast %109 : vector<16x64xf32> to vector<1x1x16x64xf32>
    tpu.vector_store %arg6[%c0_78, %c9, %c0_79, %c0_80], %112 {strides = array<i32>} : memref<1x16x16x64xf32, #tpu.memory_space<vmem>>, vector<1x1x16x64xf32>,
    %113 = vector.extract_strided_slice %72 {offsets = [180, 0], sizes = [16, 64], strides = [1, 1]} : vector<288x64xf32> to vector<16x64xf32>
    %c0_81 = arith.constant 0 : index
    %c10 = arith.constant 10 : index
    %c0_82 = arith.constant 0 : index
    %c0_83 = arith.constant 0 : index
    %114 = vector.load %arg6[%c0_81, %c10, %c0_82, %c0_83] : memref<1x16x16x64xf32, #tpu.memory_space<vmem>>, vector<1x1x16x64xf32>
    %115 = vector.shape_cast %114 : vector<1x1x16x64xf32> to vector<16x64xf32>
    %116 = vector.shape_cast %113 : vector<16x64xf32> to vector<1x1x16x64xf32>
    tpu.vector_store %arg6[%c0_81, %c10, %c0_82, %c0_83], %116 {strides = array<i32>} : memref<1x16x16x64xf32, #tpu.memory_space<vmem>>, vector<1x1x16x64xf32>,
    %117 = vector.extract_strided_slice %72 {offsets = [198, 0], sizes = [16, 64], strides = [1, 1]} : vector<288x64xf32> to vector<16x64xf32>
    %c0_84 = arith.constant 0 : index
    %c11 = arith.constant 11 : index
    %c0_85 = arith.constant 0 : index
    %c0_86 = arith.constant 0 : index
    %118 = vector.load %arg6[%c0_84, %c11, %c0_85, %c0_86] : memref<1x16x16x64xf32, #tpu.memory_space<vmem>>, vector<1x1x16x64xf32>
    %119 = vector.shape_cast %118 : vector<1x1x16x64xf32> to vector<16x64xf32>
    %120 = vector.shape_cast %117 : vector<16x64xf32> to vector<1x1x16x64xf32>
    tpu.vector_store %arg6[%c0_84, %c11, %c0_85, %c0_86], %120 {strides = array<i32>} : memref<1x16x16x64xf32, #tpu.memory_space<vmem>>, vector<1x1x16x64xf32>,
    %121 = vector.extract_strided_slice %72 {offsets = [216, 0], sizes = [16, 64], strides = [1, 1]} : vector<288x64xf32> to vector<16x64xf32>
    %c0_87 = arith.constant 0 : index
    %c12 = arith.constant 12 : index
    %c0_88 = arith.constant 0 : index
    %c0_89 = arith.constant 0 : index
    %122 = vector.load %arg6[%c0_87, %c12, %c0_88, %c0_89] : memref<1x16x16x64xf32, #tpu.memory_space<vmem>>, vector<1x1x16x64xf32>
    %123 = vector.shape_cast %122 : vector<1x1x16x64xf32> to vector<16x64xf32>
    %124 = vector.shape_cast %121 : vector<16x64xf32> to vector<1x1x16x64xf32>
    tpu.vector_store %arg6[%c0_87, %c12, %c0_88, %c0_89], %124 {strides = array<i32>} : memref<1x16x16x64xf32, #tpu.memory_space<vmem>>, vector<1x1x16x64xf32>,
    %125 = vector.extract_strided_slice %72 {offsets = [234, 0], sizes = [16, 64], strides = [1, 1]} : vector<288x64xf32> to vector<16x64xf32>
    %c0_90 = arith.constant 0 : index
    %c13 = arith.constant 13 : index
    %c0_91 = arith.constant 0 : index
    %c0_92 = arith.constant 0 : index
    %126 = vector.load %arg6[%c0_90, %c13, %c0_91, %c0_92] : memref<1x16x16x64xf32, #tpu.memory_space<vmem>>, vector<1x1x16x64xf32>
    %127 = vector.shape_cast %126 : vector<1x1x16x64xf32> to vector<16x64xf32>
    %128 = vector.shape_cast %125 : vector<16x64xf32> to vector<1x1x16x64xf32>
    tpu.vector_store %arg6[%c0_90, %c13, %c0_91, %c0_92], %128 {strides = array<i32>} : memref<1x16x16x64xf32, #tpu.memory_space<vmem>>, vector<1x1x16x64xf32>,
    %129 = vector.extract_strided_slice %72 {offsets = [252, 0], sizes = [16, 64], strides = [1, 1]} : vector<288x64xf32> to vector<16x64xf32>
    %c0_93 = arith.constant 0 : index
    %c14 = arith.constant 14 : index
    %c0_94 = arith.constant 0 : index
    %c0_95 = arith.constant 0 : index
    %130 = vector.load %arg6[%c0_93, %c14, %c0_94, %c0_95] : memref<1x16x16x64xf32, #tpu.memory_space<vmem>>, vector<1x1x16x64xf32>
    %131 = vector.shape_cast %130 : vector<1x1x16x64xf32> to vector<16x64xf32>
    %132 = vector.shape_cast %129 : vector<16x64xf32> to vector<1x1x16x64xf32>
    tpu.vector_store %arg6[%c0_93, %c14, %c0_94, %c0_95], %132 {strides = array<i32>} : memref<1x16x16x64xf32, #tpu.memory_space<vmem>>, vector<1x1x16x64xf32>,
    %133 = vector.extract_strided_slice %72 {offsets = [270, 0], sizes = [16, 64], strides = [1, 1]} : vector<288x64xf32> to vector<16x64xf32>
    %c0_96 = arith.constant 0 : index
    %c15 = arith.constant 15 : index
    %c0_97 = arith.constant 0 : index
    %c0_98 = arith.constant 0 : index
    %134 = vector.load %arg6[%c0_96, %c15, %c0_97, %c0_98] : memref<1x16x16x64xf32, #tpu.memory_space<vmem>>, vector<1x1x16x64xf32>
    %135 = vector.shape_cast %134 : vector<1x1x16x64xf32> to vector<16x64xf32>
    %136 = vector.shape_cast %133 : vector<16x64xf32> to vector<1x1x16x64xf32>
    tpu.vector_store %arg6[%c0_96, %c15, %c0_97, %c0_98], %136 {strides = array<i32>} : memref<1x16x16x64xf32, #tpu.memory_space<vmem>>, vector<1x1x16x64xf32>,
    return
  }
  func.func @transform_0(%arg0: i32) -> (i32, i32, i32) {
    %c0_i32 = arith.constant 0 : i32
    %c0_i32_0 = arith.constant 0 : i32
    %c0_i32_1 = arith.constant 0 : i32
    return %arg0, %c0_i32, %c0_i32_0 : i32, i32, i32
  }
  func.func @transform_1(%arg0: i32) -> (i32, i32) {
    %c0_i32 = arith.constant 0 : i32
    %c0_i32_0 = arith.constant 0 : i32
    %c0_i32_1 = arith.constant 0 : i32
    return %c0_i32, %c0_i32_0 : i32, i32
  }
  func.func @transform_2(%arg0: i32) -> (i32, i32) {
    %c0_i32 = arith.constant 0 : i32
    %c0_i32_0 = arith.constant 0 : i32
    %c0_i32_1 = arith.constant 0 : i32
    return %c0_i32, %c0_i32_0 : i32, i32
  }
  func.func @transform_3(%arg0: i32) -> (i32, i32, i32) {
    %c0_i32 = arith.constant 0 : i32
    %c0_i32_0 = arith.constant 0 : i32
    %c0_i32_1 = arith.constant 0 : i32
    %c0_i32_2 = arith.constant 0 : i32
    return %c0_i32, %c0_i32_0, %c0_i32_1 : i32, i32, i32
  }
  func.func @transform_4(%arg0: i32) -> (i32, i32) {
    %c0_i32 = arith.constant 0 : i32
    %c0_i32_0 = arith.constant 0 : i32
    %c0_i32_1 = arith.constant 0 : i32
    return %c0_i32, %c0_i32_0 : i32, i32
  }
  func.func @transform_5(%arg0: i32) -> (i32, i32, i32, i32) {
    %c0_i32 = arith.constant 0 : i32
    %c0_i32_0 = arith.constant 0 : i32
    %c0_i32_1 = arith.constant 0 : i32
    %c0_i32_2 = arith.constant 0 : i32
    return %arg0, %c0_i32, %c0_i32_0, %c0_i32_1 : i32, i32, i32, i32
  }
}

</mosaic_0001>

<bundles_post_ra>
// kernel: conv_block_forward.1
= control target key start
LH: loop header
LB: loop body
LE: loop exit
PB: predicated region body
PF: predicated region fallthrough
CT: control target
= control target key end

     0   :  { %10 = vsyncpa [#allocation5], 0  ;;  %s7535_s0 = inlined_call_operand.vmem [shape: bf16[2,288,36], index: 0, kind: input, shape index: {}]   ;;  %s7536_s1 = inlined_call_operand.vmem [shape: bf16[36,128], index: 1, kind: input, shape index: {}]   ;;  %s7537_s2 = inlined_call_operand.vmem [shape: f32[1,128], index: 2, kind: input, shape index: {}]   ;;  %s7538_s3 = inlined_call_operand.vmem [shape: bf16[3,192,64], index: 3, kind: input, shape index: {}]   ;;  %s7539_s4 = inlined_call_operand.vmem [shape: f32[1,64], index: 4, kind: input, shape index: {}]   ;;  %s7540_s5 = inlined_call_operand.hbm [shape: f32[2,16,16,64], index: 5, kind: output, shape index: {}]  }
   0x1   :  { %12 = vsyncpa [#allocation5 + $0x1], 0  ;;  %s4708_s18 = smov 0   ;;  %s4710_s19 = smov 0  }
   0x2   :  { %s4712_s20 = smov 0   ;;  %s4714_s21 = smov 0  }
   0x3 LB: > { %s4729_s22 = sadd.s32 4294967295, %s4670_s21   ;;  %s3843_s23 = sadd.s32 4294967294, %s4670_s21   ;;  %s4670_s21 = sphi %s4714_s21, %s8110_s21   ;;  %s4666_s20 = sphi %s4712_s20, %s8109_s20   ;;  %s4662_s19 = sphi %s4710_s19, %s8108_s19   ;;  %s4658_s18 = sphi %s4708_s18, %s8107_s18  }
   0x4   : > { %s4733_s24 = sadd.s32 1, %s4670_s21   ;;  %s135_s25 = sadd.s32 1, %s4666_s20 }
   0x5   : > { %s132_s26 = ssub.s32 %s4670_s21, %s4733_s24  ;;  %p145_p0 = scmp.ne.s32.totalorder %s4666_s20, %s4662_s19 }
   0x6   : > { %p133_p1 = scmp.eq.s32.totalorder %s132_s26, 0  ;;  %p146_p2 = scmp.eq.s32.totalorder %s4729_s22, 1 }
   0x7   : > { %p151_p3 = scmp.ne.s32.totalorder %s4662_s19, %s4658_s18  ;;  %p152_p4 = scmp.eq.s32.totalorder %s3843_s23, 1 }
   0x8   : > { %s4744_s27 = scalar_select %p133_p1, %s4666_s20, %s135_s25  }
   0x9   : > { %p4746_p5 = por %p146_p2, %p145_p0  ;;  %p4750_p6 = por %p152_p4, %p151_p3 }
   0xa   : > { %p3846_p7 = scmp.ge.s32.totalorder %s4670_s21, 1  ;;  %p190_p8 = scmp.lt.s32.totalorder %s4670_s21, 3 }
   0xc   : > { %p191_p9 = pnand %p3846_p7, %p190_p8 }
   0xe   : > { %194 = sbr.rel (%p191_p9) target bundleno = 891 (0x37b), region = 40 }
  0x15   : > { %v4551_v0 = vld [vmem:[%s7536_s1] sm:$0xff]   ;;  %v4552_v1 = vld [vmem:[%s7536_s1 + $0x8] sm:$0xff]   ;;  %p218_p10 = scmp.lt.s32.totalorder %s4729_s22, 1  ;;  %v4553_v2 = vld [vmem:[%s7536_s1 + $0x10] ss:$0 sps:$4 sm:$0x33]   ;;  %v830_v22 = vlaneseq }
  0x16   : > { %4097 = vmatprep.subr.bf16.mxu0 %v4551_v0  ;;  %vm432_vm0 = vcmask 1041408   ;;  %vm377_vm1 = vcmask 293888   ;;  %vm7541_vm2 = vcmask 523264   ;;  %v4672_v62 = vmov 0.0   ;;  %s4674_s10 = smov 64   ;;  %s4075_s23 = sshll.u32 %s4729_s22, 12 }
  0x17   : > { %4098 = vmatpush3.bf16.msra.mxu0 %v4551_v0  ;;  %s219_s11 = scalar_select %p218_p10, %s4729_s22, 1  ;;  %v434_v3 = vsel %vm432_vm0, %v4553_v2, 0  ;;  %v4808_v23 = vshrl.u32 %v830_v22, 7  ;;  %1515 = vst.msk [vmem:[#allocation2] sm:$0xff] %vm7541_vm2, %v4672_v62  ;;  %1516 = vst.msk [vmem:[#allocation2 + $0x8] sm:$0xff] %vm7541_vm2, %v4672_v62 }
  0x18   : > { %4099 = vmatprep.subr.bf16.mxu0 %v4552_v1  ;;  %1517 = vst.msk [vmem:[#allocation2 + $0x10] sm:$0xff] %vm7541_vm2, %v4672_v62  ;;  %1554 = vst.msk [vmem:[#allocation2 + $0x138] sm:$0xff] %vm7541_vm2, %v4672_v62  ;;  %s7484_s6 = scalar_lea.hbm %s7540_s5, %s4075_s23  ;;  %s4675_s8 = smov [#allocation4]  }
  0x19   : > { %s4164_s12 = smul.u32 144, %s219_s11  ;;  %v833_v24 = vadd.s32 16, %v4808_v23  ;;  %v834_v25 = vadd.s32 24, %v4808_v23  ;;  %v4816_v28 = vmul.u32.u64.low 3817748708, %v4808_v23  ;;  %v4817_v29 = vmul.u32.u64.high 3817748708, %v4808_v23, %v4816_v28  ;;  %1555 = vst.msk [vmem:[#allocation2 + $0x140] sm:$0xff] %vm7541_vm2, %v4672_v62 }
  0x1a   : > { %v832_v32 = vadd.s32 8, %v4808_v23  ;;  %v837_v33 = vadd.s32 48, %v4808_v23  ;;  %v835_v34 = vadd.s32 32, %v4808_v23  ;;  %v4833_v40 = vadd.s32 56, %v4808_v23  ;;  %1556 = vst.msk [vmem:[#allocation2 + $0x148] sm:$0xff] %vm7541_vm2, %v4672_v62  ;;  %s4612_s9 = sshll.u32 %s4675_s8, 4  ;;  %s4613_s9 = int_to_ptr.vmem [resolvable:$false] %s4612_s9 }
  0x1b   : > { %4100 = vmatpush3.bf16.msra.mxu0 %v4552_v1  ;;  %s4770_s15 = scalar_lea.vmem %s7535_s0, %s4164_s12  ;;  %v4812_v26 = vmul.u32.u64.low 3817748708, %v833_v24  ;;  %v4813_v27 = vmul.u32.u64.high 3817748708, %v833_v24, %v4812_v26  ;;  %v4819_v30 = vmul.u32.u64.low 3817748708, %v834_v25  ;;  %v4820_v31 = vmul.u32.u64.high 3817748708, %v834_v25, %v4819_v30  ;;  %s4614_s11 = scalar_lea.vmem %s4613_s9, 8192 }
  0x1c   : > { %4163 = vmatprep.subr.msk.bf16.mxu0 %vm432_vm0, %v4553_v2  ;;  %v4554_v4 = vld [vmem:[%s4770_s15] sm:$0xff]   ;;  %v4555_v5 = vld [vmem:[%s4770_s15 + $0x8] sm:$0xff]   ;;  %v4556_v6 = vld [vmem:[%s4770_s15 + $0x10] sm:$0xff]   ;;  %v4825_v35 = vmul.u32.u64.low 3817748708, %v832_v32  ;;  %v4826_v36 = vmul.u32.u64.high 3817748708, %v832_v32, %v4825_v35  ;;  %v873_v41 = vshrl.u32 %v4817_v29, 4 }
  0x1d   : > { %4103 = vmatprep.mubr.msk.bf16.mxu0 %vm377_vm1, %v4554_v4  ;;  %v4557_v7 = vld [vmem:[%s4770_s15 + $0x18] sm:$0xff]   ;;  %v4558_v8 = vld [vmem:[%s4770_s15 + $0x20] sm:$0xff]   ;;  %v4559_v9 = vld [vmem:[%s4770_s15 + $0x28] sm:$0xff]   ;;  %v895_v37 = vshrl.u32 %v4813_v27, 4  ;;  %v4829_v38 = vmul.u32.u64.low 3817748708, %v837_v33  ;;  %v4830_v39 = vmul.u32.u64.high 3817748708, %v837_v33, %v4829_v38 }
  0x1e   : > { %v4560_v10 = vld [vmem:[%s4770_s15 + $0x30] sm:$0xff]   ;;  %v4561_v11 = vld [vmem:[%s4770_s15 + $0x38] sm:$0xff]   ;;  %v4562_v12 = vld [vmem:[%s4770_s15 + $0x40] sm:$0xff]   ;;  %v4836_v42 = vmul.u32.u64.low 3817748708, %v835_v34  ;;  %v4837_v43 = vmul.u32.u64.high 3817748708, %v835_v34, %v4836_v42  ;;  %v4840_v44 = vadd.s32 40, %v4808_v23 }
  0x1f   : > { %4102 = vmatpush3.bf16.msra.mxu0 %v434_v3  ;;  %v4563_v13 = vld [vmem:[%s4770_s15 + $0x48] sm:$0xff]   ;;  %v4564_v14 = vld [vmem:[%s4770_s15 + $0x50] sm:$0xff]   ;;  %v4565_v15 = vld [vmem:[%s4770_s15 + $0x58] sm:$0xff]   ;;  %v4843_v45 = vadd.s32 80, %v4808_v23  ;;  %v906_v46 = vshrl.u32 %v4820_v31, 4  ;;  %v896_v47 = vmul.u32 18, %v895_v37 }
  0x20   : > { %v4566_v16 = vld [vmem:[%s4770_s15 + $0x60] sm:$0xff]   ;;  %v4567_v17 = vld [vmem:[%s4770_s15 + $0x68] sm:$0xff]   ;;  %v4568_v18 = vld [vmem:[%s4770_s15 + $0x70] sm:$0xff]   ;;  %v4847_v48 = vmul.u32.u64.low 3817748708, %v4833_v40  ;;  %v4848_v49 = vmul.u32.u64.high 3817748708, %v4833_v40, %v4847_v48  ;;  %v874_v50 = vmul.u32 18, %v873_v41 }
  0x21   : > { %v4569_v19 = vld [vmem:[%s4770_s15 + $0x78] sm:$0xff]   ;;  %v4570_v20 = vld [vmem:[%s4770_s15 + $0x80] sm:$0xff]   ;;  %v4571_v21 = vld [vmem:[%s4770_s15 + $0x88] sm:$0xff]   ;;  %v4851_v51 = vmul.u32.u64.low 3817748708, %v4840_v44  ;;  %v4852_v52 = vmul.u32.u64.high 3817748708, %v4840_v44, %v4851_v51  ;;  %v907_v55 = vmul.u32 18, %v906_v46  ;;  %v4859_v57 = vsub.s32 %v833_v24, %v896_v47 }
  0x22   : > { %4104 = vmatmul.mubr.msk.bf16.vlgmr.msra.gmra.mrb[0].mxu0 %vm377_vm1, %v4555_v5  ;;  %v4855_v53 = vmul.u32.u64.low 3817748708, %v4843_v45  ;;  %v4856_v54 = vmul.u32.u64.high 3817748708, %v4843_v45, %v4855_v53  ;;  %v884_v56 = vshrl.u32 %v4826_v36, 4  ;;  %v939_v58 = vshrl.u32 %v4830_v39, 4  ;;  %s215_s15 = sand.u32 1, %s4662_s19  }
  0x23   : > { %4107 = vmatprep.mubr.msk.bf16.mxu0 %vm377_vm1, %v4556_v6  ;;  %v4863_v59 = vsub.s32 %v4808_v23, %v874_v50  ;;  %v917_v60 = vshrl.u32 %v4837_v43, 4  ;;  %v4867_v61 = vadd.s32 64, %v4808_v23  ;;  %v4875_v63 = vsub.s32 %v834_v25, %v907_v55  ;;  %s3847_s16 = sshll.u32 %s215_s15, 8  ;;  %s7494_s22 = scalar_lea.sflag [#allocation5], %s215_s15 }
  0x24   : > { %v885_v0 = vmul.u32 18, %v884_v56  ;;  %vm1265_vm3 = vcmp.ne.s32.totalorder %v4859_v57, 0  ;;  %vm1301_vm4 = vcmp.lt.s32.totalorder %v4859_v57, 0  ;;  %v940_v1 = vmul.u32 18, %v939_v58  ;;  %s7249_s17 = scalar_lea.vmem [#allocation4], %s3847_s16 }
  0x25   : > { %v950_v2 = vshrl.u32 %v4848_v49, 4  ;;  %v4881_v3 = vadd.s32 88, %v4808_v23  ;;  %v4884_v4 = vadd.s32 18, %v4859_v57  ;;  %vm1263_vm5 = vcmp.ne.s32.totalorder %v4863_v59, 0  ;;  %vm4958_vm15 = vmand %vm1301_vm4, %vm1265_vm3  ;;  %s3781_s25 = sshll.u32 %s7249_s17, 4  ;;  %s7486_s25 = int_to_ptr.vmem [resolvable:$true] %s3781_s25 }
  0x26   : > { %v918_v5 = vmul.u32 18, %v917_v60  ;;  %v928_v6 = vshrl.u32 %v4852_v52, 4  ;;  %vm1299_vm6 = vcmp.lt.s32.totalorder %v4863_v59, 0  ;;  %vm1266_vm7 = vcmp.ne.s32.totalorder %v4875_v63, 0  ;;  %s4608_s7 = scalar_lea.vmem %s7486_s25, 4096  ;;  %p4615_p0 = scmp.lt.s32.totalorder %s7486_s25, %s4613_s9 }
  0x27   : > { %vm1302_vm8 = vcmp.lt.s32.totalorder %v4875_v63, 0  ;;  %v4920_v24 = vadd.s32 112, %v4808_v23  ;;  %v4928_v26 = vadd.s32 96, %v4808_v23  ;;  %v4944_v30 = vadd.s32 120, %v4808_v23  ;;  %vm4976_vm0 = vmand %vm1299_vm6, %vm1263_vm5  ;;  %p4609_p11 = scmp.ne.s32.totalorder %s7486_s25, %s4608_s7  ;;  %p4616_p1 = scmp.lt.s32.totalorder %s4614_s11, %s4608_s7 }
  0x28   : > { %v4967_v38 = vadd.s32 104, %v4808_v23  ;;  %v4970_v39 = vadd.s32 128, %v4808_v23  ;;  %v4984_v42 = vadd.s32 144, %v4808_v23  ;;  %vm4990_vm4 = vmand %vm1302_vm8, %vm1266_vm7  ;;  %v5011_v49 = vadd.s32 152, %v4808_v23 }
  0x29   : > { %v4963_v36 = vmul.u32.u64.low 3817748708, %v4928_v26  ;;  %v4964_v37 = vmul.u32.u64.high 3817748708, %v4928_v26, %v4963_v36  ;;  %v7602_v50 = vmov 0  ;;  %v7604_v55 = vmov 0  ;;  %p4610_p12 = pnand %p4609_p11, %p4746_p5  ;;  %p4617_p2 = por %p4616_p1, %p4615_p0 }
  0x2a   : > { %4108 = vmatmul.mubr.msk.bf16.gmra.mrb[4].mxu0 %vm377_vm1, %v4557_v7  ;;  %v983_v7 = vshrl.u32 %v4856_v54, 4  ;;  %v5022_v51 = vmul.u32.u64.low 3817748708, %v4967_v38  ;;  %v5023_v52 = vmul.u32.u64.high 3817748708, %v4967_v38, %v5022_v51 }
  0x2b   : > { %4111 = vmatprep.mubr.msk.bf16.mxu0 %vm377_vm1, %v4558_v8  ;;  %v5026_v53 = vmul.u32.u64.low 3817748708, %v4970_v39  ;;  %v5027_v54 = vmul.u32.u64.high 3817748708, %v4970_v39, %v5026_v53  ;;  %v5039_v58 = vmul.u32.u64.low 3817748708, %v4984_v42  ;;  %v5040_v60 = vmul.u32.u64.high 3817748708, %v4984_v42, %v5039_v58  ;;  %p4611_p13 = pneg %p4610_p12 }
  0x2d   : > { %v1049_v51 = vshrl.u32 %v5027_v54, 4  ;;  %v1071_v58 = vshrl.u32 %v5040_v60, 4  ;;  %p4618_p3 = pnand %p4617_p2, %p4611_p13 }
  0x32   : > { %4112 = vmatmul.mubr.msk.bf16.gmra.mrb[8].mxu0 %vm377_vm1, %v4559_v9  ;;  %v4890_v8 = vmul.u32.u64.low 3817748708, %v4867_v61  ;;  %v4891_v9 = vmul.u32.u64.high 3817748708, %v4867_v61, %v4890_v8 }
  0x33   : > { %4115 = vmatprep.mubr.msk.bf16.mxu0 %vm377_vm1, %v4560_v10  ;;  %v4894_v10 = vadd.s32 72, %v4808_v23 }
  0x3a   : > { %4116 = vmatmul.mubr.msk.bf16.gmra.mrb[12].mxu0 %vm377_vm1, %v4561_v11  ;;  %v4898_v11 = vadd.s32 18, %v4863_v59 }
  0x3b   : > { %4119 = vmatprep.mubr.msk.bf16.mxu0 %vm377_vm1, %v4562_v12  ;;  %v4901_v12 = vsub.s32 %v832_v32, %v885_v0  ;;  %v961_v32 = vshrl.u32 %v4891_v9, 4  ;;  %v7606_v0 = vmov 0 }
  0x3d   : > { %vm1264_vm9 = vcmp.ne.s32.totalorder %v4901_v12, 0  ;;  %vm1300_vm10 = vcmp.lt.s32.totalorder %v4901_v12, 0  ;;  %v4925_v25 = vadd.s32 18, %v4901_v12  ;;  %v962_v47 = vmul.u32 18, %v961_v32 }
  0x3e   : > { %vm5004_vm2 = vmand %vm1300_vm10, %vm1264_vm9 }
  0x3f   : > { %v7657_v43 = vsel %vm5004_vm2, %v4925_v25, %v4901_v12 }
  0x42   : > { %4120 = vmatmul.mubr.msk.bf16.gmra.mrb[16].mxu0 %vm377_vm1, %v4563_v13  ;;  %v4903_v13 = vsub.s32 %v837_v33, %v940_v1 }
  0x43   : > { %4123 = vmatprep.mubr.msk.bf16.mxu0 %vm377_vm1, %v4564_v14  ;;  %v951_v14 = vmul.u32 18, %v950_v2 }
  0x44   : > { %vm1269_vm11 = vcmp.ne.s32.totalorder %v4903_v13, 0  ;;  %vm1305_vm12 = vcmp.lt.s32.totalorder %v4903_v13, 0  ;;  %v4933_v27 = vadd.s32 18, %v4903_v13 }
  0x45   : > { %v4936_v28 = vsub.s32 %v4833_v40, %v951_v14  ;;  %vm5017_vm8 = vmand %vm1305_vm12, %vm1269_vm11  ;;  %v5075_v9 = vmul.u32.u64.low 3817748708, %v5011_v49  ;;  %v5076_v14 = vmul.u32.u64.high 3817748708, %v5011_v49, %v5075_v9 }
  0x46   : > { %v7603_v50 = vsel %vm5017_vm8, 4294967295, %v7602_v50 }
  0x47   : > { %vm1306_vm3 = vcmp.lt.s32.totalorder %v4936_v28, 0  ;;  %v5054_v1 = vadd.s32 18, %v4936_v28  ;;  %v1082_v54 = vshrl.u32 %v5076_v14, 4  ;;  %v5168_v14 = vadd.s32 160, %v4808_v23 }
  0x4a   : > { %4124 = vmatmul.mubr.msk.bf16.gmra.mrb[20].mxu0 %vm377_vm1, %v4565_v15 }
  0x4b   : > { %4127 = vmatprep.mubr.msk.bf16.mxu0 %vm377_vm1, %v4566_v16  ;;  %v4906_v15 = vmul.u32.u64.low 3817748708, %v4881_v3  ;;  %v4907_v16 = vmul.u32.u64.high 3817748708, %v4881_v3, %v4906_v15 }
  0x4c   : > { %v1409_v15 = vsel %vm4958_vm15, %v4884_v4, %v4859_v57  ;;  %v7644_v57 = vmov 0   ;;  %v7645_v4 = vsel %vm4976_vm0, %v4898_v11, %v4863_v59  ;;  %v4575_v59 = vld [vmem:[%s7538_s3 + $0x78] sm:$0xff]  }
  0x4d   : > { %v994_v41 = vshrl.u32 %v4907_v16, 4  ;;  %vm5310_vm15 = vcmp.lt.s32.totalorder %v7645_v4, 16 }
  0x4f   : > { %v995_v56 = vmul.u32 18, %v994_v41  ;;  %v5120_v41 = vadd.s32 136, %v4808_v23 }
  0x51   : > { %v5108_v32 = vsub.s32 %v4881_v3, %v995_v56  ;;  %v7548_v3 = vmov 0  }
  0x52   : > { %4128 = vmatmul.mubr.msk.bf16.gmra.mrb[24].mxu0 %vm377_vm1, %v4567_v17  ;;  %v4911_v17 = vadd.s32 18, %v4875_v63  ;;  %4139 = vmatprep.subr.bf16.mxu1 %v7548_v3 }
  0x53   : > { %4131 = vmatprep.mubr.msk.bf16.mxu0 %vm377_vm1, %v4568_v18  ;;  %v4913_v18 = vsub.s32 %v835_v34, %v918_v5  ;;  %v4951_v33 = vmul.u32.u64.low 3817748708, %v4920_v24  ;;  %v4952_v34 = vmul.u32.u64.high 3817748708, %v4920_v24, %v4951_v33  ;;  %7613 = vst [vmem:[#allocation9_spill] sm:$0xff] %v5108_v32  ;;  %v5158_v60 = vadd.s32 18, %v5108_v32  ;;  %2348 = vmatprep.subr.bf16.mxu0 %v7548_v3 }
  0x54   : > { %v7650_v11 = vsel %vm4990_vm4, %v4911_v17, %v4875_v63  ;;  %v7654_v63 = vmov 0 }
  0x55   : > { %vm1267_vm13 = vcmp.ne.s32.totalorder %v4913_v18, 0  ;;  %vm1303_vm14 = vcmp.lt.s32.totalorder %v4913_v18, 0  ;;  %v5043_v62 = vadd.s32 18, %v4913_v18  ;;  %v1027_v8 = vshrl.u32 %v4952_v34, 4  ;;  %7615 = vst [vmem:[#allocation11_spill] sm:$0xff] %v5158_v60 }
  0x56   : > { %vm5033_vm9 = vmand %vm1303_vm14, %vm1267_vm13  ;;  %vm5336_vm0 = vcmp.lt.s32.totalorder %v7650_v11, 16 }
  0x57   : > { %v7605_v55 = vsel %vm5033_vm9, 4294967295, %v7604_v55 }
  0x5a   : > { %4132 = vmatmul.mubr.msk.bf16.gmra.mrb[28].mxu0 %vm377_vm1, %v4569_v19  ;;  %v929_v19 = vmul.u32 18, %v928_v6  ;;  %v7608_v6 = vmov 0 }
  0x5b   : > { %4135 = vmatprep.mubr.msk.bf16.mxu0 %vm377_vm1, %v4570_v20  ;;  %v984_v20 = vmul.u32 18, %v983_v7  ;;  %v5071_v7 = vsub.s32 %v4867_v61, %v962_v47  ;;  %v1028_v47 = vmul.u32 18, %v1027_v8 }
  0x5c   : > { %v4941_v29 = vsub.s32 %v4840_v44, %v929_v19  ;;  %v7611_v19 = vmov 0 }
  0x5d   : > { %v4947_v31 = vsub.s32 %v4843_v45, %v984_v20  ;;  %v4997_v44 = vmul.u32.u64.low 3817748708, %v4944_v30  ;;  %v4998_v45 = vmul.u32.u64.high 3817748708, %v4944_v30, %v4997_v44  ;;  %7610 = vst [vmem:[#allocation8_spill] sm:$0xff] %v5071_v7  ;;  %v1005_v20 = vshrl.u32 %v4964_v37, 4 }
  0x5e   : > { %vm1268_vm5 = vcmp.ne.s32.totalorder %v4941_v29, 0  ;;  %vm1304_vm6 = vcmp.lt.s32.totalorder %v4941_v29, 0  ;;  %v5057_v2 = vadd.s32 18, %v4941_v29  ;;  %vm1271_vm14 = vcmp.ne.s32.totalorder %v5071_v7, 0 }
  0x5f   : > { %7593 = vst [vmem:[#allocation7_spill] sm:$0xff] %v4947_v31  ;;  %vm1273_vm7 = vcmp.ne.s32.totalorder %v4947_v31, 0  ;;  %vm1309_vm10 = vcmp.lt.s32.totalorder %v4947_v31, 0  ;;  %v5060_v5 = vadd.s32 18, %v4947_v31  ;;  %vm5066_vm12 = vmand %vm1304_vm6, %vm1268_vm5  ;;  %v1038_v37 = vshrl.u32 %v4998_v45, 4 }
  0x60   : > { %v7609_v6 = vsel %vm5066_vm12, 4294967295, %v7608_v6  ;;  %vm5094_vm13 = vmand %vm1309_vm10, %vm1273_vm7  ;;  %v1016_v45 = vshrl.u32 %v5023_v52, 4  ;;  %v5135_v53 = vadd.s32 18, %v5071_v7  ;;  %vm1310_vm5 = vcmp.lt.s32.totalorder %v5108_v32, 0 }
  0x61   : > { %v7612_v19 = vsel %vm5094_vm13, 4294967295, %v7611_v19  ;;  %v1039_v9 = vmul.u32 18, %v1038_v37  ;;  %v5143_v8 = vmul.u32.u64.low 3817748708, %v5120_v41  ;;  %v5144_v44 = vmul.u32.u64.high 3817748708, %v5120_v41, %v5143_v8 }
  0x62   : > { %4136 = vmatmul.mubr.msk.bf16.gmra.mrb[32].mxu0 %vm377_vm1, %v4571_v21  ;;  %v4916_v21 = vmul.u32.u64.low 3817748708, %v4894_v10  ;;  %v4917_v22 = vmul.u32.u64.high 3817748708, %v4894_v10, %v4916_v21  ;;  %vm1270_vm1 = vcmp.ne.s32.totalorder %v4936_v28, 0  ;;  %v5151_v52 = vsub.s32 %v4920_v24, %v1028_v47 }
  0x63   : > { %vm5049_vm11 = vmand %vm1306_vm3, %vm1270_vm1  ;;  %vm1307_vm1 = vcmp.lt.s32.totalorder %v5071_v7, 0  ;;  %vm1274_vm3 = vcmp.ne.s32.totalorder %v5108_v32, 0  ;;  %v1017_v37 = vmul.u32 18, %v1016_v45  ;;  %v1050_v8 = vmul.u32 18, %v1049_v51 }
  0x64   : > { %v972_v48 = vshrl.u32 %v4917_v22, 4  ;;  %v7607_v0 = vsel %vm5049_vm11, 4294967295, %v7606_v0  ;;  %7614 = vst [vmem:[#allocation10_spill] sm:$0xff] %v5151_v52  ;;  %v1072_v24 = vmul.u32 18, %v1071_v58  ;;  %v5174_v47 = vsub.s32 %v4944_v30, %v1039_v9  ;;  %v4573_v30 = vld [vmem:[%s7538_s3 + $0x68] sm:$0xff]   ;;  %vm5204_vm7 = vmand %vm1307_vm1, %vm1271_vm14  ;;  %v4574_v22 = vld [vmem:[%s7538_s3 + $0x70] sm:$0xff]  }
  0x65   : > { %v1083_v51 = vmul.u32 18, %v1082_v54  ;;  %v5185_v58 = vadd.s32 184, %v4808_v23  ;;  %v5191_v9 = vadd.s32 18, %v5151_v52  ;;  %vm5220_vm6 = vmand %vm1310_vm5, %vm1274_vm3  ;;  %vm7629_vm1 = vcmp.ne.s32.totalorder %v5151_v52, 0  ;;  %v7698_v54 = vld [vmem:[#allocation11_spill] sm:$0xff] }
  0x66   : > { %v973_v33 = vmul.u32 18, %v972_v48  ;;  %v1006_v48 = vmul.u32 18, %v1005_v20  ;;  %v5147_v20 = vadd.s32 176, %v4808_v23  ;;  %v5210_v36 = vsub.s32 %v4984_v42, %v1072_v24 }
  0x67   : > { %7617 = vst [vmem:[#allocation13_spill] sm:$0xff] %v5191_v9  ;;  %v1060_v42 = vshrl.u32 %v5144_v44, 4  ;;  %v5244_v44 = vmul.u32.u64.low 3817748708, %v5185_v58  ;;  %v5245_v24 = vmul.u32.u64.high 3817748708, %v5185_v58, %v5244_v44  ;;  %v7631_v21 = vmov 0 }
  0x68   : > { %v5139_v56 = vsub.s32 %v4894_v10, %v973_v33  ;;  %v4572_v10 = vld [vmem:[%s7538_s3 + $0x60] sm:$0xff]   ;;  %v5161_v33 = vsub.s32 %v4928_v26, %v1006_v48  ;;  %v5177_v48 = vmul.u32.u64.low 3817748708, %v5147_v20  ;;  %v5178_v45 = vmul.u32.u64.high 3817748708, %v5147_v20, %v5177_v48 }
  0x69   : > { %4151 = vmatpush1.bf16.msra.mxu1 %v4572_v10  ;;  %2349 = vmatpush1.bf16.msra.mxu0 %v4572_v10  ;;  %v5195_v10 = vsub.s32 %v4967_v38, %v1017_v37  ;;  %v5198_v48 = vsub.s32 %v4970_v39, %v1050_v8  ;;  %v5213_v34 = vmul.u32.u64.low 3817748708, %v5168_v14  ;;  %v5214_v38 = vmul.u32.u64.high 3817748708, %v5168_v14, %v5213_v34 }
  0x6a   : > { %7616 = vst [vmem:[#allocation12_spill] sm:$0xff] %v5161_v33  ;;  %v5171_v26 = vadd.s32 18, %v5139_v56  ;;  %4140 = vmatprep.subr.bf16.mxu1 %v7548_v3  ;;  %2350 = vmatprep.subr.bf16.mxu0 %v7548_v3  ;;  %v5228_v37 = vadd.s32 168, %v4808_v23  ;;  %vm7624_vm10 = vcmp.ne.s32.totalorder %v5139_v56, 0  ;;  %vm7625_vm3 = vcmp.lt.s32.totalorder %v5139_v56, 0 }
  0x6b   : > { %7618 = vst [vmem:[#allocation14_spill] sm:$0xff] %v5195_v10  ;;  %7619 = vst [vmem:[#allocation15_spill] sm:$0xff] %v5198_v48  ;;  %v5241_v8 = vsub.s32 %v5011_v49, %v1083_v51  ;;  %v5262_v49 = vadd.s32 18, %v5161_v33  ;;  %vm1276_vm14 = vcmp.ne.s32.totalorder %v5195_v10, 0  ;;  %vm1312_vm13 = vcmp.lt.s32.totalorder %v5195_v10, 0  ;;  %v4581_v51 = vld [vmem:[%s7538_s3 + $0xa8] sm:$0xff]  }
  0x6c   : > { %vm5236_vm5 = vmand %vm7625_vm3, %vm7624_vm10  ;;  %vm7630_vm10 = vcmp.lt.s32.totalorder %v5151_v52, 0  ;;  %vm1279_vm12 = vcmp.ne.s32.totalorder %v5198_v48, 0  ;;  %vm7634_vm11 = vcmp.ne.s32.totalorder %v5161_v33, 0  ;;  %vm7635_vm9 = vcmp.lt.s32.totalorder %v5161_v33, 0 }
  0x6d   : > { %4152 = vmatpush1.bf16.msra.mxu1 %v4573_v30  ;;  %2351 = vmatpush1.bf16.msra.mxu0 %v4573_v30  ;;  %v5248_v30 = vadd.s32 208, %v4808_v23  ;;  %vm5257_vm3 = vmand %vm7630_vm10, %vm7629_vm1  ;;  %7633 = vst [vmem:[#allocation17_spill] sm:$0xff] %v5262_v49  ;;  %v5279_v44 = vadd.s32 192, %v4808_v23  ;;  %vm7641_vm10 = vcmp.lt.s32.totalorder %v5174_v47, 0  ;;  %v5359_v17 = vadd.s32 18, %v5198_v48 }
  0x6e   : > { %4141 = vmatprep.subr.bf16.mxu1 %v7548_v3  ;;  %2352 = vmatprep.subr.bf16.mxu0 %v7548_v3  ;;  %v7632_v21 = vsel %vm5257_vm3, 4294967295, %v7631_v21  ;;  %vm5271_vm8 = vmand %vm7635_vm9, %vm7634_vm11  ;;  %vm5286_vm9 = vcmp.lt.s32.totalorder %v1409_v15, 16  ;;  %vm7640_vm11 = vcmp.ne.s32.totalorder %v5174_v47, 0  ;;  %v1061_v3 = vmul.u32 18, %v1060_v42 }
  0x6f   : > { %7628 = vst [vmem:[#allocation16_spill] sm:$0xff] %v5248_v30  ;;  %vm5294_vm1 = vmand %vm7641_vm10, %vm7640_vm11  ;;  %v5300_v35 = vmul.u32.u64.low 3817748708, %v5228_v37  ;;  %v5301_v31 = vmul.u32.u64.high 3817748708, %v5228_v37, %v5300_v35  ;;  %vm1282_vm11 = vcmp.ne.s32.totalorder %v5241_v8, 0  ;;  %v7662_v7 = vmov 0 }
  0x70   : > { %vm5318_vm10 = vmand %vm1312_vm13, %vm1276_vm14  ;;  %v5325_v40 = vmul.u32.u64.low 3817748708, %v5248_v30  ;;  %v5326_v42 = vmul.u32.u64.high 3817748708, %v5248_v30, %v5325_v40  ;;  %v5348_v30 = vadd.s32 18, %v5195_v10  ;;  %vm7653_vm13 = vcmp.lt.s32.totalorder %v5198_v48, 0  ;;  %7656 = vst [vmem:[#allocation18_spill] sm:$0xff] %v5359_v17 }
  0x71   : > { %4153 = vmatpush1.bf16.msra.mxu1 %v4574_v22  ;;  %2353 = vmatpush1.bf16.msra.mxu0 %v4574_v22  ;;  %v1115_v22 = vshrl.u32 %v5178_v45, 4  ;;  %v7648_v45 = vmov 0  ;;  %v5345_v40 = vadd.s32 18, %v5174_v47  ;;  %vm5354_vm4 = vmand %vm7653_vm13, %vm1279_vm12  ;;  %vm5366_vm14 = vcmp.lt.s32.totalorder %v7657_v43, 16  ;;  %v5392_v43 = vld [vmem:[%s7537_s2] ss:$0 sm:$0xff] }
  0x72   : > { %4142 = vmatprep.subr.bf16.mxu1 %v7644_v57  ;;  %2354 = vmatprep.subr.bf16.mxu0 %v7644_v57  ;;  %v7649_v45 = vsel %vm5318_vm10, 4294967295, %v7648_v45  ;;  %v7655_v63 = vsel %vm5354_vm4, 4294967295, %v7654_v63  ;;  %vm7660_vm12 = vcmp.ne.s32.totalorder %v5210_v36, 0  ;;  %vm7661_vm13 = vcmp.lt.s32.totalorder %v5210_v36, 0 }
  0x73   : > { %vm5378_vm3 = vmand %vm7661_vm13, %vm7660_vm12  ;;  %v5383_v46 = vadd.s32 18, %v5210_v36  ;;  %v5386_v12 = vadd.s32 18, %v5241_v8  ;;  %v1093_v25 = vshrl.u32 %v5214_v38, 4  ;;  %vm7664_vm2 = vnez %v7632_v21 }
  0x74   : > { %v7663_v7 = vsel %vm5378_vm3, 4294967295, %v7662_v7  ;;  %vm7665_vm12 = vcmp.lt.s32.totalorder %v5241_v8, 0  ;;  %v7666_v38 = vmov 0  ;;  %v1116_v60 = vmul.u32 18, %v1115_v22 }
  0x75   : > { %4154 = vmatpush1.bf16.msra.mxu1 %v4575_v59  ;;  %2355 = vmatpush1.bf16.msra.mxu0 %v4575_v59  ;;  %vm5406_vm13 = vmand %vm7665_vm12, %vm1282_vm11  ;;  %v5411_v59 = vsub.s32 %v5120_v41, %v1061_v3  ;;  %v1126_v4 = vshrl.u32 %v5245_v24, 4  ;;  %v5421_v52 = vmul.u32.u64.low 3817748708, %v5279_v44  ;;  %v5422_v9 = vmul.u32.u64.high 3817748708, %v5279_v44, %v5421_v52  ;;  %v4576_v41 = vld [vmem:[%s7538_s3 + $0x80] sm:$0xff]  }
  0x76   : > { %v7667_v38 = vsel %vm5406_vm13, 4294967295, %v7666_v38  ;;  %4143 = vmatprep.subr.bf16.mxu1 %v7644_v57  ;;  %2356 = vmatprep.subr.bf16.mxu0 %v7644_v57  ;;  %v5440_v24 = vadd.s32 216, %v4808_v23  ;;  %v1094_v10 = vmul.u32 18, %v1093_v25  ;;  %vm7668_vm11 = vnez %v7603_v50 }
  0x77   : > { %v5468_v25 = vsub.s32 %v5147_v20, %v1116_v60  ;;  %v1159_v60 = vshrl.u32 %v5326_v42, 4  ;;  %vm7676_vm4 = vnez %v7607_v0  ;;  %vm7680_vm3 = vnez %v7609_v6 }
  0x78   : > { %v7681_v0 = vsel %vm7680_vm3, %v5057_v2, %v4941_v29  ;;  %v5530_v29 = vadd.s32 18, %v5411_v59  ;;  %v1137_v15 = vshrl.u32 %v5422_v9, 4  ;;  %v7703_v39 = vsel %vm5236_vm5, %v5171_v26, %v5139_v56 }
  0x79   : > { %4155 = vmatpush1.bf16.msra.mxu1 %v4576_v41  ;;  %2357 = vmatpush1.bf16.msra.mxu0 %v4576_v41  ;;  %vm5515_vm10 = vcmp.lt.s32.totalorder %v7681_v0, 16  ;;  %v5550_v35 = vadd.s32 18, %v5468_v25  ;;  %vm7711_vm5 = vcmask 523264  }
  0x7a   : > { %4144 = vmatprep.subr.bf16.mxu1 %v7644_v57  ;;  %2358 = vmatprep.subr.bf16.mxu0 %v7644_v57 }
  0xf5   : > { %v4105_v3 = vpop.f32.mrb[0].mxu0 }
  0xf6   : > { %v5443_v33 = vadd.f32 %v4105_v3, %v5392_v43  ;;  %v470_v49 = vpop.f32.mrb[1].mxu0  ;;  %v7669_v3 = vsel %vm7668_vm11, %v4933_v27, %v4903_v13  ;;  %vm7672_vm11 = vnez %v7605_v55  ;;  %v7732_v55 = vld [vmem:[#allocation12_spill] sm:$0xff] }
  0xf7   : > { %v5454_v52 = vadd.f32 %v5392_v43, %v470_v49  ;;  %v4106_v48 = vpop.f32.mrb[2].mxu0  ;;  %vm5461_vm12 = vcmp.lt.s32.totalorder %v7669_v3, 16  ;;  %v1104_v49 = vshrl.u32 %v5301_v31, 4  ;;  %v7673_v41 = vsel %vm7672_vm11, %v5043_v62, %v4913_v18  ;;  %v4577_v3 = vld [vmem:[%s7538_s3 + $0x88] sm:$0xff]  }
  0xf8   : > { %v796_v50 = vmax.f32 %v5443_v33, 0.0  ;;  %v5475_v13 = vadd.f32 %v4106_v48, %v5392_v43  ;;  %v473_v27 = vpop.f32.mrb[3].mxu0  ;;  %vm5482_vm13 = vcmp.lt.s32.totalorder %v7673_v41, 16  ;;  %v1127_v31 = vmul.u32 18, %v1126_v4  ;;  %4156 = vmatpush1.bf16.msra.mxu1 %v4577_v3  ;;  %2359 = vmatpush1.bf16.msra.mxu0 %v4577_v3 }
  0xf9   : > { %v794_v48 = vmax.f32 %v5454_v52, 0.0  ;;  %v5492_v32 = vadd.f32 %v5392_v43, %v473_v27  ;;  %v7677_v18 = vsel %vm7676_vm4, %v5054_v1, %v4936_v28  ;;  %v5520_v1 = vsub.s32 %v5168_v14, %v1094_v10  ;;  %4145 = vmatprep.subr.bf16.mxu1 %v7644_v57  ;;  %2360 = vmatprep.subr.bf16.mxu0 %v7644_v57 }
  0xfa   : > { %vm5499_vm11 = vcmp.lt.s32.totalorder %v7677_v18, 16  ;;  %v5504_v62 = vmul.u32.u64.low 3817748708, %v5440_v24  ;;  %v5505_v42 = vmul.u32.u64.high 3817748708, %v5440_v24, %v5504_v62  ;;  %v1481_v4 = vsel %vm5286_vm9, %v796_v50, 0.0 }
  0xfb   : > { %v797_v41 = vmax.f32 %v5475_v13, 0.0  ;;  %v5523_v27 = vadd.s32 200, %v4808_v23  ;;  %vm7684_vm9 = vcmask 523264   ;;  %v1479_v6 = vsel %vm5310_vm15, %v794_v48, 0.0 }
  0xfc   : > { %1520 = vst.msk [vmem:[#allocation2 + $0x28] sm:$0xff] %vm7684_vm9, %v1481_v4  ;;  %v795_v61 = vmax.f32 %v5492_v32, 0.0  ;;  %v1105_v2 = vmul.u32 18, %v1104_v49  ;;  %vm7685_vm3 = vmmov %vm7684_vm9  ;;  %vm1285_vm4 = vcmp.ne.s32.totalorder %v5468_v25, 0  ;;  %v5539_v10 = vsub.s32 %v5185_v58, %v1127_v31  ;;  %v4578_v49 = vld [vmem:[%s7538_s3 + $0x90] sm:$0xff]  }
  0xfd   : > { %1518 = vst.msk [vmem:[#allocation2 + $0x18] sm:$0xff] %vm7685_vm3, %v1479_v6  ;;  %v1482_v14 = vsel %vm5336_vm0, %v797_v41, 0.0  ;;  %vm7686_vm15 = vmmov %vm7685_vm3  ;;  %v4109_v3 = vpop.f32.mrb[4].mxu0  ;;  %v1160_v48 = vmul.u32 18, %v1159_v60  ;;  %v5558_v31 = vmul.u32.u64.low 3817748708, %v5523_v27  ;;  %v5559_v18 = vmul.u32.u64.high 3817748708, %v5523_v27, %v5558_v31  ;;  %4157 = vmatpush1.bf16.msra.mxu1 %v4578_v49  ;;  %2361 = vmatpush1.bf16.msra.mxu0 %v4578_v49 }
  0xfe   : > { %1521 = vst.msk [vmem:[#allocation2 + $0x30] sm:$0xff] %vm7686_vm15, %v1482_v14  ;;  %v1480_v50 = vsel %vm5366_vm14, %v795_v61, 0.0  ;;  %vm7687_vm0 = vmmov %vm7685_vm3  ;;  %v5554_v58 = vadd.f32 %v4109_v3, %v5392_v43  ;;  %v486_v9 = vpop.f32.mrb[5].mxu0  ;;  %vm7688_vm14 = vnez %v7612_v19  ;;  %v7689_v60 = vld [vmem:[#allocation7_spill] sm:$0xff]  ;;  %v5575_v0 = vadd.s32 18, %v5520_v1  ;;  %4146 = vmatprep.subr.bf16.mxu1 %v7644_v57  ;;  %2362 = vmatprep.subr.bf16.mxu0 %v7644_v57  ;;  %v7694_v14 = vld [vmem:[#allocation8_spill] sm:$0xff] }
  0xff   : > { %1519 = vst.msk [vmem:[#allocation2 + $0x20] sm:$0xff] %vm7687_vm0, %v1480_v50  ;;  %v5562_v11 = vadd.f32 %v5392_v43, %v486_v9  ;;  %v4110_v62 = vpop.f32.mrb[6].mxu0  ;;  %v7690_v4 = vsel %vm7688_vm14, %v5060_v5, %v7689_v60  ;;  %v5578_v6 = vsub.s32 %v5228_v37, %v1105_v2  ;;  %v7695_v49 = vsel %vm5204_vm7, %v5135_v53, %v7694_v14  ;;  %v4579_v2 = vld [vmem:[%s7538_s3 + $0x98] sm:$0xff]   ;;  %v7699_v53 = vld [vmem:[#allocation9_spill] sm:$0xff] }
 0x100   : > { %vm5569_vm15 = vcmp.lt.s32.totalorder %v7690_v4, 16  ;;  %v800_v19 = vmax.f32 %v5554_v58, 0.0  ;;  %v5584_v5 = vadd.f32 %v4110_v62, %v5392_v43  ;;  %v489_v61 = vpop.f32.mrb[7].mxu0  ;;  %vm5591_vm14 = vcmp.lt.s32.totalorder %v7695_v49, 16 }
 0x101   : > { %v1138_v37 = vmul.u32 18, %v1137_v15  ;;  %v798_v3 = vmax.f32 %v5562_v11, 0.0  ;;  %v5601_v9 = vadd.f32 %v5392_v43, %v489_v61  ;;  %v7700_v31 = vsel %vm5220_vm6, %v7698_v54, %v7699_v53  ;;  %4158 = vmatpush1.bf16.msra.mxu1 %v4579_v2  ;;  %2363 = vmatpush1.bf16.msra.mxu0 %v4579_v2 }
 0x102   : > { %7693 = vst [vmem:[#allocation7_spill] sm:$0xff] %v5584_v5  ;;  %vm5608_vm7 = vcmp.lt.s32.totalorder %v7700_v31, 16  ;;  %v5614_v15 = vadd.s32 240, %v4808_v23  ;;  %v1485_v60 = vsel %vm5461_vm12, %v800_v19, 0.0  ;;  %v801_v4 = vmax.f32 %v5584_v5, 0.0  ;;  %v7710_v19 = vld [vmem:[#allocation16_spill] sm:$0xff]  ;;  %4147 = vmatprep.subr.bf16.mxu1 %v7644_v57  ;;  %2364 = vmatprep.subr.bf16.mxu0 %v7644_v57 }
 0x103   : > { %vm5624_vm6 = vcmp.lt.s32.totalorder %v7703_v39, 16  ;;  %vm7706_vm3 = vcmp.ne.s32.totalorder %v5411_v59, 0  ;;  %vm7707_vm0 = vcmp.lt.s32.totalorder %v5411_v59, 0  ;;  %v5637_v17 = vadd.s32 18, %v5539_v10  ;;  %1524 = vst.msk [vmem:[#allocation2 + $0x48] sm:$0xff] %vm7711_vm5, %v1485_v60 }
 0x104   : > { %vm5632_vm9 = vmand %vm7707_vm0, %vm7706_vm3  ;;  %v5640_v34 = vsub.s32 %v7710_v19, %v1160_v48  ;;  %v1483_v56 = vsel %vm5482_vm13, %v798_v3, 0.0  ;;  %v799_v26 = vmax.f32 %v5601_v9, 0.0  ;;  %v1170_v49 = vshrl.u32 %v5505_v42, 4  ;;  %v4580_v19 = vld [vmem:[%s7538_s3 + $0xa0] sm:$0xff]  }
 0x105   : > { %vm7712_vm3 = vmmov %vm7711_vm5  ;;  %v1486_v48 = vsel %vm5499_vm11, %v801_v4, 0.0  ;;  %v5655_v20 = vadd.s32 18, %v5578_v6  ;;  %v5658_v2 = vsub.s32 %v5279_v44, %v1138_v37  ;;  %v4113_v3 = vpop.f32.mrb[8].mxu0  ;;  %v5685_v39 = vadd.s32 224, %v4808_v23  ;;  %4159 = vmatpush1.bf16.msra.mxu1 %v4580_v19  ;;  %2365 = vmatpush1.bf16.msra.mxu0 %v4580_v19 }
 0x106   : > { %1522 = vst.msk [vmem:[#allocation2 + $0x38] sm:$0xff] %vm7712_vm3, %v1483_v56  ;;  %vm7713_vm13 = vmmov %vm7712_vm3  ;;  %v1484_v42 = vsel %vm5515_vm10, %v799_v26, 0.0  ;;  %v1945_v54 = vld [vmem:[#allocation2 + $0x19] sm:$0xff]  ;;  %v1946_v53 = vld [vmem:[#allocation2 + $0x21] sm:$0xff]  ;;  %v5668_v31 = vmul.u32.u64.low 3817748708, %v5614_v15  ;;  %v5669_v60 = vmul.u32.u64.high 3817748708, %v5614_v15, %v5668_v31  ;;  %v5673_v44 = vadd.f32 %v4113_v3, %v5392_v43  ;;  %4148 = vmatprep.subr.bf16.mxu1 %v7644_v57  ;;  %2366 = vmatprep.subr.bf16.mxu0 %v7644_v57 }
 0x107   : > { %1525 = vst.msk [vmem:[#allocation2 + $0x50] sm:$0xff] %vm7713_vm13, %v1486_v48  ;;  %vm7714_vm11 = vmmov %vm7712_vm3  ;;  %v502_v37 = vpop.f32.mrb[9].mxu0  ;;  %v2162_v28 = vpack.c.bf16 %v1946_v53, %v1945_v54  ;;  %vm7716_vm10 = vcmp.lt.s32.totalorder %v5468_v25, 0  ;;  %v7720_v48 = vld [vmem:[#allocation13_spill] sm:$0xff]  ;;  %vm7725_vm13 = vcmp.ne.s32.totalorder %v5520_v1, 0  ;;  %v5712_v31 = vadd.s32 18, %v5640_v34 }
 0x108   : > { %1523 = vst.msk [vmem:[#allocation2 + $0x40] sm:$0xff] %vm7714_vm11, %v1484_v42  ;;  %7715 = vst [vmem:[#allocation8_spill] sm:$0xff] %v5673_v44  ;;  %v5691_v56 = vadd.f32 %v5392_v43, %v502_v37  ;;  %v4114_v26 = vpop.f32.mrb[10].mxu0  ;;  %v7721_v42 = vld [vmem:[#allocation10_spill] sm:$0xff]  ;;  %vm7726_vm11 = vcmp.lt.s32.totalorder %v5520_v1, 0  ;;  %v1148_v21 = vshrl.u32 %v5559_v18, 4 }
 0x109   : > { %vm5679_vm5 = vmand %vm7716_vm10, %vm1285_vm4  ;;  %v7722_v3 = vsel %vm7664_vm2, %v7720_v48, %v7721_v42  ;;  %v804_v37 = vmax.f32 %v5673_v44, 0.0  ;;  %v5717_v48 = vadd.f32 %v4114_v26, %v5392_v43  ;;  %v505_v42 = vpop.f32.mrb[11].mxu0  ;;  %v7741_v26 = vmov 0  ;;  %4160 = vmatpush1.bf16.msra.mxu1 %v4581_v51  ;;  %2367 = vmatpush1.bf16.msra.mxu0 %v4581_v51  ;;  %v4582_v51 = vld [vmem:[%s7538_s3 + $0xb0] sm:$0xff]  }
 0x10a   : > { %7719 = vst [vmem:[#allocation11_spill] sm:$0xff] %v5691_v56  ;;  %vm5698_vm4 = vcmp.lt.s32.totalorder %v7722_v3, 16  ;;  %vm5706_vm10 = vmand %vm7726_vm11, %vm7725_vm13  ;;  %v7731_v3 = vld [vmem:[#allocation17_spill] sm:$0xff]  ;;  %vm7736_vm11 = vcmp.ne.s32.totalorder %v5539_v10, 0  ;;  %v1171_v44 = vmul.u32 18, %v1170_v49  ;;  %vm7753_vm12 = vcmp.lt.s32.totalorder %v5640_v34, 0  ;;  %4149 = vmatprep.subr.bf16.mxu1 %v7644_v57  ;;  %2368 = vmatprep.subr.bf16.mxu0 %v7644_v57 }
 0x10b   : > { %7729 = vst [vmem:[#allocation9_spill] sm:$0xff] %v5717_v48  ;;  %vm7730_vm2 = vmmov %vm7712_vm3  ;;  %v7733_v22 = vsel %vm5271_vm8, %v7731_v3, %v7732_v55  ;;  %vm7737_vm3 = vcmp.lt.s32.totalorder %v5539_v10, 0  ;;  %v5744_v55 = vadd.f32 %v5392_v43, %v505_v42  ;;  %v5764_v42 = vadd.s32 18, %v5658_v2 }
 0x10c   : > { %3925 = vmatprep.mubr.msk.bf16.mxu0 %vm7730_vm2, %v2162_v28  ;;  %vm5725_vm13 = vcmp.lt.s32.totalorder %v7733_v22, 16  ;;  %vm5733_vm0 = vmand %vm7737_vm3, %vm7736_vm11  ;;  %v802_v22 = vmax.f32 %v5691_v56, 0.0  ;;  %v7740_v28 = vsel %vm5294_vm1, %v5345_v40, %v5174_v47  ;;  %vm7743_vm3 = vcmp.ne.s32.totalorder %v5578_v6, 0  ;;  %v7748_v40 = vld [vmem:[#allocation14_spill] sm:$0xff] }
 0x10d   : > { %vm5751_vm8 = vcmp.lt.s32.totalorder %v7740_v28, 16  ;;  %vm7744_vm11 = vcmp.lt.s32.totalorder %v5578_v6, 0  ;;  %v1489_v16 = vsel %vm5569_vm15, %v804_v37, 0.0  ;;  %v805_v47 = vmax.f32 %v5717_v48, 0.0  ;;  %4161 = vmatpush1.bf16.msra.mxu1 %v4582_v51  ;;  %2369 = vmatpush1.bf16.msra.mxu0 %v4582_v51 }
 0x10e   : > { %v7742_v26 = vsel %vm5751_vm8, 4294967295, %v7741_v26  ;;  %vm5759_vm2 = vmand %vm7744_vm11, %vm7743_vm3  ;;  %vm7747_vm1 = vnez %v7649_v45  ;;  %v7750_v56 = vmov 0  ;;  %vm7752_vm11 = vcmp.ne.s32.totalorder %v5640_v34, 0  ;;  %4150 = vmatprep.subr.bf16.mxu1 %v7644_v57  ;;  %2370 = vmatprep.subr.bf16.mxu0 %v7644_v57 }
 0x10f   : > { %v7749_v28 = vsel %vm7747_vm1, %v5348_v30, %v7748_v40  ;;  %vm5783_vm8 = vmand %vm7753_vm12, %vm7752_vm11  ;;  %v5788_v41 = vmul.u32.u64.low 3817748708, %v5685_v39  ;;  %v5789_v19 = vmul.u32.u64.high 3817748708, %v5685_v39, %v5788_v41  ;;  %vm7756_vm15 = vcmask 523264  }
 0x110   : > { %vm5775_vm3 = vcmp.lt.s32.totalorder %v7749_v28, 16  ;;  %1528 = vst.msk [vmem:[#allocation2 + $0x68] sm:$0xff] %vm7756_vm15, %v1489_v16  ;;  %v1487_v30 = vsel %vm5591_vm14, %v802_v22, 0.0  ;;  %v803_v45 = vmax.f32 %v5744_v55, 0.0  ;;  %vm7757_vm1 = vcmp.ne.s32.totalorder %v5658_v2, 0 }
 0x111   : > { %v7751_v56 = vsel %vm5775_vm3, 4294967295, %v7750_v56  ;;  %vm7758_vm12 = vcmp.lt.s32.totalorder %v5658_v2, 0  ;;  %v7759_v37 = vmov 0  ;;  %v1149_v40 = vmul.u32 18, %v1148_v21  ;;  %vm7761_vm3 = vmmov %vm7756_vm15 }
 0x112   : > { %vm5800_vm11 = vmand %vm7758_vm12, %vm7757_vm1  ;;  %v5805_v28 = vadd.s32 248, %v4808_v23  ;;  %1526 = vst.msk [vmem:[#allocation2 + $0x58] sm:$0xff] %vm7761_vm3, %v1487_v30  ;;  %v1490_v50 = vsel %vm5608_vm7, %v805_v47, 0.0  ;;  %v5819_v21 = vadd.s32 232, %v4808_v23  ;;  %v1488_v62 = vsel %vm5624_vm6, %v803_v45, 0.0  ;;  %v4117_v47 = vpop.f32.mrb[12].mxu0 }
 0x113   : > { %v7760_v37 = vsel %vm5800_vm11, 4294967295, %v7759_v37  ;;  %vm7762_vm14 = vmmov %vm7761_vm3  ;;  %v5833_v16 = vsub.s32 %v5440_v24, %v1171_v44  ;;  %v5838_v61 = vadd.f32 %v4117_v47, %v5392_v43  ;;  %v518_v45 = vpop.f32.mrb[13].mxu0  ;;  %v1203_v44 = vshrl.u32 %v5669_v60, 4 }
 0x114   : > { %1529 = vst.msk [vmem:[#allocation2 + $0x70] sm:$0xff] %vm7762_vm14, %v1490_v50  ;;  %vm7763_vm7 = vmmov %vm7761_vm3  ;;  %v4118_v47 = vpop.f32.mrb[14].mxu0  ;;  %vm7764_vm6 = vnez %v7663_v7  ;;  %v5866_v60 = vsub.s32 %v5523_v27, %v1149_v40  ;;  %v5869_v24 = vmul.u32.u64.low 3817748708, %v5805_v28  ;;  %v5870_v41 = vmul.u32.u64.high 3817748708, %v5805_v28, %v5869_v24 }
 0x115   : > { %1527 = vst.msk [vmem:[#allocation2 + $0x60] sm:$0xff] %vm7763_vm7, %v1488_v62  ;;  %v5854_v62 = vadd.f32 %v5392_v43, %v518_v45  ;;  %v7765_v50 = vsel %vm7764_vm6, %v5383_v46, %v5210_v36  ;;  %v808_v45 = vmax.f32 %v5838_v61, 0.0  ;;  %v5874_v22 = vadd.f32 %v4118_v47, %v5392_v43  ;;  %v521_v7 = vpop.f32.mrb[15].mxu0  ;;  %v7769_v36 = vld [vmem:[#allocation18_spill] sm:$0xff]  ;;  %v7770_v46 = vld [vmem:[#allocation15_spill] sm:$0xff] }
 0x116   : > { %vm5861_vm3 = vcmp.lt.s32.totalorder %v7765_v50, 16  ;;  %vm7768_vm15 = vnez %v7655_v63  ;;  %v5886_v27 = vmul.u32.u64.low 3817748708, %v5819_v21  ;;  %v5887_v40 = vmul.u32.u64.high 3817748708, %v5819_v21, %v5886_v27 }
 0x117   : > { %v7771_v50 = vsel %vm7768_vm15, %v7769_v36, %v7770_v46  ;;  %v806_v24 = vmax.f32 %v5854_v62, 0.0  ;;  %v5891_v47 = vadd.f32 %v5392_v43, %v521_v7  ;;  %vm7774_vm12 = vnez %v7667_v38  ;;  %vm7781_vm15 = vmmov %vm7763_vm7 }
 0x118   : > { %vm5881_vm1 = vcmp.lt.s32.totalorder %v7771_v50, 16  ;;  %v7775_v63 = vsel %vm7774_vm12, %v5386_v12, %v5241_v8  ;;  %v5904_v46 = vadd.s32 272, %v4808_v23  ;;  %v1493_v7 = vsel %vm5698_vm4, %v808_v45, 0.0 }
 0x119   : > { %vm5898_vm14 = vcmp.lt.s32.totalorder %v7775_v63, 16  ;;  %v809_v38 = vmax.f32 %v5874_v22, 0.0  ;;  %v7778_v8 = vsel %vm5632_vm9, %v5530_v29, %v5411_v59  ;;  %v1204_v50 = vmul.u32 18, %v1203_v44  ;;  %1532 = vst.msk [vmem:[#allocation2 + $0x88] sm:$0xff] %vm7781_vm15, %v1493_v7  ;;  %vm7782_vm9 = vmmov %vm7763_vm7 }
 0x11a   : > { %vm5915_vm6 = vcmp.lt.s32.totalorder %v7778_v8, 16  ;;  %v1181_v27 = vshrl.u32 %v5789_v19, 4  ;;  %v1491_v54 = vsel %vm5725_vm13, %v806_v24, 0.0  ;;  %v807_v51 = vmax.f32 %v5891_v47, 0.0  ;;  %vm7784_vm13 = vmmov %vm7782_vm9  ;;  %v4121_v19 = vpop.f32.mrb[16].mxu0  ;;  %v4583_v8 = vld [vmem:[%s7538_s3 + $0xb8] sm:$0xff]  }
 0x11b   : > { %vm1326_vm4 = vcmp.lt.s32.totalorder %v5833_v16, 0  ;;  %v5927_v59 = vadd.s32 256, %v4808_v23  ;;  %1530 = vst.msk [vmem:[#allocation2 + $0x78] sm:$0xff] %vm7782_vm9, %v1491_v54  ;;  %vm7783_vm12 = vnez %v7742_v26  ;;  %v5933_v14 = vadd.s32 18, %v5833_v16  ;;  %v534_v63 = vpop.f32.mrb[17].mxu0  ;;  %4162 = vmatpush1.bf16.msra.mxu1 %v4583_v8  ;;  %2371 = vmatpush1.bf16.msra.mxu0 %v4583_v8 }
 0x11c   : > { %v1494_v29 = vsel %vm7783_vm12, %v809_v38, 0.0  ;;  %vm1288_vm15 = vcmp.ne.s32.totalorder %v5866_v60, 0  ;;  %vm1324_vm7 = vcmp.lt.s32.totalorder %v5866_v60, 0  ;;  %vm7785_vm11 = vnez %v7751_v56  ;;  %3303 = vmatprep.subr.bf16.mxu1 %v7644_v57  ;;  %2651 = vmatprep.subr.bf16.mxu0 %v7644_v57 }
 0x11d   : > { %1533 = vst.msk [vmem:[#allocation2 + $0x90] sm:$0xff] %vm7784_vm13, %v1494_v29  ;;  %v1492_v5 = vsel %vm7785_vm11, %v807_v51, 0.0  ;;  %v5941_v44 = vmul.u32.u64.low 3817748708, %v5904_v46  ;;  %v5942_v45 = vmul.u32.u64.high 3817748708, %v5904_v46, %v5941_v44  ;;  %v5945_v26 = vadd.s32 280, %v4808_v23  ;;  %v4122_v51 = vpop.f32.mrb[18].mxu0 }
 0x11e   : > { %1531 = vst.msk [vmem:[#allocation2 + $0x80] sm:$0xff] %vm7782_vm9, %v1492_v5  ;;  %v5949_v24 = vadd.f32 %v4121_v19, %v5392_v43  ;;  %v5952_v7 = vadd.s32 18, %v5866_v60  ;;  %v5955_v56 = vsub.s32 %v5614_v15, %v1204_v50  ;;  %v1182_v38 = vmul.u32 18, %v1181_v27 }
 0x11f   : > { %v5961_v54 = vadd.f32 %v5392_v43, %v534_v63  ;;  %v7786_v29 = vsel %vm5679_vm5, %v5550_v35, %v5468_v25  ;;  %v1214_v15 = vshrl.u32 %v5870_v41, 4  ;;  %v5979_v44 = vadd.f32 %v4122_v51, %v5392_v43  ;;  %v537_v63 = vpop.f32.mrb[19].mxu0 }
 0x120   : > { %vm5968_vm11 = vcmp.lt.s32.totalorder %v7786_v29, 16  ;;  %v5974_v50 = vmul.u32.u64.low 3817748708, %v5927_v59  ;;  %v5975_v27 = vmul.u32.u64.high 3817748708, %v5927_v59, %v5974_v50  ;;  %v812_v19 = vmax.f32 %v5949_v24, 0.0 }
 0x121   : > { %v7789_v25 = vsel %vm5706_vm10, %v5575_v0, %v5520_v1  ;;  %v1192_v4 = vshrl.u32 %v5887_v40, 4  ;;  %v5992_v41 = vadd.s32 264, %v4808_v23  ;;  %v810_v51 = vmax.f32 %v5961_v54, 0.0 }
 0x122   : > { %vm5986_vm5 = vcmp.lt.s32.totalorder %v7789_v25, 16  ;;  %v5996_v29 = vadd.f32 %v5392_v43, %v537_v63  ;;  %v7792_v1 = vsel %vm5733_vm0, %v5637_v17, %v5539_v10  ;;  %vm7795_vm12 = vcmp.ne.s32.totalorder %v5833_v16, 0  ;;  %v1921_v63 = vld [vmem:[#allocation2 + $0x78] sm:$0xff] }
 0x123   : > { %vm6003_vm10 = vcmp.lt.s32.totalorder %v7792_v1, 16  ;;  %vm6011_vm13 = vmand %vm1326_vm4, %vm7795_vm12  ;;  %v6016_v53 = vmul.u32.u64.low 3817748708, %v5945_v26  ;;  %v6017_v40 = vmul.u32.u64.high 3817748708, %v5945_v26, %v6016_v53  ;;  %v1497_v10 = vsel %vm5861_vm3, %v812_v19, 0.0 }
 0x124   : > { %v813_v17 = vmax.f32 %v5979_v44, 0.0  ;;  %v7798_v18 = vsel %vm5759_vm2, %v5655_v20, %v5578_v6  ;;  %vm6037_vm4 = vmand %vm1324_vm7, %vm1288_vm15  ;;  %vm1293_vm3 = vcmp.ne.s32.totalorder %v5955_v56, 0  ;;  %vm1329_vm9 = vcmp.lt.s32.totalorder %v5955_v56, 0  ;;  %v1924_v23 = vld [vmem:[#allocation2 + $0x90] sm:$0xff] }
 0x125   : > { %vm6029_vm0 = vcmp.lt.s32.totalorder %v7798_v18, 16  ;;  %vm7803_vm12 = vcmask 523264   ;;  %v1495_v6 = vsel %vm5881_vm1, %v810_v51, 0.0  ;;  %v811_v20 = vmax.f32 %v5996_v29, 0.0  ;;  %v4125_v51 = vpop.f32.mrb[20].mxu0 }
 0x126   : > { %1536 = vst.msk [vmem:[#allocation2 + $0xa8] sm:$0xff] %vm7803_vm12, %v1497_v10  ;;  %v6048_v3 = vsub.s32 %v5685_v39, %v1182_v38  ;;  %v1215_v30 = vmul.u32 18, %v1214_v15  ;;  %vm7804_vm2 = vmmov %vm7803_vm12  ;;  %v1498_v19 = vsel %vm5898_vm14, %v813_v17, 0.0  ;;  %v1193_v25 = vmul.u32 18, %v1192_v4  ;;  %v1957_v39 = vld [vmem:[#allocation2 + $0x79] sm:$0xff]  ;;  %v1958_v38 = vld [vmem:[#allocation2 + $0x81] sm:$0xff] }
 0x127   : > { %1534 = vst.msk [vmem:[#allocation2 + $0x98] sm:$0xff] %vm7804_vm2, %v1495_v6  ;;  %v6054_v1 = vmul.u32.u64.low 3817748708, %v5992_v41  ;;  %v6055_v53 = vmul.u32.u64.high 3817748708, %v5992_v41, %v6054_v1  ;;  %vm7805_vm7 = vmmov %vm7804_vm2  ;;  %v1496_v48 = vsel %vm5915_vm6, %v811_v20, 0.0  ;;  %v1922_v15 = vld [vmem:[#allocation2 + $0x80] sm:$0xff]  ;;  %v1434_v36 = vsel %vm6011_vm13, %v5933_v14, %v5833_v16  ;;  %v550_v17 = vpop.f32.mrb[21].mxu0 }
 0x128   : > { %1537 = vst.msk [vmem:[#allocation2 + $0xb0] sm:$0xff] %vm7805_vm7, %v1498_v19  ;;  %v1432_v4 = vsel %vm6037_vm4, %v5952_v7, %v5866_v60  ;;  %v1247_v10 = vshrl.u32 %v5942_v45, 4  ;;  %vm7806_vm1 = vmmov %vm7804_vm2  ;;  %v6071_v12 = vadd.f32 %v4125_v51, %v5392_v43  ;;  %v2174_v18 = vpack.c.bf16 %v1958_v38, %v1957_v39  ;;  %v4126_v14 = vpop.f32.mrb[22].mxu0 }
 0x129   : > { %1535 = vst.msk [vmem:[#allocation2 + $0xa0] sm:$0xff] %vm7806_vm1, %v1496_v48  ;;  %v4281_v6 = vpack.i.bf16 %v1922_v15, %v1921_v63  ;;  %v6074_v20 = vadd.s32 18, %v5955_v56  ;;  %v6077_v16 = vadd.f32 %v5392_v43, %v550_v17  ;;  %v7807_v60 = vsel %vm5783_vm8, %v5712_v31, %v5640_v34  ;;  %v553_v49 = vpop.f32.mrb[23].mxu0  ;;  %vm7810_vm13 = vmmov %vm7806_vm1  ;;  %v1923_v48 = vld [vmem:[#allocation2 + $0x88] sm:$0xff] }
 0x12a   : > { %vm6084_vm14 = vcmp.lt.s32.totalorder %v7807_v60, 16  ;;  %vm1291_vm6 = vcmp.ne.s32.totalorder %v6048_v3, 0  ;;  %vm1327_vm15 = vcmp.lt.s32.totalorder %v6048_v3, 0  ;;  %v6091_v7 = vsub.s32 %v5805_v28, %v1215_v30  ;;  %3931 = vmatprep.mubr.msk.bf16.mxu1 %vm7810_vm13, %v2174_v18  ;;  %vm6132_vm7 = vmand %vm1329_vm9, %vm1293_vm3  ;;  %v4129_v17 = vpop.f32.mrb[24].mxu0 }
 0x12b   : > { %v816_v50 = vmax.f32 %v6071_v12, 0.0  ;;  %v6095_v19 = vadd.f32 %v4126_v14, %v5392_v43  ;;  %4282 = vrot.lane.b32.xlu0 %v4281_v6, %s4674_s10  ;;  %vm7811_vm8 = vnez %v7760_v37  ;;  %v1399_v28 = vadd.s32 18, %v6048_v3  ;;  %vm7823_vm13 = vmmov %vm7806_vm1  ;;  %v566_v60 = vpop.f32.mrb[25].mxu0 }
 0x12c   : > { %v7812_v34 = vsel %vm7811_vm8, %v5764_v42, %v5658_v2  ;;  %v6110_v30 = vsub.s32 %v5819_v21, %v1193_v25  ;;  %v814_v63 = vmax.f32 %v6077_v16, 0.0  ;;  %v6114_v1 = vadd.f32 %v5392_v43, %v553_v49 }
 0x12d   : > { %vm6104_vm4 = vcmp.lt.s32.totalorder %v7812_v34, 16  ;;  %vm6116_vm12 = vcmp.lt.s32.totalorder %v1434_v36, 16  ;;  %v1248_v2 = vmul.u32 18, %v1247_v10  ;;  %v1225_v42 = vshrl.u32 %v5975_v27, 4  ;;  %v1927_v6 = vld [vmem:[#allocation2 + $0xa8] sm:$0xff] }
 0x12e   : > { %v1501_v51 = vsel %vm5968_vm11, %v816_v50, 0.0  ;;  %v817_v39 = vmax.f32 %v6095_v19, 0.0  ;;  %v4286_v21 = vpack.i.bf16 %v1924_v23, %v1923_v48  ;;  %vm6124_vm2 = vcmp.lt.s32.totalorder %v1432_v4, 16  ;;  %v1925_v36 = vld [vmem:[#allocation2 + $0x98] sm:$0xff]  ;;  %vm6145_vm11 = vmand %vm1327_vm15, %vm1291_vm6 }
 0x12f   : > { %v1258_v27 = vshrl.u32 %v6017_v40, 4  ;;  %1540 = vst.msk [vmem:[#allocation2 + $0xc8] sm:$0xff] %vm7806_vm1, %v1501_v51  ;;  %v1499_v5 = vsel %vm5986_vm5, %v814_v63, 0.0  ;;  %v815_v15 = vmax.f32 %v6114_v1, 0.0  ;;  %vm1294_vm3 = vcmp.ne.s32.totalorder %v6091_v7, 0  ;;  %vm7824_vm15 = vmmov %vm7806_vm1  ;;  %v1928_v14 = vld [vmem:[#allocation2 + $0xb0] sm:$0xff] }
 0x130   : > { %vm1330_vm9 = vcmp.lt.s32.totalorder %v6091_v7, 0  ;;  %1538 = vst.msk [vmem:[#allocation2 + $0xb8] sm:$0xff] %vm7823_vm13, %v1499_v5  ;;  %v1502_v35 = vsel %vm6003_vm10, %v817_v39, 0.0  ;;  %4287 = vrot.lane.b32.xlu0 %v4286_v21, %s4674_s10  ;;  %v1402_v40 = vadd.s32 18, %v6091_v7  ;;  %vm1292_vm5 = vcmp.ne.s32.totalorder %v6110_v30, 0  ;;  %v1926_v18 = vld [vmem:[#allocation2 + $0xa0] sm:$0xff]  ;;  %vm7825_vm10 = vmmov %vm7806_vm1 }
 0x131   : > { %vm1328_vm6 = vcmp.lt.s32.totalorder %v6110_v30, 0  ;;  %1541 = vst.msk [vmem:[#allocation2 + $0xd0] sm:$0xff] %vm7824_vm15, %v1502_v35  ;;  %v1500_v10 = vsel %vm6029_vm0, %v815_v15, 0.0  ;;  %v1236_v0 = vshrl.u32 %v6055_v53, 4  ;;  %v6164_v23 = vadd.f32 %v4129_v17, %v5392_v43  ;;  %vm6177_vm0 = vmand %vm1330_vm9, %vm1294_vm3  ;;  %v4130_v63 = vpop.f32.mrb[26].mxu0 }
 0x132   : > { %1539 = vst.msk [vmem:[#allocation2 + $0xc0] sm:$0xff] %vm7825_vm10, %v1500_v10  ;;  %v4291_v50 = vpack.i.bf16 %v1926_v18, %v1925_v36  ;;  %v1437_v49 = vsel %vm6132_vm7, %v6074_v20, %v5955_v56  ;;  %v1435_v8 = vsel %vm6145_vm11, %v1399_v28, %v6048_v3  ;;  %v6182_v34 = vadd.f32 %v5392_v43, %v566_v60  ;;  %v569_v51 = vpop.f32.mrb[27].mxu0  ;;  %vm6197_vm8 = vmand %vm1328_vm6, %vm1292_vm5 }
 0x133   : > { %v1400_v48 = vadd.s32 18, %v6110_v30  ;;  %v6186_v56 = vsub.s32 %v5904_v46, %v1248_v2  ;;  %v1226_v20 = vmul.u32 18, %v1225_v42  ;;  %v820_v3 = vmax.f32 %v6164_v23, 0.0  ;;  %vm7834_vm11 = vmmov %vm7825_vm10 }
 0x134   : > { %v6190_v28 = vadd.f32 %v4130_v63, %v5392_v43  ;;  %4292 = vrot.lane.b32.xlu1 %v4291_v50, %s4674_s10  ;;  %v4296_v39 = vpack.i.bf16 %v1928_v14, %v1927_v6  ;;  %v1259_v46 = vmul.u32 18, %v1258_v27  ;;  %v818_v2 = vmax.f32 %v6182_v34, 0.0  ;;  %vm7838_vm9 = vmmov %vm7825_vm10  ;;  %v4133_v14 = vpop.f32.mrb[28].mxu0 }
 0x135   : > { %v6203_v42 = vadd.f32 %v5392_v43, %v569_v51  ;;  %v1438_v38 = vsel %vm6177_vm0, %v1402_v40, %v6091_v7  ;;  %v1237_v5 = vmul.u32 18, %v1236_v0  ;;  %v1505_v15 = vsel %vm6084_vm14, %v820_v3, 0.0  ;;  %vm7835_vm14 = vmmov %vm7825_vm10 }
 0x136   : > { %v821_v36 = vmax.f32 %v6190_v28, 0.0  ;;  %vm6211_vm7 = vcmp.lt.s32.totalorder %v1437_v49, 16  ;;  %vm6215_vm1 = vcmp.lt.s32.totalorder %v1435_v8, 16  ;;  %v1931_v35 = vld [vmem:[#allocation2 + $0xc8] sm:$0xff]  ;;  %1544 = vst.msk [vmem:[#allocation2 + $0xe8] sm:$0xff] %vm7834_vm11, %v1505_v15  ;;  %v1503_v7 = vsel %vm6104_vm4, %v818_v2, 0.0  ;;  %vm7839_vm13 = vmmov %vm7838_vm9 }
 0x137   : > { %v819_v40 = vmax.f32 %v6203_v42, 0.0  ;;  %v1436_v45 = vsel %vm6197_vm8, %v1400_v48, %v6110_v30  ;;  %v1929_v10 = vld [vmem:[#allocation2 + $0xb8] sm:$0xff]  ;;  %v6227_v17 = vsub.s32 %v5927_v59, %v1226_v20  ;;  %1542 = vst.msk [vmem:[#allocation2 + $0xd8] sm:$0xff] %vm7835_vm14, %v1503_v7  ;;  %vm6233_vm3 = vcmp.lt.s32.totalorder %v1438_v38, 16  ;;  %v1910_v48 = vld [vmem:[#allocation2 + $0x20] sm:$0xff] }
 0x138   : > { %v1506_v18 = vsel %vm6116_vm12, %v821_v36, 0.0  ;;  %4297 = vrot.lane.b32.xlu1 %v4296_v39, %s4674_s10  ;;  %v1932_v6 = vld [vmem:[#allocation2 + $0xd0] sm:$0xff]  ;;  %vm1297_vm4 = vcmp.ne.s32.totalorder %v6186_v56, 0  ;;  %v6239_v30 = vsub.s32 %v5945_v26, %v1259_v46  ;;  %vm1333_vm12 = vcmp.lt.s32.totalorder %v6186_v56, 0  ;;  %v582_v26 = vpop.f32.mrb[29].mxu0  ;;  %v1909_v46 = vld [vmem:[#allocation2 + $0x18] sm:$0xff] }
 0x139   : > { %1545 = vst.msk [vmem:[#allocation2 + $0xf0] sm:$0xff] %vm7838_vm9, %v1506_v18  ;;  %v1504_v59 = vsel %vm6124_vm2, %v819_v40, 0.0  ;;  %v4306_v37 = vpack.i.bf16 %v1932_v6, %v1931_v35  ;;  %v1930_v0 = vld [vmem:[#allocation2 + $0xc0] sm:$0xff]  ;;  %v6246_v60 = vsub.s32 %v5992_v41, %v1237_v5  ;;  %v6250_v50 = vadd.f32 %v4133_v14, %v5392_v43  ;;  %v4134_v63 = vpop.f32.mrb[30].mxu0  ;;  %vm6279_vm0 = vmand %vm1333_vm12, %vm1297_vm4  ;;  %v1912_v18 = vld [vmem:[#allocation2 + $0x30] sm:$0xff] }
 0x13a   : > { %1543 = vst.msk [vmem:[#allocation2 + $0xe0] sm:$0xff] %vm7839_vm13, %v1504_v59  ;;  %vm6252_vm5 = vcmp.lt.s32.totalorder %v1436_v45, 16  ;;  %v4301_v25 = vpack.i.bf16 %v1930_v0, %v1929_v10  ;;  %v1405_v8 = vadd.s32 18, %v6186_v56  ;;  %v6258_v53 = vadd.f32 %v5392_v43, %v582_v26  ;;  %v585_v51 = vpop.f32.mrb[31].mxu0  ;;  %vm7846_vm4 = vmmov %vm7838_vm9  ;;  %v1911_v14 = vld [vmem:[#allocation2 + $0x28] sm:$0xff] }
 0x13b   : > { %vm1295_vm2 = vcmp.ne.s32.totalorder %v6227_v17, 0  ;;  %vm1331_vm6 = vcmp.lt.s32.totalorder %v6227_v17, 0  ;;  %v1403_v41 = vadd.s32 18, %v6227_v17  ;;  %v824_v20 = vmax.f32 %v6250_v50, 0.0  ;;  %vm7849_vm9 = vmmov %vm7846_vm4 }
 0x13c   : > { %v6265_v3 = vadd.f32 %v4134_v63, %v5392_v43  ;;  %4307 = vrot.lane.b32.xlu1 %v4306_v37, %s4674_s10  ;;  %4302 = vrot.lane.b32.xlu0 %v4301_v25, %s4674_s10  ;;  %vm1298_vm15 = vcmp.ne.s32.totalorder %v6239_v30, 0  ;;  %vm1334_vm10 = vcmp.lt.s32.totalorder %v6239_v30, 0  ;;  %v822_v39 = vmax.f32 %v6258_v53, 0.0  ;;  %vm6292_vm14 = vmand %vm1331_vm6, %vm1295_vm2  ;;  %v4137_v37 = vpop.f32.mrb[32].mxu0 }
 0x13d   : > { %v6273_v21 = vadd.f32 %v5392_v43, %v585_v51  ;;  %vm1296_vm8 = vcmp.ne.s32.totalorder %v6246_v60, 0  ;;  %vm1332_vm11 = vcmp.lt.s32.totalorder %v6246_v60, 0  ;;  %v1509_v38 = vsel %vm6211_vm7, %v824_v20, 0.0  ;;  %vm6305_vm7 = vmand %vm1334_vm10, %vm1298_vm15  ;;  %v1935_v26 = vld [vmem:[#allocation2 + $0xe8] sm:$0xff]  ;;  %v598_v63 = vpop.f32.mrb[33].mxu0 }
 0x13e   : > { %v825_v5 = vmax.f32 %v6265_v3, 0.0  ;;  %v4311_v15 = vpack.i.bf16 %v1910_v48, %v1909_v46  ;;  %v1406_v35 = vadd.s32 18, %v6239_v30  ;;  %1548 = vst.msk [vmem:[#allocation2 + $0x108] sm:$0xff] %vm7846_vm4, %v1509_v38  ;;  %v1507_v7 = vsel %vm6215_vm1, %v822_v39, 0.0  ;;  %v1933_v10 = vld [vmem:[#allocation2 + $0xd8] sm:$0xff]  ;;  %vm6321_vm1 = vmand %vm1332_vm11, %vm1296_vm8  ;;  %v1914_v46 = vld [vmem:[#allocation2 + $0x40] sm:$0xff] }
 0x13f   : > { %v823_v4 = vmax.f32 %v6273_v21, 0.0  ;;  %v1404_v45 = vadd.s32 18, %v6246_v60  ;;  %1546 = vst.msk [vmem:[#allocation2 + $0xf8] sm:$0xff] %vm7849_vm9, %v1507_v7  ;;  %v1441_v6 = vsel %vm6279_vm0, %v1405_v8, %v6186_v56  ;;  %vm7852_vm12 = vmmov %vm7846_vm4  ;;  %v1439_v0 = vsel %vm6292_vm14, %v1403_v41, %v6227_v17  ;;  %v4138_v41 = vpop.f32.mrb[34].mxu0  ;;  %v1595_v51 = vld [vmem:[#allocation2 + $0x6] sm:$0xff] }
 0x140   : > { %v1510_v27 = vsel %vm6233_vm3, %v825_v5, 0.0  ;;  %4312 = vrot.lane.b32.xlu0 %v4311_v15, %s4674_s10  ;;  %v1936_v25 = vld [vmem:[#allocation2 + $0xf0] sm:$0xff]  ;;  %vm7853_vm3 = vmmov %vm7846_vm4  ;;  %v6333_v8 = vadd.f32 %v4137_v37, %v5392_v43  ;;  %v1442_v48 = vsel %vm6305_vm7, %v1406_v35, %v6239_v30  ;;  %v4321_v20 = vpack.i.bf16 %v1912_v18, %v1911_v14  ;;  %v601_v38 = vpop.f32.mrb[35].mxu0 }
 0x141   : > { %1549 = vst.msk [vmem:[#allocation2 + $0x110] sm:$0xff] %vm7852_vm12, %v1510_v27  ;;  %v1508_v31 = vsel %vm6252_vm5, %v823_v4, 0.0  ;;  %v1934_v56 = vld [vmem:[#allocation2 + $0xe0] sm:$0xff]  ;;  %vm6338_vm13 = vcmp.lt.s32.totalorder %v1441_v6, 16  ;;  %v6343_v17 = vadd.f32 %v5392_v43, %v598_v63  ;;  %v1440_v39 = vsel %vm6321_vm1, %v1404_v45, %v6246_v60  ;;  %v1913_v60 = vld [vmem:[#allocation2 + $0x38] sm:$0xff]  ;;  %vm7856_vm15 = vmmov %vm7853_vm3 }
 0x142   : > { %1547 = vst.msk [vmem:[#allocation2 + $0x100] sm:$0xff] %vm7853_vm3, %v1508_v31  ;;  %v4316_v49 = vpack.i.bf16 %v1934_v56, %v1933_v10  ;;  %v828_v2 = vmax.f32 %v6333_v8, 0.0  ;;  %vm1475_vm5 = vcmp.lt.s32.totalorder %v1439_v0, 16  ;;  %v6350_v30 = vadd.f32 %v4138_v41, %v5392_v43  ;;  %v1916_v18 = vld [vmem:[#allocation2 + $0x50] sm:$0xff]  ;;  %vm7857_vm10 = vmmov %vm7853_vm3  ;;  %v1918_v56 = vld [vmem:[#allocation2 + $0x60] sm:$0xff] }
 0x143   : > { %v4326_v5 = vpack.i.bf16 %v1936_v25, %v1935_v26  ;;  %v826_v15 = vmax.f32 %v6343_v17, 0.0  ;;  %vm1478_vm2 = vcmp.lt.s32.totalorder %v1442_v48, 16  ;;  %v6356_v36 = vadd.f32 %v5392_v43, %v601_v38  ;;  %v1915_v43 = vld [vmem:[#allocation2 + $0x48] sm:$0xff]  ;;  %vm7858_vm0 = vmmov %vm7853_vm3  ;;  %v1917_v25 = vld [vmem:[#allocation2 + $0x58] sm:$0xff] }
 0x144   : > { %4317 = vrot.lane.b32.xlu1 %v4316_v49, %s4674_s10  ;;  %4322 = vrot.lane.b32.xlu0 %v4321_v20, %s4674_s10  ;;  %v1513_v35 = vsel %vm6338_vm13, %v828_v2, 0.0  ;;  %v829_v7 = vmax.f32 %v6350_v30, 0.0  ;;  %vm1476_vm6 = vcmp.lt.s32.totalorder %v1440_v39, 16  ;;  %v4331_v4 = vpack.i.bf16 %v1914_v46, %v1913_v60  ;;  %vm7859_vm8 = vmmov %vm7858_vm0  ;;  %v1920_v49 = vld [vmem:[#allocation2 + $0x70] sm:$0xff]  ;;  %v1919_v20 = vld [vmem:[#allocation2 + $0x68] sm:$0xff] }
 0x145   : > { %1552 = vst.msk [vmem:[#allocation2 + $0x128] sm:$0xff] %vm7856_vm15, %v1513_v35  ;;  %v1511_v40 = vsel %vm1475_vm5, %v826_v15, 0.0  ;;  %v827_v45 = vmax.f32 %v6356_v36, 0.0  ;;  %v1939_v14 = vld [vmem:[#allocation2 + $0x108] sm:$0xff]  ;;  %v4341_v0 = vpack.i.bf16 %v1916_v18, %v1915_v43  ;;  %v4351_v63 = vpack.i.bf16 %v1918_v56, %v1917_v25  ;;  %v2865_v35 = vld [vmem:[#allocation2 + $0x32] sm:$0xff]  ;;  %vm7860_vm11 = vmmov %vm7858_vm0 }
 0x146   : > { %v1937_v10 = vld [vmem:[#allocation2 + $0xf8] sm:$0xff]  ;;  %1550 = vst.msk [vmem:[#allocation2 + $0x118] sm:$0xff] %vm7857_vm10, %v1511_v40  ;;  %v1514_v27 = vsel %vm1478_vm2, %v829_v7, 0.0  ;;  %v1596_v41 = vld [vmem:[#allocation2 + $0xe] sm:$0xff]  ;;  %v2867_v43 = vld [vmem:[#allocation2 + $0x42] sm:$0xff] }
 0x147   : > { %1553 = vst.msk [vmem:[#allocation2 + $0x130] sm:$0xff] %vm7858_vm0, %v1514_v27  ;;  %v1512_v6 = vsel %vm1476_vm6, %v827_v45, 0.0  ;;  %v4371_v60 = vpack.i.bf16 %v1596_v41, %v1595_v51  ;;  %v1598_v7 = vld [vmem:[#allocation2 + $0x1e] sm:$0xff]  ;;  %v1597_v40 = vld [vmem:[#allocation2 + $0x16] sm:$0xff]  ;;  %v1600_v18 = vld [vmem:[#allocation2 + $0x2e] sm:$0xff] }
 0x148   : > { %4327 = vrot.lane.b32.xlu1 %v4326_v5, %s4674_s10  ;;  %4332 = vrot.lane.b32.xlu0 %v4331_v4, %s4674_s10  ;;  %v1940_v31 = vld [vmem:[#allocation2 + $0x110] sm:$0xff]  ;;  %1551 = vst.msk [vmem:[#allocation2 + $0x120] sm:$0xff] %vm7859_vm8, %v1512_v6  ;;  %v4361_v5 = vpack.i.bf16 %v1920_v49, %v1919_v20  ;;  %v2866_v27 = vld [vmem:[#allocation2 + $0x3a] sm:$0xff]  ;;  %v1599_v6 = vld [vmem:[#allocation2 + $0x26] sm:$0xff] }
 0x149   : > { %v1938_v59 = vld [vmem:[#allocation2 + $0x100] sm:$0xff]  ;;  %v4346_v26 = vpack.i.bf16 %v1940_v31, %v1939_v14  ;;  %v2864_v4 = vld [vmem:[#allocation2 + $0x2a] sm:$0xff]  ;;  %v4391_v14 = vpack.i.bf16 %v1600_v18, %v1599_v6  ;;  %v2869_v31 = vld [vmem:[#allocation2 + $0x52] sm:$0xff] }
 0x14a   : > { %v4336_v37 = vpack.i.bf16 %v1938_v59, %v1937_v10  ;;  %v4376_v45 = vpack.i.bf16 %v2865_v35, %v2864_v4  ;;  %v4381_v10 = vpack.i.bf16 %v1598_v7, %v1597_v40  ;;  %v4386_v59 = vpack.i.bf16 %v2867_v43, %v2866_v27  ;;  %v1601_v56 = vld [vmem:[#allocation2 + $0x36] sm:$0xff]  ;;  %v2871_v49 = vld [vmem:[#allocation2 + $0x62] sm:$0xff]  ;;  %v2876_v27 = vld [vmem:[#allocation2 + $0x8a] sm:$0xff] }
 0x14b   : > { %v1603_v20 = vld [vmem:[#allocation2 + $0x46] sm:$0xff]  ;;  %v2874_v35 = vld [vmem:[#allocation2 + $0x7a] sm:$0xff]  ;;  %vm7861_vm14 = vmmov %vm7858_vm0 }
 0x14c   : > { %4337 = vrot.lane.b32.xlu1 %v4336_v37, %s4674_s10  ;;  %4342 = vrot.lane.b32.xlu0 %v4341_v0, %s4674_s10  ;;  %v1943_v46 = vld [vmem:[#allocation2 + $0x128] sm:$0xff]  ;;  %v1602_v37 = vld [vmem:[#allocation2 + $0x3e] sm:$0xff]  ;;  %v1609_v43 = vld [vmem:[#allocation2 + $0x76] sm:$0xff] }
 0x14d   : > { %v1941_v48 = vld [vmem:[#allocation2 + $0x118] sm:$0xff]  ;;  %v2868_v0 = vld [vmem:[#allocation2 + $0x4a] sm:$0xff]  ;;  %v4401_v25 = vpack.i.bf16 %v1602_v37, %v1601_v56  ;;  %v2875_v7 = vld [vmem:[#allocation2 + $0x82] sm:$0xff] }
 0x14e   : > { %v1944_v2 = vld [vmem:[#allocation2 + $0x130] sm:$0xff]  ;;  %v1607_v4 = vld [vmem:[#allocation2 + $0x66] sm:$0xff]  ;;  %v4426_v40 = vpack.i.bf16 %v2875_v7, %v2874_v35  ;;  %v1610_v18 = vld [vmem:[#allocation2 + $0x7e] sm:$0xff] }
 0x14f   : > { %v1942_v39 = vld [vmem:[#allocation2 + $0x120] sm:$0xff]  ;;  %v4366_v15 = vpack.i.bf16 %v1944_v2, %v1943_v46  ;;  %v2872_v2 = vld [vmem:[#allocation2 + $0x6a] sm:$0xff]  ;;  %v1617_v7 = vld [vmem:[#allocation2 + $0xb6] sm:$0xff] }
 0x150   : > { %4347 = vrot.lane.b32.xlu1 %v4346_v26, %s4674_s10  ;;  %4352 = vrot.lane.b32.xlu0 %v4351_v63, %s4674_s10  ;;  %v4356_v38 = vpack.i.bf16 %v1942_v39, %v1941_v48  ;;  %v4396_v26 = vpack.i.bf16 %v2869_v31, %v2868_v0  ;;  %v1604_v63 = vld [vmem:[#allocation2 + $0x4e] sm:$0xff]  ;;  %v2870_v48 = vld [vmem:[#allocation2 + $0x5a] sm:$0xff]  ;;  %v2879_v37 = vld [vmem:[#allocation2 + $0xa2] sm:$0xff] }
 0x151   : > { %v4406_v51 = vpack.i.bf16 %v2871_v49, %v2870_v48  ;;  %v4411_v41 = vpack.i.bf16 %v1604_v63, %v1603_v20  ;;  %v2873_v39 = vld [vmem:[#allocation2 + $0x72] sm:$0xff]  ;;  %v1606_v46 = vld [vmem:[#allocation2 + $0x5e] sm:$0xff]  ;;  %v1611_v0 = vld [vmem:[#allocation2 + $0x86] sm:$0xff] }
 0x152   : > { %v2878_v31 = vld [vmem:[#allocation2 + $0x9a] sm:$0xff]  ;;  %v2881_v63 = vld [vmem:[#allocation2 + $0xb2] sm:$0xff]  ;;  %vm7862_vm4 = vmmov %vm7858_vm0 }
 0x153   : > { %v4446_v56 = vpack.i.bf16 %v2879_v37, %v2878_v31  ;;  %v1614_v48 = vld [vmem:[#allocation2 + $0x9e] sm:$0xff]  ;;  %v1613_v49 = vld [vmem:[#allocation2 + $0x96] sm:$0xff]  ;;  %vm7863_vm7 = vmmov %vm7858_vm0 }
 0x154   : > { %4357 = vrot.lane.b32.xlu1 %v4356_v38, %s4674_s10  ;;  %4362 = vrot.lane.b32.xlu0 %v4361_v5, %s4674_s10  ;;  %v1605_v38 = vld [vmem:[#allocation2 + $0x56] sm:$0xff]  ;;  %v4416_v5 = vpack.i.bf16 %v2873_v39, %v2872_v2  ;;  %v1615_v2 = vld [vmem:[#allocation2 + $0xa6] sm:$0xff]  ;;  %v1618_v35 = vld [vmem:[#allocation2 + $0xbe] sm:$0xff] }
 0x155   : > { %v2882_v39 = vld [vmem:[#allocation2 + $0xba] sm:$0xff]  ;;  %v2889_v31 = vld [vmem:[#allocation2 + $0xf2] sm:$0xff]  ;;  %vm7864_vm9 = vmmov %vm7858_vm0 }
 0x156   : > { %v1622_v37 = vld [vmem:[#allocation2 + $0xde] sm:$0xff]  ;;  %vm7865_vm1 = vmmov %vm7858_vm0 }
 0x157   : > { %vm7866_vm12 = vmmov %vm7858_vm0 }
 0x158   : > { %4367 = vrot.lane.b32.xlu1 %v4366_v15, %s4674_s10  ;;  %4372 = vrot.lane.b32.xlu0 %v4371_v60, %s4674_s10  ;;  %v4421_v15 = vpack.i.bf16 %v1606_v46, %v1605_v38  ;;  %v1608_v60 = vld [vmem:[#allocation2 + $0x6e] sm:$0xff]  ;;  %v2883_v46 = vld [vmem:[#allocation2 + $0xc2] sm:$0xff]  ;;  %vm7867_vm3 = vmmov %vm7858_vm0 }
 0x159   : > { %v4466_v38 = vpack.i.bf16 %v2883_v46, %v2882_v39  ;;  %v2893_v39 = vld [vmem:[#allocation2 + $0x112] sm:$0xff]  ;;  %v1626_v46 = vld [vmem:[#allocation2 + $0xfe] sm:$0xff]  ;;  %vm7870_vm13 = vmmov %vm7858_vm0 }
 0x15a   : > { %vm7871_vm5 = vmmov %vm7858_vm0 }
 0x15b   : > { %vm7873_vm2 = vmmov %vm7858_vm0 }
 0x15c   : > { %4377 = vrot.lane.b32.xlu1 %v4376_v45, %s4674_s10  ;;  %4382 = vrot.lane.b32.xlu0 %v4381_v10, %s4674_s10  ;;  %v4431_v45 = vpack.i.bf16 %v1608_v60, %v1607_v4  ;;  %v2877_v10 = vld [vmem:[#allocation2 + $0x92] sm:$0xff]  ;;  %vm7875_vm6 = vmmov %vm7858_vm0 }
 0x15d   : > { %v4436_v6 = vpack.i.bf16 %v2877_v10, %v2876_v27  ;;  %v2885_v60 = vld [vmem:[#allocation2 + $0xd2] sm:$0xff]  ;;  %v2886_v10 = vld [vmem:[#allocation2 + $0xda] sm:$0xff]  ;;  %v1619_v27 = vld [vmem:[#allocation2 + $0xc6] sm:$0xff] }
 0x15e   : > { %vm7876_vm15 = vmmov %vm7858_vm0 }
 0x15f   : > { %vm7878_vm10 = vmmov %vm7858_vm0 }
 0x160   : > { %4387 = vrot.lane.b32.xlu1 %v4386_v59, %s4674_s10  ;;  %4392 = vrot.lane.b32.xlu0 %v4391_v14, %s4674_s10  ;;  %v4441_v59 = vpack.i.bf16 %v1610_v18, %v1609_v43  ;;  %v1612_v14 = vld [vmem:[#allocation2 + $0x8e] sm:$0xff]  ;;  %v2887_v18 = vld [vmem:[#allocation2 + $0xe2] sm:$0xff]  ;;  %vm7879_vm8 = vmmov %vm7858_vm0 }
 0x161   : > { %v4486_v43 = vpack.i.bf16 %v2887_v18, %v2886_v10  ;;  %v2897_v10 = vld [vmem:[#allocation2 + $0x132] sm:$0xff]  ;;  %v1630_v18 = vld [vmem:[#allocation2 + $0x11e] sm:$0xff] }
 0x164   : > { %4397 = vrot.lane.b32.xlu1 %v4396_v26, %s4674_s10  ;;  %4402 = vrot.lane.b32.xlu0 %v4401_v25, %s4674_s10  ;;  %v4451_v26 = vpack.i.bf16 %v1612_v14, %v1611_v0  ;;  %v2880_v25 = vld [vmem:[#allocation2 + $0xaa] sm:$0xff] }
 0x165   : > { %v4456_v20 = vpack.i.bf16 %v2881_v63, %v2880_v25  ;;  %v2888_v14 = vld [vmem:[#allocation2 + $0xea] sm:$0xff]  ;;  %v2890_v25 = vld [vmem:[#allocation2 + $0xfa] sm:$0xff]  ;;  %v2891_v63 = vld [vmem:[#allocation2 + $0x102] sm:$0xff] }
 0x166   : > { %v4496_v0 = vpack.i.bf16 %v2889_v31, %v2888_v14 }
 0x168   : > { %4407 = vrot.lane.b32.xlu1 %v4406_v51, %s4674_s10  ;;  %4412 = vrot.lane.b32.xlu0 %v4411_v41, %s4674_s10  ;;  %v4461_v51 = vpack.i.bf16 %v1614_v48, %v1613_v49  ;;  %v1616_v41 = vld [vmem:[#allocation2 + $0xae] sm:$0xff]  ;;  %v1623_v48 = vld [vmem:[#allocation2 + $0xe6] sm:$0xff]  ;;  %v4506_v49 = vpack.i.bf16 %v2891_v63, %v2890_v25 }
 0x16c   : > { %4417 = vrot.lane.b32.xlu1 %v4416_v5, %s4674_s10  ;;  %4422 = vrot.lane.b32.xlu0 %v4421_v15, %s4674_s10  ;;  %v4471_v5 = vpack.i.bf16 %v1616_v41, %v1615_v2  ;;  %v2884_v15 = vld [vmem:[#allocation2 + $0xca] sm:$0xff] }
 0x16d   : > { %v4476_v4 = vpack.i.bf16 %v2885_v60, %v2884_v15  ;;  %v2892_v41 = vld [vmem:[#allocation2 + $0x10a] sm:$0xff]  ;;  %v2894_v15 = vld [vmem:[#allocation2 + $0x11a] sm:$0xff]  ;;  %v2895_v60 = vld [vmem:[#allocation2 + $0x122] sm:$0xff] }
 0x16e   : > { %v4516_v2 = vpack.i.bf16 %v2893_v39, %v2892_v41 }
 0x170   : > { %4427 = vrot.lane.b32.xlu1 %v4426_v40, %s4674_s10  ;;  %4432 = vrot.lane.b32.xlu0 %v4431_v45, %s4674_s10  ;;  %v4481_v40 = vpack.i.bf16 %v1618_v35, %v1617_v7  ;;  %v1620_v45 = vld [vmem:[#allocation2 + $0xce] sm:$0xff]  ;;  %v1627_v35 = vld [vmem:[#allocation2 + $0x106] sm:$0xff]  ;;  %v4526_v7 = vpack.i.bf16 %v2895_v60, %v2894_v15 }
 0x171   : > { %v6435_v15 = vld [vmem:[#allocation2 + $0x8f] sm:$0xff] }
 0x174   : > { %4437 = vrot.lane.b32.xlu1 %v4436_v6, %s4674_s10  ;;  %4442 = vrot.lane.b32.xlu0 %v4441_v59, %s4674_s10  ;;  %v4491_v6 = vpack.i.bf16 %v1620_v45, %v1619_v27  ;;  %v1621_v59 = vld [vmem:[#allocation2 + $0xd6] sm:$0xff]  ;;  %v2896_v45 = vld [vmem:[#allocation2 + $0x12a] sm:$0xff] }
 0x175   : > { %v2898_v27 = vld [vmem:[#allocation2 + $0x13a] sm:$0xff] }
 0x178   : > { %4447 = vrot.lane.b32.xlu1 %v4446_v56, %s4674_s10  ;;  %4452 = vrot.lane.b32.xlu0 %v4451_v26, %s4674_s10  ;;  %v4501_v56 = vpack.i.bf16 %v1622_v37, %v1621_v59  ;;  %v1624_v26 = vld [vmem:[#allocation2 + $0xee] sm:$0xff] }
 0x17c   : > { %4457 = vrot.lane.b32.xlu1 %v4456_v20, %s4674_s10  ;;  %4462 = vrot.lane.b32.xlu0 %v4461_v51, %s4674_s10  ;;  %v4511_v20 = vpack.i.bf16 %v1624_v26, %v1623_v48  ;;  %v1625_v51 = vld [vmem:[#allocation2 + $0xf6] sm:$0xff]  ;;  %v6415_v26 = vld [vmem:[#allocation2 + $0x7f] sm:$0xff] }
 0x17d   : > { %v4584_v48 = vld [vmem:[%s7538_s3 + $0xc0] sm:$0xff]  }
 0x180   : > { %4467 = vrot.lane.b32.xlu1 %v4466_v38, %s4674_s10  ;;  %4472 = vrot.lane.b32.xlu0 %v4471_v5, %s4674_s10  ;;  %v4521_v38 = vpack.i.bf16 %v1626_v46, %v1625_v51  ;;  %v1628_v5 = vld [vmem:[#allocation2 + $0x10e] sm:$0xff] }
 0x184   : > { %4477 = vrot.lane.b32.xlu1 %v4476_v4, %s4674_s10  ;;  %4482 = vrot.lane.b32.xlu0 %v4481_v40, %s4674_s10  ;;  %v4531_v4 = vpack.i.bf16 %v1628_v5, %v1627_v35  ;;  %v1629_v40 = vld [vmem:[#allocation2 + $0x116] sm:$0xff]  ;;  %v6433_v5 = vld [vmem:[#allocation2 + $0x87] sm:$0xff] }
 0x185   : > { %v4541_v59 = vpack.i.bf16 %v1630_v18, %v1629_v40  ;;  %v1962_v35 = vld [vmem:[#allocation2 + $0xa1] sm:$0xff] }
 0x188   : > { %4487 = vrot.lane.b32.xlu1 %v4486_v43, %s4674_s10  ;;  %4492 = vrot.lane.b32.xlu0 %v4491_v6, %s4674_s10  ;;  %v2899_v43 = vld [vmem:[#allocation2 + $0x142] sm:$0xff]  ;;  %v4536_v6 = vpack.i.bf16 %v2897_v10, %v2896_v45 }
 0x189   : > { %v4546_v14 = vpack.i.bf16 %v2899_v43, %v2898_v27  ;;  %v6458_v27 = vld [vmem:[#allocation2 + $0x9f] sm:$0xff] }
 0x18a   : > { %v4588_v43 = vld [vmem:[%s7538_s3 + $0xd8] sm:$0xff]  }
 0x18c   : > { %4497 = vrot.lane.b32.xlu1 %v4496_v0, %s4674_s10  ;;  %4502 = vrot.lane.b32.xlu0 %v4501_v56, %s4674_s10  ;;  %v6413_v56 = vld [vmem:[#allocation2 + $0x77] sm:$0xff] }
 0x190   : > { %4507 = vrot.lane.b32.xlu1 %v4506_v49, %s4674_s10  ;;  %4512 = vrot.lane.b32.xlu0 %v4511_v20, %s4674_s10  ;;  %v1960_v49 = vld [vmem:[#allocation2 + $0x91] sm:$0xff] }
 0x194   : > { %4517 = vrot.lane.b32.xlu1 %v4516_v2, %s4674_s10  ;;  %4522 = vrot.lane.b32.xlu0 %v4521_v38, %s4674_s10  ;;  %v4585_v2 = vld [vmem:[%s7538_s3 + $0xc8] sm:$0xff]  }
 0x198   : > { %4527 = vrot.lane.b32.xlu1 %v4526_v7, %s4674_s10  ;;  %4532 = vrot.lane.b32.xlu0 %v4531_v4, %s4674_s10  ;;  %v4586_v4 = vld [vmem:[%s7538_s3 + $0xd0] sm:$0xff]  }
 0x19c   : > { %4537 = vrot.lane.b32.xlu1 %v4536_v6, %s4674_s10  ;;  %4542 = vrot.lane.b32.xlu0 %v4541_v59, %s4674_s10  ;;  %v1964_v59 = vld [vmem:[#allocation2 + $0xb1] sm:$0xff] }
 0x19d   : > { %v4283_v31 = vpop.permute.xlu0 %4282 }
 0x19e   : > { %v4285_v37 = vunpack.i.h.bf16 %v4283_v31  ;;  %v4284_v0 = vunpack.i.l.bf16 %v4283_v31  ;;  %v7869_v31 = vld [vmem:[#allocation11_spill] sm:$0xff] }
 0x1a0   : > { %4547 = vrot.lane.b32.xlu1 %v4546_v14, %s4674_s10  ;;  %649 = vrot.lane.b32.xlu0 %v5454_v52, %s4674_s10  ;;  %v2137_v25 = vsel %vm7860_vm11, %v6413_v56, %v4284_v0  ;;  %v2138_v63 = vsel %vm7861_vm14, %v6415_v26, %v4285_v37  ;;  %v1959_v52 = vld [vmem:[#allocation2 + $0x89] sm:$0xff]  ;;  %v7868_v14 = vld [vmem:[#allocation7_spill] sm:$0xff]  ;;  %vm7880_vm11 = vmmov %vm7858_vm0 }
 0x1a1   : > { %v2173_v51 = vpack.c.bf16 %v2138_v63, %v2137_v25  ;;  %v2176_v46 = vpack.c.bf16 %v1960_v49, %v1959_v52  ;;  %v6480_v52 = vld [vmem:[#allocation2 + $0x17] sm:$0xff]  ;;  %vm7883_vm14 = vmmov %vm7858_vm0 }
 0x1a2   : > { %v4288_v20 = vpop.permute.xlu0 %4287 }
 0x1a3   : > { %v4290_v41 = vunpack.i.h.bf16 %v4288_v20  ;;  %v4289_v39 = vunpack.i.l.bf16 %v4288_v20  ;;  %2429 = vmatmul.mubr.bf16.vlgmr.msra.gmra.mrb[0].mxu1 %v2173_v51 }
 0x1a4   : > { %651 = vrot.lane.b32.xlu1 %v5492_v32, %s4674_s10  ;;  %3304 = vmatpush1.bf16.msra.mxu1 %v4584_v48  ;;  %v4591_v48 = vld [vmem:[%s7538_s3 + $0xe0] sm:$0xff]  }
 0x1a5   : > { %653 = vrot.lane.b32.xlu0 %v5443_v33, %s4674_s10  ;;  %3932 = vmatprep.mubr.msk.bf16.mxu1 %vm7862_vm4, %v2176_v46  ;;  %v2139_v32 = vsel %vm7863_vm7, %v6433_v5, %v4289_v39  ;;  %v2140_v60 = vsel %vm7864_vm9, %v6435_v15, %v4290_v41  ;;  %v1961_v33 = vld [vmem:[#allocation2 + $0x99] sm:$0xff]  ;;  %v6477_v39 = vld [vmem:[#allocation2 + $0x31] sm:$0xff]  ;;  %vm7884_vm4 = vmmov %vm7858_vm0 }
 0x1a6   : > { %v4293_v38 = vpop.permute.xlu1 %4292  ;;  %3305 = vmatprep.subr.bf16.mxu1 %v7644_v57  ;;  %v2175_v7 = vpack.c.bf16 %v2140_v60, %v2139_v32  ;;  %v2178_v10 = vpack.c.bf16 %v1962_v35, %v1961_v33  ;;  %v6482_v46 = vld [vmem:[#allocation2 + $0x1f] sm:$0xff]  ;;  %v6493_v60 = vld [vmem:[#allocation2 + $0x29] sm:$0xff]  ;;  %vm7885_vm7 = vmmov %vm7858_vm0 }
 0x1a7   : > { %v4295_v40 = vunpack.i.h.bf16 %v4293_v38  ;;  %v4294_v45 = vunpack.i.l.bf16 %v4293_v38  ;;  %v7872_v32 = vld [vmem:[#allocation8_spill] sm:$0xff]  ;;  %vm7886_vm9 = vmmov %vm7858_vm0 }
 0x1a8   : > { %655 = vrot.lane.b32.xlu1 %v5475_v13, %s4674_s10  ;;  %3306 = vmatpush1.bf16.msra.mxu1 %v4585_v2  ;;  %v6495_v33 = vld [vmem:[#allocation2 + $0xa7] sm:$0xff] }
 0x1a9   : > { %657 = vrot.lane.b32.xlu0 %v5562_v11, %s4674_s10  ;;  %3307 = vmatprep.subr.bf16.mxu1 %v7644_v57  ;;  %v6456_v11 = vld [vmem:[#allocation2 + $0x97] sm:$0xff] }
 0x1aa   : > { %v4298_v18 = vpop.permute.xlu1 %4297  ;;  %v2141_v6 = vsel %vm7866_vm12, %v6456_v11, %v4294_v45  ;;  %v6504_v45 = vld [vmem:[#allocation2 + $0xaf] sm:$0xff]  ;;  %vm7888_vm12 = vmmov %vm7858_vm0 }
 0x1ab   : > { %2437 = vmatmul.mubr.bf16.gmra.mrb[4].mxu1 %v2175_v7  ;;  %v4300_v49 = vunpack.i.h.bf16 %v4298_v18  ;;  %v4299_v20 = vunpack.i.l.bf16 %v4298_v18  ;;  %7874 = vst [vmem:[#allocation16_spill] sm:$0xff] %v6504_v45 }
 0x1ac   : > { %659 = vrot.lane.b32.xlu1 %v5601_v9, %s4674_s10  ;;  %3933 = vmatprep.mubr.msk.bf16.mxu1 %vm7865_vm1, %v2178_v10  ;;  %v2142_v9 = vsel %vm7867_vm3, %v6458_v27, %v4295_v40  ;;  %v4587_v40 = vld [vmem:[%s7538_s3] sm:$0xff]   ;;  %v4594_v10 = vld [vmem:[%s7538_s3 + $0xe8] sm:$0xff]   ;;  %vm7887_vm1 = vmmov %vm7858_vm0 }
 0x1ad   : > { %661 = vrot.lane.b32.xlu0 %v5554_v58, %s4674_s10  ;;  %3308 = vmatpush1.bf16.msra.mxu1 %v4586_v4  ;;  %v1963_v58 = vld [vmem:[#allocation2 + $0xa9] sm:$0xff]  ;;  %v2177_v25 = vpack.c.bf16 %v2142_v9, %v2141_v6  ;;  %v2143_v6 = vsel %vm7875_vm6, %v6495_v33, %v4299_v20  ;;  %v2144_v9 = vsel %vm7876_vm15, %v6504_v45, %v4300_v49  ;;  %vm7891_vm3 = vmmov %vm7858_vm0 }
 0x1ae   : > { %v6454_v13 = vpop.permute.xlu0 %4302  ;;  %3309 = vmatprep.subr.bf16.mxu1 %v7644_v57  ;;  %v6472_v37 = vpop.permute.xlu1 %4307  ;;  %v2180_v63 = vpack.c.bf16 %v1964_v59, %v1963_v58  ;;  %v1965_v58 = vld [vmem:[#allocation2 + $0xb9] sm:$0xff]  ;;  %v1966_v59 = vld [vmem:[#allocation2 + $0xc1] sm:$0xff]  ;;  %v6526_v20 = vld [vmem:[#allocation2 + $0x2f] sm:$0xff] }
 0x1af   : > { %v4589_v49 = vld [vmem:[%s7538_s3 + $0x8] sm:$0xff]   ;;  %vm7895_vm6 = vmmov %vm7858_vm0 }
 0x1b0   : > { %663 = vrot.lane.b32.xlu1 %v7868_v14, %s4674_s10  ;;  %v7877_v14 = vld [vmem:[#allocation9_spill] sm:$0xff]  ;;  %vm7896_vm15 = vmmov %vm7858_vm0 }
 0x1b1   : > { %665 = vrot.lane.b32.xlu0 %v7869_v31, %s4674_s10  ;;  %3310 = vmatpush1.bf16.msra.mxu1 %v4588_v43  ;;  %v6519_v31 = vld [vmem:[#allocation2 + $0x27] sm:$0xff] }
 0x1b2   : > { %v4313_v0 = vpop.permute.xlu0 %4312  ;;  %3311 = vmatprep.subr.bf16.mxu1 %v7644_v57 }
 0x1b3   : > { %v4315_v51 = vunpack.i.h.bf16 %v4313_v0  ;;  %v4314_v41 = vunpack.i.l.bf16 %v4313_v0  ;;  %2445 = vmatmul.mubr.bf16.gmra.mrb[8].mxu1 %v2177_v25 }
 0x1b4   : > { %667 = vrot.lane.b32.xlu1 %v5744_v55, %s4674_s10  ;;  %3934 = vmatprep.mubr.msk.bf16.mxu1 %vm7873_vm2, %v2180_v63  ;;  %v2164_v55 = vpack.c.bf16 %v6477_v39, %v6493_v60  ;;  %v2179_v63 = vpack.c.bf16 %v2144_v9, %v2143_v6  ;;  %vm7894_vm2 = vmmov %vm7858_vm0 }
 0x1b5   : > { %v2125_v2 = vsel %vm7870_vm13, %v6480_v52, %v4314_v41  ;;  %v2126_v38 = vsel %vm7871_vm5, %v6482_v46, %v4315_v51  ;;  %669 = vrot.lane.b32.xlu0 %v7872_v32, %s4674_s10  ;;  %3312 = vmatpush1.bf16.msra.mxu1 %v4591_v48  ;;  %v2182_v48 = vpack.c.bf16 %v1966_v59, %v1965_v58  ;;  %v4305_v51 = vunpack.i.h.bf16 %v6454_v13  ;;  %v6538_v32 = vld [vmem:[#allocation2 + $0x39] sm:$0xff]  ;;  %v1967_v59 = vld [vmem:[#allocation2 + $0xc9] sm:$0xff]  ;;  %vm7892_vm13 = vmmov %vm7858_vm0 }
 0x1b6   : > { %v2161_v35 = vpack.c.bf16 %v2126_v38, %v2125_v2  ;;  %v6497_v7 = vpop.permute.xlu1 %4317  ;;  %v4323_v4 = vpop.permute.xlu0 %4322  ;;  %3313 = vmatprep.subr.bf16.mxu1 %v7644_v57  ;;  %v4304_v41 = vunpack.i.l.bf16 %v6454_v13  ;;  %v6548_v13 = vld [vmem:[#allocation2 + $0xb7] sm:$0xff]  ;;  %vm7893_vm5 = vmmov %vm7858_vm0 }
 0x1b7   : > { %v4325_v18 = vunpack.i.h.bf16 %v4323_v4  ;;  %v4324_v43 = vunpack.i.l.bf16 %v4323_v4  ;;  %7881 = vst [vmem:[#allocation13_spill] sm:$0xff] %v6548_v13 }
 0x1b8   : > { %671 = vrot.lane.b32.xlu1 %v7877_v14, %s4674_s10  ;;  %2381 = vmatmul.mubr.bf16.vlgmr.msra.gmra.mrb[36].mxu0 %v2161_v35  ;;  %v6540_v35 = vld [vmem:[#allocation2 + $0x41] sm:$0xff]  ;;  %v2145_v9 = vsel %vm7883_vm14, %v6548_v13, %v4304_v41  ;;  %v1968_v14 = vld [vmem:[#allocation2 + $0xd1] sm:$0xff]  ;;  %v4310_v41 = vunpack.i.h.bf16 %v6472_v37  ;;  %vm7902_vm14 = vmmov %vm7858_vm0 }
 0x1b9   : > { %673 = vrot.lane.b32.xlu0 %v5854_v62, %s4674_s10  ;;  %3926 = vmatprep.mubr.msk.bf16.mxu0 %vm7878_vm10, %v2164_v55  ;;  %v4597_v62 = vld [vmem:[%s7538_s3 + $0xf0] sm:$0xff]   ;;  %v2127_v2 = vsel %vm7858_vm0, %v6519_v31, %v4324_v43  ;;  %v2128_v38 = vsel %vm7879_vm8, %v6526_v20, %v4325_v18  ;;  %v6559_v18 = vld [vmem:[#allocation2 + $0xbf] sm:$0xff]  ;;  %vm7899_vm10 = vmmov %vm7858_vm0 }
 0x1ba   : > { %2652 = vmatpush1.bf16.msra.mxu0 %v4587_v40  ;;  %v6521_v0 = vpop.permute.xlu1 %4327  ;;  %v4333_v25 = vpop.permute.xlu0 %4332  ;;  %3314 = vmatpush1.bf16.msra.mxu1 %v4594_v10  ;;  %v2163_v40 = vpack.c.bf16 %v2128_v38, %v2127_v2  ;;  %v2166_v10 = vpack.c.bf16 %v6540_v35, %v6538_v32  ;;  %7882 = vst [vmem:[#allocation10_spill] sm:$0xff] %v6559_v18  ;;  %v4309_v2 = vunpack.i.l.bf16 %v6472_v37  ;;  %v6604_v37 = vld [vmem:[#allocation2 + $0x49] sm:$0xff]  ;;  %vm7900_vm8 = vmmov %vm7858_vm0 }
 0x1bb   : > { %2653 = vmatprep.subr.bf16.mxu0 %v7644_v57  ;;  %3315 = vmatprep.subr.bf16.mxu1 %v7644_v57  ;;  %v4335_v43 = vunpack.i.h.bf16 %v4333_v25  ;;  %v4334_v6 = vunpack.i.l.bf16 %v4333_v25  ;;  %v2146_v58 = vsel %vm7884_vm4, %v6559_v18, %v4305_v51  ;;  %v6575_v25 = vld [vmem:[#allocation2 + $0x37] sm:$0xff]  ;;  %vm7903_vm4 = vmmov %vm7858_vm0  ;;  %v6753_v13 = vld [vmem:[#allocation2 + $0x6f] sm:$0xff] }
 0x1bc   : > { %2453 = vmatmul.mubr.bf16.gmra.mrb[12].mxu1 %v2179_v63  ;;  %675 = vrot.lane.b32.xlu1 %v5891_v47, %s4674_s10  ;;  %v4590_v47 = vld [vmem:[%s7538_s3 + $0x10] sm:$0xff]   ;;  %v4592_v51 = vld [vmem:[%s7538_s3 + $0x18] sm:$0xff]  }
 0x1bd   : > { %677 = vrot.lane.b32.xlu0 %v5838_v61, %s4674_s10  ;;  %3935 = vmatprep.mubr.msk.bf16.mxu1 %vm7880_vm11, %v2182_v48  ;;  %v4600_v61 = vld [vmem:[%s7538_s3 + $0xf8] sm:$0xff]   ;;  %v2129_v38 = vsel %vm7886_vm9, %v6575_v25, %v4334_v6  ;;  %vm7901_vm11 = vmmov %vm7858_vm0 }
 0x1be   : > { %2654 = vmatpush1.bf16.msra.mxu0 %v4589_v49  ;;  %v6550_v4 = vpop.permute.xlu1 %4337  ;;  %v6552_v55 = vpop.permute.xlu0 %4342  ;;  %3316 = vmatpush1.bf16.msra.mxu1 %v4597_v62  ;;  %v2181_v49 = vpack.c.bf16 %v2146_v58, %v2145_v9  ;;  %v2184_v62 = vpack.c.bf16 %v1968_v14, %v1967_v59  ;;  %v4605_v58 = vld [vmem:[%s7538_s3 + $0x108] sm:$0xff]   ;;  %v1972_v18 = vld [vmem:[#allocation2 + $0xf1] sm:$0xff]  ;;  %vm7907_vm9 = vmmov %vm7858_vm0 }
 0x1bf   : > { %2655 = vmatprep.subr.bf16.mxu0 %v7644_v57  ;;  %3317 = vmatprep.subr.bf16.mxu1 %v7644_v57  ;;  %v4345_v59 = vunpack.i.h.bf16 %v6552_v55  ;;  %v4344_v14 = vunpack.i.l.bf16 %v6552_v55  ;;  %v6635_v55 = vld [vmem:[#allocation2 + $0x47] sm:$0xff]  ;;  %v4339_v45 = vunpack.i.l.bf16 %v6550_v4 }
 0x1c0   : > { %679 = vrot.lane.b32.xlu1 %v5874_v22, %s4674_s10  ;;  %2389 = vmatmul.mubr.bf16.gmra.mrb[40].mxu0 %v2163_v40  ;;  %v6584_v22 = vld [vmem:[#allocation2 + $0x3f] sm:$0xff] }
 0x1c1   : > { %681 = vrot.lane.b32.xlu0 %v5961_v54, %s4674_s10  ;;  %3927 = vmatprep.mubr.msk.bf16.mxu0 %vm7885_vm7, %v2166_v10  ;;  %v4603_v54 = vld [vmem:[%s7538_s3 + $0x100] sm:$0xff]   ;;  %v2130_v40 = vsel %vm7887_vm1, %v6584_v22, %v4335_v43  ;;  %v6596_v10 = vld [vmem:[#allocation2 + $0x51] sm:$0xff]  ;;  %vm7906_vm7 = vmmov %vm7858_vm0 }
 0x1c2   : > { %2656 = vmatpush1.bf16.msra.mxu0 %v4590_v47  ;;  %v6577_v63 = vpop.permute.xlu1 %4347  ;;  %v6579_v48 = vpop.permute.xlu0 %4352  ;;  %3318 = vmatpush1.bf16.msra.mxu1 %v4600_v61  ;;  %v6606_v47 = vld [vmem:[#allocation2 + $0xc7] sm:$0xff]  ;;  %v2165_v6 = vpack.c.bf16 %v2130_v40, %v2129_v38  ;;  %v2168_v9 = vpack.c.bf16 %v6596_v10, %v6604_v37  ;;  %vm7910_vm1 = vmmov %vm7858_vm0 }
 0x1c3   : > { %2657 = vmatprep.subr.bf16.mxu0 %v7644_v57  ;;  %3319 = vmatprep.subr.bf16.mxu1 %v7644_v57  ;;  %7889 = vst [vmem:[#allocation17_spill] sm:$0xff] %v6606_v47  ;;  %v1970_v38 = vld [vmem:[#allocation2 + $0xe1] sm:$0xff] }
 0x1c4   : > { %2461 = vmatmul.mubr.bf16.gmra.mrb[16].mxu1 %v2181_v49  ;;  %683 = vrot.lane.b32.xlu1 %v5996_v29, %s4674_s10  ;;  %v4593_v29 = vld [vmem:[%s7538_s3 + $0x20] sm:$0xff]   ;;  %v2147_v49 = vsel %vm7891_vm3, %v6606_v47, %v4309_v2  ;;  %v1971_v47 = vld [vmem:[#allocation2 + $0xe9] sm:$0xff]  ;;  %vm7912_vm3 = vmmov %vm7858_vm0 }
 0x1c5   : > { %685 = vrot.lane.b32.xlu0 %v5949_v24, %s4674_s10  ;;  %3936 = vmatprep.mubr.msk.bf16.mxu1 %vm7888_vm12, %v2184_v62  ;;  %v6617_v24 = vld [vmem:[#allocation2 + $0xcf] sm:$0xff]  ;;  %vm7911_vm12 = vmmov %vm7858_vm0 }
 0x1c6   : > { %2658 = vmatpush1.bf16.msra.mxu0 %v4592_v51  ;;  %v6608_v61 = vpop.permute.xlu1 %4357  ;;  %v6610_v43 = vpop.permute.xlu0 %4362  ;;  %7890 = vst [vmem:[#allocation12_spill] sm:$0xff] %v6617_v24  ;;  %3320 = vmatpush1.bf16.msra.mxu1 %v4603_v54  ;;  %v2148_v62 = vsel %vm7892_vm13, %v6617_v24, %v4310_v41  ;;  %v1969_v51 = vld [vmem:[#allocation2 + $0xd9] sm:$0xff]  ;;  %v4595_v24 = vld [vmem:[%s7538_s3 + $0x28] sm:$0xff]   ;;  %vm7913_vm13 = vmmov %vm7858_vm0 }
 0x1c7   : > { %2659 = vmatprep.subr.bf16.mxu0 %v7644_v57  ;;  %3321 = vmatprep.subr.bf16.mxu1 %v7644_v57  ;;  %v2183_v41 = vpack.c.bf16 %v2148_v62, %v2147_v49  ;;  %v2186_v40 = vpack.c.bf16 %v1970_v38, %v1969_v51  ;;  %v6656_v62 = vld [vmem:[#allocation2 + $0x59] sm:$0xff]  ;;  %v6658_v51 = vld [vmem:[#allocation2 + $0x61] sm:$0xff] }
 0x1c8   : > { %687 = vrot.lane.b32.xlu1 %v5979_v44, %s4674_s10  ;;  %2397 = vmatmul.mubr.bf16.gmra.mrb[44].mxu0 %v2165_v6  ;;  %v6644_v44 = vld [vmem:[#allocation2 + $0x4f] sm:$0xff]  ;;  %v4320_v6 = vunpack.i.h.bf16 %v6497_v7  ;;  %v2170_v38 = vpack.c.bf16 %v6658_v51, %v6656_v62 }
 0x1c9   : > { %689 = vrot.lane.b32.xlu0 %v6077_v16, %s4674_s10  ;;  %3928 = vmatprep.mubr.msk.bf16.mxu0 %vm7893_vm5, %v2168_v9  ;;  %v4606_v16 = vld [vmem:[%s7538_s3 + $0x110] sm:$0xff]   ;;  %v4319_v9 = vunpack.i.l.bf16 %v6497_v7  ;;  %v2132_v49 = vsel %vm7895_vm6, %v6644_v44, %v4345_v59  ;;  %vm7916_vm5 = vmmov %vm7858_vm0 }
 0x1ca   : > { %2660 = vmatpush1.bf16.msra.mxu0 %v4593_v29  ;;  %v6637_v54 = vpop.permute.xlu1 %4367  ;;  %v6639_v2 = vpop.permute.xlu0 %4372  ;;  %3322 = vmatpush1.bf16.msra.mxu1 %v4605_v58  ;;  %v2131_v29 = vsel %vm7894_vm2, %v6635_v55, %v4344_v14  ;;  %v6666_v7 = vld [vmem:[#allocation2 + $0xd7] sm:$0xff]  ;;  %vm7917_vm2 = vmmov %vm7858_vm0 }
 0x1cb   : > { %2661 = vmatprep.subr.bf16.mxu0 %v7644_v57  ;;  %3323 = vmatprep.subr.bf16.mxu1 %v7644_v57  ;;  %7897 = vst [vmem:[#allocation14_spill] sm:$0xff] %v6666_v7  ;;  %v2167_v14 = vpack.c.bf16 %v2132_v49, %v2131_v29  ;;  %v2149_v29 = vsel %vm7899_vm10, %v6666_v7, %v4319_v9  ;;  %v6702_v7 = vld [vmem:[#allocation2 + $0x57] sm:$0xff]  ;;  %vm7920_vm6 = vmmov %vm7858_vm0 }
 0x1cc   : > { %2469 = vmatmul.mubr.bf16.gmra.mrb[20].mxu1 %v2183_v41  ;;  %691 = vrot.lane.b32.xlu1 %v6114_v1, %s4674_s10  ;;  %v4596_v1 = vld [vmem:[%s7538_s3 + $0x30] sm:$0xff]   ;;  %v6677_v41 = vld [vmem:[#allocation2 + $0xdf] sm:$0xff]  ;;  %vm7922_vm10 = vmmov %vm7858_vm0 }
 0x1cd   : > { %693 = vrot.lane.b32.xlu0 %v6071_v12, %s4674_s10  ;;  %3937 = vmatprep.mubr.msk.bf16.mxu1 %vm7896_vm15, %v2186_v40  ;;  %7898 = vst [vmem:[#allocation18_spill] sm:$0xff] %v6677_v41  ;;  %v4607_v12 = vld [vmem:[%s7538_s3 + $0x118] sm:$0xff]   ;;  %v4354_v40 = vunpack.i.l.bf16 %v6579_v48  ;;  %v2150_v49 = vsel %vm7858_vm0, %v6677_v41, %v4320_v6  ;;  %v2188_v6 = vpack.c.bf16 %v1972_v18, %v1971_v47  ;;  %vm7921_vm15 = vmmov %vm7858_vm0 }
 0x1ce   : > { %2662 = vmatpush1.bf16.msra.mxu0 %v4595_v24  ;;  %v6668_v58 = vpop.permute.xlu1 %4377  ;;  %v6670_v59 = vpop.permute.xlu0 %4382  ;;  %3324 = vmatpush1.bf16.msra.mxu1 %v4606_v16  ;;  %v4355_v24 = vunpack.i.h.bf16 %v6579_v48  ;;  %v2185_v9 = vpack.c.bf16 %v2150_v49, %v2149_v29  ;;  %v4598_v41 = vld [vmem:[%s7538_s3 + $0x38] sm:$0xff]   ;;  %v6731_v29 = vld [vmem:[#allocation2 + $0xe7] sm:$0xff]  ;;  %v4365_v49 = vunpack.i.h.bf16 %v6610_v43 }
 0x1cf   : > { %2663 = vmatprep.subr.bf16.mxu0 %v7644_v57  ;;  %3325 = vmatprep.subr.bf16.mxu1 %v7644_v57  ;;  %v6713_v47 = vld [vmem:[#allocation2 + $0x71] sm:$0xff]  ;;  %7904 = vst [vmem:[#allocation15_spill] sm:$0xff] %v6731_v29 }
 0x1d0   : > { %695 = vrot.lane.b32.xlu1 %v6095_v19, %s4674_s10  ;;  %2405 = vmatmul.mubr.bf16.gmra.mrb[48].mxu0 %v2167_v14  ;;  %v6704_v19 = vld [vmem:[#allocation2 + $0x5f] sm:$0xff]  ;;  %v4329_v14 = vunpack.i.l.bf16 %v6521_v0 }
 0x1d1   : > { %697 = vrot.lane.b32.xlu0 %v6182_v34, %s4674_s10  ;;  %3929 = vmatprep.mubr.msk.bf16.mxu0 %vm7900_vm8, %v2170_v38  ;;  %v4330_v34 = vunpack.i.h.bf16 %v6521_v0  ;;  %v2133_v38 = vsel %vm7901_vm11, %v6702_v7, %v4354_v40  ;;  %v2134_v18 = vsel %vm7902_vm14, %v6704_v19, %v4355_v24  ;;  %v6720_v0 = vld [vmem:[#allocation2 + $0x69] sm:$0xff]  ;;  %vm7923_vm8 = vmmov %vm7858_vm0 }
 0x1d2   : > { %2664 = vmatpush1.bf16.msra.mxu0 %v4596_v1  ;;  %v6695_v48 = vpop.permute.xlu1 %4387  ;;  %v6697_v16 = vpop.permute.xlu0 %4392  ;;  %3326 = vmatpush1.bf16.msra.mxu1 %v4607_v12  ;;  %v2169_v40 = vpack.c.bf16 %v2134_v18, %v2133_v38  ;;  %v2172_v24 = vpack.c.bf16 %v6713_v47, %v6720_v0  ;;  %v6742_v38 = vld [vmem:[#allocation2 + $0xf9] sm:$0xff]  ;;  %v6744_v18 = vld [vmem:[#allocation2 + $0x101] sm:$0xff]  ;;  %vm7924_vm11 = vmmov %vm7858_vm0 }
 0x1d3   : > { %2665 = vmatprep.subr.bf16.mxu0 %v7644_v57  ;;  %7908 = vst [vmem:[#allocation11_spill] sm:$0xff] %v6742_v38  ;;  %7909 = vst [vmem:[#allocation8_spill] sm:$0xff] %v6744_v18 }
 0x1d4   : > { %2477 = vmatmul.mubr.bf16.gmra.mrb[24].mxu1 %v2185_v9  ;;  %699 = vrot.lane.b32.xlu1 %v6203_v42, %s4674_s10  ;;  %v4599_v42 = vld [vmem:[%s7538_s3 + $0x40] sm:$0xff]   ;;  %v2151_v9 = vsel %vm7906_vm7, %v6731_v29, %v4329_v14  ;;  %v2190_v29 = vpack.c.bf16 %v6744_v18, %v6742_v38  ;;  %v4374_v18 = vunpack.i.l.bf16 %v6639_v2  ;;  %vm7927_vm14 = vmmov %vm7858_vm0 }
 0x1d5   : > { %701 = vrot.lane.b32.xlu0 %v6164_v23, %s4674_s10  ;;  %3938 = vmatprep.mubr.msk.bf16.mxu1 %vm7903_vm4, %v2188_v6  ;;  %v6733_v23 = vld [vmem:[#allocation2 + $0xef] sm:$0xff]  ;;  %vm7928_vm4 = vmmov %vm7858_vm0 }
 0x1d6   : > { %2666 = vmatpush1.bf16.msra.mxu0 %v4598_v41  ;;  %v6722_v1 = vpop.permute.xlu1 %4397  ;;  %v6724_v12 = vpop.permute.xlu0 %4402  ;;  %7905 = vst [vmem:[#allocation7_spill] sm:$0xff] %v6733_v23  ;;  %v4364_v41 = vunpack.i.l.bf16 %v6610_v43  ;;  %v2152_v6 = vsel %vm7907_vm9, %v6733_v23, %v4330_v34  ;;  %v6751_v43 = vld [vmem:[#allocation2 + $0x67] sm:$0xff]  ;;  %vm7929_vm7 = vmmov %vm7858_vm0 }
 0x1d7   : > { %2667 = vmatprep.subr.bf16.mxu0 %v7644_v57  ;;  %v2187_v23 = vpack.c.bf16 %v2152_v6, %v2151_v9  ;;  %v2136_v9 = vsel %vm7912_vm3, %v6753_v13, %v4365_v49  ;;  %vm7930_vm9 = vmmov %vm7858_vm0 }
 0x1d8   : > { %703 = vrot.lane.b32.xlu1 %v6190_v28, %s4674_s10  ;;  %2413 = vmatmul.mubr.bf16.gmra.mrb[52].mxu0 %v2169_v40  ;;  %v4601_v28 = vld [vmem:[%s7538_s3 + $0x48] sm:$0xff]   ;;  %vm7936_vm3 = vmmov %vm7858_vm0 }
 0x1d9   : > { %705 = vrot.lane.b32.xlu0 %v6258_v53, %s4674_s10  ;;  %3930 = vmatprep.mubr.msk.bf16.mxu0 %vm7910_vm1, %v2172_v24  ;;  %v1631_v53 = vld [vmem:[#allocation2 + $0x7] sm:$0xff]  ;;  %v1632_v40 = vld [vmem:[#allocation2 + $0xf] sm:$0xff]  ;;  %v4340_v24 = vunpack.i.h.bf16 %v6550_v4  ;;  %v4375_v4 = vunpack.i.h.bf16 %v6639_v2  ;;  %vm7932_vm1 = vmmov %vm7858_vm0 }
 0x1da   : > { %2668 = vmatpush1.bf16.msra.mxu0 %v4599_v42  ;;  %v6755_v14 = vpop.permute.xlu1 %4407  ;;  %v6757_v34 = vpop.permute.xlu0 %4412  ;;  %v2135_v42 = vsel %vm7911_vm12, %v6751_v43, %v4364_v41  ;;  %v1848_v6 = vpack.c.bf16 %v1632_v40, %v1631_v53  ;;  %v1560_v53 = vld [vmem:[#allocation2 + $0xd] sm:$0xff]  ;;  %vm7933_vm12 = vmmov %vm7858_vm0 }
 0x1db   : > { %2669 = vmatprep.subr.bf16.mxu0 %v7644_v57  ;;  %v2171_v49 = vpack.c.bf16 %v2136_v9, %v2135_v42  ;;  %v6796_v40 = vld [vmem:[#allocation2 + $0x109] sm:$0xff]  ;;  %v6798_v42 = vld [vmem:[#allocation2 + $0x111] sm:$0xff]  ;;  %v1812_v9 = vsel %vm7921_vm15, %v1560_v53, %v4375_v4  ;;  %v4385_v53 = vunpack.i.h.bf16 %v6670_v59  ;;  %vm7941_vm15 = vmmov %vm7858_vm0 }
 0x1dc   : > { %2485 = vmatmul.mubr.bf16.gmra.mrb[28].mxu1 %v2187_v23  ;;  %707 = vrot.lane.b32.xlu1 %v6273_v21, %s4674_s10  ;;  %v4602_v21 = vld [vmem:[%s7538_s3 + $0x50] sm:$0xff]   ;;  %7918 = vst [vmem:[#allocation20_spill] sm:$0xff] %v6796_v40  ;;  %7919 = vst [vmem:[#allocation21_spill] sm:$0xff] %v6798_v42 }
 0x1dd   : > { %709 = vrot.lane.b32.xlu0 %v6250_v50, %s4674_s10  ;;  %3939 = vmatprep.mubr.msk.bf16.mxu1 %vm7913_vm13, %v2190_v29  ;;  %v6785_v23 = vld [vmem:[#allocation2 + $0xf7] sm:$0xff]  ;;  %v6787_v50 = vld [vmem:[#allocation2 + $0xff] sm:$0xff]  ;;  %vm7937_vm13 = vmmov %vm7858_vm0 }
 0x1de   : > { %2670 = vmatpush1.bf16.msra.mxu0 %v4601_v28  ;;  %v6778_v38 = vpop.permute.xlu1 %4417  ;;  %v6780_v41 = vpop.permute.xlu0 %4422  ;;  %7914 = vst [vmem:[#allocation9_spill] sm:$0xff] %v6785_v23  ;;  %7915 = vst [vmem:[#allocation19_spill] sm:$0xff] %v6787_v50  ;;  %v1559_v29 = vld [vmem:[#allocation2 + $0x5] sm:$0xff]  ;;  %v2153_v2 = vsel %vm7916_vm5, %v6785_v23, %v4339_v45  ;;  %v2154_v28 = vsel %vm7917_vm2, %v6787_v50, %v4340_v24  ;;  %v4350_v50 = vunpack.i.h.bf16 %v6577_v63 }
 0x1df   : > { %2671 = vmatprep.subr.bf16.mxu0 %v7644_v57  ;;  %v1811_v45 = vsel %vm7922_vm10, %v1559_v29, %v4374_v18  ;;  %vm7938_vm5 = vmmov %vm7858_vm0 }
 0x1e0   : > { %711 = vrot.lane.b32.xlu1 %v6265_v3, %s4674_s10  ;;  %2421 = vmatmul.mubr.bf16.gmra.mrb[56].mxu0 %v2171_v49  ;;  %v2189_v3 = vpack.c.bf16 %v2154_v28, %v2153_v2  ;;  %v4604_v49 = vld [vmem:[%s7538_s3 + $0x58] sm:$0xff]   ;;  %v1847_v18 = vpack.c.bf16 %v1812_v9, %v1811_v45  ;;  %v1850_v2 = vpack.c.bf16 %v6482_v46, %v6480_v52  ;;  %v6842_v9 = vld [vmem:[#allocation2 + $0x121] sm:$0xff]  ;;  %vm7939_vm2 = vmmov %vm7858_vm0 }
 0x1e1   : > { %713 = vrot.lane.b32.xlu0 %v6343_v17, %s4674_s10  ;;  %3955 = vmatprep.mubr.msk.bf16.mxu0 %vm7920_vm6, %v1848_v6  ;;  %v4349_v17 = vunpack.i.l.bf16 %v6577_v63  ;;  %v2192_v6 = vpack.c.bf16 %v6798_v42, %v6796_v40  ;;  %v6826_v63 = vld [vmem:[#allocation2 + $0x107] sm:$0xff]  ;;  %v6840_v28 = vld [vmem:[#allocation2 + $0x119] sm:$0xff]  ;;  %7926 = vst [vmem:[#allocation23_spill] sm:$0xff] %v6842_v9  ;;  %vm7940_vm6 = vmmov %vm7858_vm0 }
 0x1e2   : > { %2672 = vmatpush1.bf16.msra.mxu0 %v4602_v21  ;;  %v6805_v23 = vpop.permute.xlu1 %4427  ;;  %v6807_v24 = vpop.permute.xlu0 %4432  ;;  %7925 = vst [vmem:[#allocation22_spill] sm:$0xff] %v6840_v28  ;;  %v1561_v52 = vld [vmem:[#allocation2 + $0x15] sm:$0xff]  ;;  %v1562_v46 = vld [vmem:[#allocation2 + $0x1d] sm:$0xff]  ;;  %vm7942_vm10 = vmmov %vm7858_vm0 }
 0x1e3   : > { %2673 = vmatprep.subr.bf16.mxu0 %v7644_v57  ;;  %v6828_v57 = vld [vmem:[#allocation2 + $0x10f] sm:$0xff]  ;;  %v2155_v29 = vsel %vm7923_vm8, %v6826_v63, %v4349_v17  ;;  %vm7943_vm8 = vmmov %vm7858_vm0 }
 0x1e4   : > { %2493 = vmatmul.mubr.bf16.gmra.mrb[32].mxu1 %v2189_v3  ;;  %715 = vrot.lane.b32.xlu1 %v6356_v36, %s4674_s10  ;;  %v2156_v36 = vsel %vm7924_vm11, %v6828_v57, %v4350_v50  ;;  %vm7944_vm11 = vmmov %vm7858_vm0 }
 0x1e5   : > { %717 = vrot.lane.b32.xlu0 %v6333_v8, %s4674_s10  ;;  %3940 = vmatprep.mubr.msk.bf16.mxu1 %vm7858_vm0, %v2192_v6  ;;  %v4384_v8 = vunpack.i.l.bf16 %v6670_v59  ;;  %v2191_v3 = vpack.c.bf16 %v2156_v36, %v2155_v29  ;;  %v4360_v59 = vunpack.i.h.bf16 %v6608_v61  ;;  %v1814_v6 = vsel %vm7929_vm7, %v1562_v46, %v4385_v53  ;;  %v6860_v29 = vld [vmem:[#allocation2 + $0x117] sm:$0xff]  ;;  %v6862_v36 = vld [vmem:[#allocation2 + $0x11f] sm:$0xff]  ;;  %vm7947_vm7 = vmmov %vm7858_vm0 }
 0x1e6   : > { %2674 = vmatpush1.bf16.msra.mxu0 %v4604_v49  ;;  %v6822_v4 = vpop.permute.xlu1 %4437  ;;  %v6824_v21 = vpop.permute.xlu0 %4442  ;;  %v4359_v49 = vunpack.i.l.bf16 %v6608_v61  ;;  %7931 = vst [vmem:[#allocation24_spill] sm:$0xff] %v6862_v36  ;;  %v4394_v53 = vunpack.i.l.bf16 %v6697_v16  ;;  %v6874_v46 = vld [vmem:[#allocation2 + $0x131] sm:$0xff] }
 0x1e7   : > { %v1813_v17 = vsel %vm7928_vm4, %v1561_v52, %v4384_v8  ;;  %v4395_v8 = vunpack.i.h.bf16 %v6697_v16  ;;  %v6872_v52 = vld [vmem:[#allocation2 + $0x129] sm:$0xff]  ;;  %7935 = vst [vmem:[#allocation26_spill] sm:$0xff] %v6874_v46  ;;  %vm7946_vm4 = vmmov %vm7858_vm0 }
 0x1e8   : > { %719 = vrot.lane.b32.xlu1 %v6350_v30, %s4674_s10  ;;  %v2194_v30 = vpack.c.bf16 %v6842_v9, %v6840_v28  ;;  %v1849_v61 = vpack.c.bf16 %v1814_v6, %v1813_v17  ;;  %v2157_v9 = vsel %vm7932_vm1, %v6860_v29, %v4359_v49  ;;  %7934 = vst [vmem:[#allocation25_spill] sm:$0xff] %v6872_v52  ;;  %v4369_v28 = vunpack.i.l.bf16 %v6637_v54  ;;  %vm7949_vm1 = vmmov %vm7858_vm0 }
 0x1e9   : > { %2684 = vmatmul.mubr.bf16.vlgmr.msra.gmra.mrb[60].mxu0 %v1847_v18  ;;  %v2196_v16 = vpack.c.bf16 %v6874_v46, %v6872_v52  ;;  %v4405_v52 = vunpack.i.h.bf16 %v6724_v12 }
 0x1ea   : > { %3956 = vmatprep.mubr.msk.bf16.mxu0 %vm7927_vm14, %v1850_v2  ;;  %v6845_v45 = vpop.permute.xlu1 %4447  ;;  %v6847_v50 = vpop.permute.xlu0 %4452  ;;  %vm7945_vm14 = vmmov %vm7858_vm0 }
 0x1ec   : > { %2501 = vmatmul.mubr.bf16.gmra.mrb[36].mxu1 %v2191_v3  ;;  %v2158_v3 = vsel %vm7933_vm12, %v6862_v36, %v4360_v59  ;;  %v4370_v59 = vunpack.i.h.bf16 %v6637_v54  ;;  %vm7950_vm12 = vmmov %vm7858_vm0 }
 0x1ed   : > { %3941 = vmatprep.mubr.msk.bf16.mxu1 %vm7930_vm9, %v2194_v30  ;;  %v1852_v30 = vpack.c.bf16 %v6526_v20, %v6519_v31  ;;  %v2193_v6 = vpack.c.bf16 %v2158_v3, %v2157_v9  ;;  %v1563_v31 = vld [vmem:[#allocation2 + $0x25] sm:$0xff]  ;;  %v1564_v20 = vld [vmem:[#allocation2 + $0x2d] sm:$0xff]  ;;  %vm7948_vm9 = vmmov %vm7858_vm0 }
 0x1ee   : > { %v6856_v18 = vpop.permute.xlu1 %4457  ;;  %v6858_v2 = vpop.permute.xlu0 %4462  ;;  %v1815_v42 = vsel %vm7937_vm13, %v1563_v31, %v4394_v53  ;;  %v1907_v9 = vld [vmem:[#allocation2 + $0x127] sm:$0xff]  ;;  %v1908_v3 = vld [vmem:[#allocation2 + $0x12f] sm:$0xff]  ;;  %vm7952_vm13 = vmmov %vm7858_vm0 }
 0x1ef   : > { %v2159_v54 = vsel %vm7940_vm6, %v1907_v9, %v4369_v28  ;;  %v2160_v46 = vsel %vm7941_vm15, %v1908_v3, %v4370_v59  ;;  %v2901_v53 = vld [vmem:[#allocation2 + $0x33] sm:$0xff]  ;;  %v4380_v28 = vunpack.i.h.bf16 %v6668_v58  ;;  %v4379_v59 = vunpack.i.l.bf16 %v6668_v58  ;;  %vm7955_vm6 = vmmov %vm7858_vm0 }
 0x1f0   : > { %v1565_v9 = vld [vmem:[#allocation2 + $0x35] sm:$0xff]  ;;  %vm7956_vm15 = vmmov %vm7858_vm0 }
 0x1f1   : > { %2692 = vmatmul.mubr.bf16.gmra.mrb[64].mxu0 %v1849_v61  ;;  %v1816_v61 = vsel %vm7938_vm5, %v1564_v20, %v4395_v8  ;;  %v1854_v8 = vpack.c.bf16 %v6584_v22, %v6575_v25  ;;  %v2900_v20 = vld [vmem:[#allocation2 + $0x2b] sm:$0xff]  ;;  %v3081_v58 = vsel %vm7946_vm4, %v6477_v39, %v4380_v28  ;;  %v4390_v39 = vunpack.i.h.bf16 %v6695_v48  ;;  %vm7953_vm5 = vmmov %vm7858_vm0 }
 0x1f2   : > { %3957 = vmatprep.mubr.msk.bf16.mxu0 %vm7936_vm3, %v1852_v30  ;;  %v6877_v17 = vpop.permute.xlu1 %4467  ;;  %v6879_v49 = vpop.permute.xlu0 %4472  ;;  %v1851_v36 = vpack.c.bf16 %v1816_v61, %v1815_v42  ;;  %v2195_v42 = vpack.c.bf16 %v2160_v46, %v2159_v54  ;;  %v3117_v61 = vpack.c.bf16 %v2901_v53, %v2900_v20  ;;  %v3080_v46 = vsel %vm7945_vm14, %v6493_v60, %v4379_v59  ;;  %vm7951_vm3 = vmmov %vm7858_vm0 }
 0x1f3   : > { %v4414_v53 = vunpack.i.l.bf16 %v6757_v34  ;;  %v3116_v20 = vpack.c.bf16 %v3081_v58, %v3080_v46  ;;  %v4389_v28 = vunpack.i.l.bf16 %v6695_v48  ;;  %v3083_v48 = vsel %vm7952_vm13, %v6540_v35, %v4390_v39  ;;  %vm7960_vm14 = vmmov %vm7858_vm0 }
 0x1f4   : > { %2509 = vmatmul.mubr.bf16.gmra.mrb[40].mxu1 %v2193_v6  ;;  %v4404_v6 = vunpack.i.l.bf16 %v6724_v12  ;;  %v1566_v12 = vld [vmem:[#allocation2 + $0x3d] sm:$0xff]  ;;  %v4425_v58 = vunpack.i.h.bf16 %v6780_v41  ;;  %v4399_v35 = vunpack.i.l.bf16 %v6722_v1  ;;  %vm7961_vm4 = vmmov %vm7858_vm0 }
 0x1f5   : > { %3942 = vmatprep.mubr.msk.bf16.mxu1 %vm7939_vm2, %v2196_v16  ;;  %v1818_v22 = vsel %vm7943_vm8, %v1566_v12, %v4405_v52  ;;  %v1856_v52 = vpack.c.bf16 %v6644_v44, %v6635_v55  ;;  %v3082_v46 = vsel %vm7951_vm3, %v6538_v32, %v4389_v28  ;;  %v2904_v32 = vld [vmem:[#allocation2 + $0x4b] sm:$0xff]  ;;  %v1569_v28 = vld [vmem:[#allocation2 + $0x55] sm:$0xff]  ;;  %vm7954_vm2 = vmmov %vm7858_vm0 }
 0x1f6   : > { %v6888_v30 = vpop.permute.xlu1 %4477  ;;  %v6890_v40 = vpop.permute.xlu0 %4482  ;;  %v1817_v25 = vsel %vm7858_vm0, %v1565_v9, %v4404_v6  ;;  %v2902_v6 = vld [vmem:[#allocation2 + $0x3b] sm:$0xff]  ;;  %v1567_v9 = vld [vmem:[#allocation2 + $0x45] sm:$0xff]  ;;  %vm7958_vm8 = vmmov %vm7858_vm0 }
 0x1f7   : > { %v1853_v54 = vpack.c.bf16 %v1818_v22, %v1817_v25  ;;  %v1819_v55 = vsel %vm7948_vm9, %v1567_v9, %v4414_v53  ;;  %v2905_v53 = vld [vmem:[#allocation2 + $0x53] sm:$0xff]  ;;  %vm7963_vm9 = vmmov %vm7858_vm0 }
 0x1f8   : > { %v3121_v39 = vpack.c.bf16 %v2905_v53, %v2904_v32  ;;  %v1572_v32 = vld [vmem:[#allocation2 + $0x6d] sm:$0xff]  ;;  %vm7966_vm3 = vmmov %vm7858_vm0 }
 0x1f9   : > { %2700 = vmatmul.mubr.bf16.gmra.mrb[68].mxu0 %v1851_v36  ;;  %vm7967_vm13 = vmmov %vm7858_vm0 }
 0x1fa   : > { %3958 = vmatprep.mubr.msk.bf16.mxu0 %vm7942_vm10, %v1854_v8  ;;  %v6899_v16 = vpop.permute.xlu1 %4487  ;;  %v6901_v31 = vpop.permute.xlu0 %4492  ;;  %v4415_v8 = vunpack.i.h.bf16 %v6757_v34  ;;  %v1568_v34 = vld [vmem:[#allocation2 + $0x4d] sm:$0xff]  ;;  %vm7957_vm10 = vmmov %vm7858_vm0 }
 0x1fc   : > { %2517 = vmatmul.mubr.bf16.gmra.mrb[44].mxu1 %v2195_v42  ;;  %v2903_v42 = vld [vmem:[#allocation2 + $0x43] sm:$0xff]  ;;  %v1820_v44 = vsel %vm7949_vm1, %v1568_v34, %v4415_v8  ;;  %v1858_v8 = vpack.c.bf16 %v6704_v19, %v6702_v7  ;;  %vm7964_vm1 = vmmov %vm7858_vm0 }
 0x1fd   : > { %4009 = vmatprep.mubr.msk.bf16.mxu1 %vm7944_vm11, %v3117_v61  ;;  %v3119_v59 = vpack.c.bf16 %v2903_v42, %v2902_v6  ;;  %v1855_v22 = vpack.c.bf16 %v1820_v44, %v1819_v55  ;;  %v3118_v42 = vpack.c.bf16 %v3083_v48, %v3082_v46  ;;  %v3084_v55 = vsel %vm7957_vm10, %v6604_v37, %v4399_v35  ;;  %v2906_v48 = vld [vmem:[#allocation2 + $0x5b] sm:$0xff]  ;;  %vm7959_vm11 = vmmov %vm7858_vm0 }
 0x1fe   : > { %v6908_v36 = vpop.permute.xlu1 %4497  ;;  %v6910_v3 = vpop.permute.xlu0 %4502  ;;  %v4435_v44 = vunpack.i.h.bf16 %v6807_v24  ;;  %v1860_v46 = vpack.c.bf16 %v6753_v13, %v6751_v43  ;;  %v4410_v37 = vunpack.i.h.bf16 %v6755_v14  ;;  %vm7972_vm10 = vmmov %vm7858_vm0 }
 0x200   : > { %v1824_v43 = vsel %vm7961_vm4, %v1572_v32, %v4435_v44  ;;  %v2908_v44 = vld [vmem:[#allocation2 + $0x6b] sm:$0xff]  ;;  %v2910_v32 = vld [vmem:[#allocation2 + $0x7b] sm:$0xff]  ;;  %vm7976_vm4 = vmmov %vm7858_vm0 }
 0x201   : > { %2708 = vmatmul.mubr.bf16.gmra.mrb[72].mxu0 %v1853_v54  ;;  %v4424_v54 = vunpack.i.l.bf16 %v6780_v41  ;;  %v1570_v41 = vld [vmem:[#allocation2 + $0x5d] sm:$0xff] }
 0x202   : > { %3959 = vmatprep.mubr.msk.bf16.mxu0 %vm7947_vm7, %v1856_v52  ;;  %v6921_v61 = vpop.permute.xlu1 %4507  ;;  %v6923_v60 = vpop.permute.xlu0 %4512  ;;  %v1822_v19 = vsel %vm7955_vm6, %v1570_v41, %v4425_v58  ;;  %v2907_v58 = vld [vmem:[#allocation2 + $0x63] sm:$0xff]  ;;  %vm7962_vm7 = vmmov %vm7858_vm0  ;;  %v4445_v41 = vunpack.i.h.bf16 %v6824_v21 }
 0x203   : > { %v1821_v7 = vsel %vm7954_vm2, %v1569_v28, %v4424_v54  ;;  %vm7969_vm2 = vmmov %vm7858_vm0 }
 0x204   : > { %3336 = vmatmul.mubr.bf16.vlgmr.msra.gmra.mrb[48].mxu1 %v3116_v20  ;;  %v4400_v20 = vunpack.i.h.bf16 %v6722_v1  ;;  %v1857_v34 = vpack.c.bf16 %v1822_v19, %v1821_v7  ;;  %v4444_v7 = vunpack.i.l.bf16 %v6824_v21  ;;  %v1862_v19 = vpack.c.bf16 %v6415_v26, %v6413_v56  ;;  %vm7970_vm6 = vmmov %vm7858_vm0 }
 0x205   : > { %4010 = vmatprep.mubr.msk.bf16.mxu1 %vm7950_vm12, %v3119_v59  ;;  %vm7965_vm12 = vmmov %vm7858_vm0 }
 0x206   : > { %v6930_v12 = vpop.permute.xlu1 %4517  ;;  %v6932_v25 = vpop.permute.xlu0 %4522  ;;  %v3085_v1 = vsel %vm7858_vm0, %v6596_v10, %v4400_v20  ;;  %v4409_v10 = vunpack.i.l.bf16 %v6755_v14  ;;  %v3087_v28 = vsel %vm7965_vm12, %v6658_v51, %v4410_v37  ;;  %v4419_v51 = vunpack.i.l.bf16 %v6778_v38  ;;  %vm7980_vm12 = vmmov %vm7858_vm0 }
 0x207   : > { %v3120_v53 = vpack.c.bf16 %v3085_v1, %v3084_v55 }
 0x208   : > { %v3086_v14 = vsel %vm7964_vm1, %v6656_v62, %v4409_v10  ;;  %v4420_v62 = vunpack.i.h.bf16 %v6778_v38  ;;  %v4455_v10 = vunpack.i.h.bf16 %v6847_v50  ;;  %vm7979_vm1 = vmmov %vm7858_vm0 }
 0x209   : > { %2716 = vmatmul.mubr.bf16.gmra.mrb[76].mxu0 %v1855_v22  ;;  %v4434_v22 = vunpack.i.l.bf16 %v6807_v24  ;;  %v1571_v24 = vld [vmem:[#allocation2 + $0x65] sm:$0xff]  ;;  %v3122_v1 = vpack.c.bf16 %v3087_v28, %v3086_v14  ;;  %v1576_v14 = vld [vmem:[#allocation2 + $0x8d] sm:$0xff] }
 0x20a   : > { %3960 = vmatprep.mubr.msk.bf16.mxu0 %vm7953_vm5, %v1858_v8  ;;  %v6943_v52 = vpop.permute.xlu1 %4527  ;;  %v6945_v6 = vpop.permute.xlu0 %4532  ;;  %vm7968_vm5 = vmmov %vm7858_vm0 }
 0x20b   : > { %v1823_v13 = vsel %vm7960_vm14, %v1571_v24, %v4434_v22  ;;  %vm7975_vm14 = vmmov %vm7858_vm0  ;;  %v1864_v24 = vpack.c.bf16 %v6435_v15, %v6433_v5  ;;  %v1828_v15 = vsel %vm7980_vm12, %v1576_v14, %v4455_v10  ;;  %v4449_v14 = vunpack.i.l.bf16 %v6845_v45 }
 0x20c   : > { %3344 = vmatmul.mubr.bf16.gmra.mrb[52].mxu1 %v3118_v42  ;;  %v3123_v42 = vpack.c.bf16 %v2907_v58, %v2906_v48  ;;  %v1574_v48 = vld [vmem:[#allocation2 + $0x7d] sm:$0xff]  ;;  %vm7996_vm12 = vmmov %vm7858_vm0 }
 0x20d   : > { %4011 = vmatprep.mubr.msk.bf16.mxu1 %vm7956_vm15, %v3121_v39  ;;  %v1859_v39 = vpack.c.bf16 %v1824_v43, %v1823_v13  ;;  %vm7971_vm15 = vmmov %vm7858_vm0  ;;  %v2911_v13 = vld [vmem:[#allocation2 + $0x83] sm:$0xff] }
 0x20e   : > { %v6952_v59 = vpop.permute.xlu1 %4537  ;;  %v6954_v9 = vpop.permute.xlu0 %4542  ;;  %v1826_v26 = vsel %vm7971_vm15, %v1574_v48, %v4445_v41  ;;  %v2838_v41 = vld [vmem:[#allocation2 + $0x79] sm:$0xff]  ;;  %vm7986_vm15 = vmmov %vm7858_vm0  ;;  %v4440_v48 = vunpack.i.h.bf16 %v6822_v4 }
 0x211   : > { %2724 = vmatmul.mubr.bf16.gmra.mrb[80].mxu0 %v1857_v34  ;;  %v2909_v34 = vld [vmem:[#allocation2 + $0x73] sm:$0xff] }
 0x212   : > { %3961 = vmatprep.mubr.msk.bf16.mxu0 %vm7958_vm8, %v1860_v46  ;;  %v6965_v54 = vpop.permute.xlu1 %4547  ;;  %v650_v8 = vpop.permute.xlu0 %649  ;;  %v3125_v21 = vpack.c.bf16 %v2909_v34, %v2908_v44  ;;  %v1573_v46 = vld [vmem:[#allocation2 + $0x75] sm:$0xff]  ;;  %vm7973_vm8 = vmmov %vm7858_vm0  ;;  %v4464_v44 = vunpack.i.l.bf16 %v6858_v2 }
 0x213   : > { %758 = vst.msk [vmem:[#allocation3] sm:$0xff] %vm7959_vm11, %v650_v8  ;;  %v1825_v56 = vsel %vm7970_vm6, %v1573_v46, %v4444_v7  ;;  %vm7974_vm11 = vmmov %vm7858_vm0  ;;  %v2839_v7 = vld [vmem:[#allocation2 + $0x81] sm:$0xff]  ;;  %v2912_v46 = vld [vmem:[#allocation2 + $0x8b] sm:$0xff] }
 0x214   : > { %3352 = vmatmul.mubr.bf16.gmra.mrb[56].mxu1 %v3120_v53  ;;  %v1861_v38 = vpack.c.bf16 %v1826_v26, %v1825_v56  ;;  %v3088_v53 = vsel %vm7973_vm8, %v6720_v0, %v4419_v51  ;;  %v3089_v37 = vsel %vm7974_vm11, %v6713_v47, %v4420_v62  ;;  %v4430_v0 = vunpack.i.h.bf16 %v6805_v23  ;;  %vm7985_vm6 = vmmov %vm7858_vm0  ;;  %v2913_v51 = vld [vmem:[#allocation2 + $0x93] sm:$0xff] }
 0x215   : > { %4012 = vmatprep.mubr.msk.bf16.mxu1 %vm7962_vm7, %v3123_v42  ;;  %v4454_v42 = vunpack.i.l.bf16 %v6847_v50  ;;  %v4429_v47 = vunpack.i.l.bf16 %v6805_v23  ;;  %vm7977_vm7 = vmmov %vm7858_vm0  ;;  %v3127_v50 = vpack.c.bf16 %v2911_v13, %v2910_v32  ;;  %v1866_v62 = vpack.c.bf16 %v6458_v27, %v6456_v11 }
 0x216   : > { %v652_v20 = vpop.permute.xlu1 %651  ;;  %v4439_v56 = vunpack.i.l.bf16 %v6822_v4  ;;  %vm7988_vm8 = vmmov %vm7858_vm0  ;;  %v4475_v32 = vunpack.i.h.bf16 %v6879_v49  ;;  %v4474_v13 = vunpack.i.l.bf16 %v6879_v49 }
 0x217   : > { %759 = vst.msk [vmem:[#allocation3 + $0x8] sm:$0xff] %vm7963_vm9, %v652_v20  ;;  %v654_v35 = vpop.permute.xlu0 %653  ;;  %v3124_v20 = vpack.c.bf16 %v3089_v37, %v3088_v53  ;;  %vm7978_vm9 = vmmov %vm7858_vm0  ;;  %v2840_v53 = vld [vmem:[#allocation2 + $0x89] sm:$0xff]  ;;  %v2841_v37 = vld [vmem:[#allocation2 + $0x91] sm:$0xff] }
 0x218   : > { %760 = vst.msk [vmem:[#allocation3 + $0x10] sm:$0xff] %vm7966_vm3, %v654_v35  ;;  %vm7981_vm3 = vmmov %vm7858_vm0 }
 0x219   : > { %2732 = vmatmul.mubr.bf16.gmra.mrb[84].mxu0 %v1859_v39  ;;  %v1575_v39 = vld [vmem:[#allocation2 + $0x85] sm:$0xff]  ;;  %vm7989_vm11 = vmmov %vm7858_vm0 }
 0x21a   : > { %3962 = vmatprep.mubr.msk.bf16.mxu0 %vm7967_vm13, %v1862_v19  ;;  %v656_v55 = vpop.permute.xlu1 %655  ;;  %v1827_v5 = vsel %vm7979_vm1, %v1575_v39, %v4454_v42  ;;  %vm7982_vm13 = vmmov %vm7858_vm0  ;;  %v4450_v39 = vunpack.i.h.bf16 %v6845_v45 }
 0x21b   : > { %761 = vst.msk [vmem:[#allocation3 + $0x18] sm:$0xff] %vm7968_vm5, %v656_v55  ;;  %v658_v22 = vpop.permute.xlu0 %657  ;;  %v1863_v19 = vpack.c.bf16 %v1828_v15, %v1827_v5  ;;  %vm7983_vm5 = vmmov %vm7858_vm0  ;;  %v1579_v15 = vld [vmem:[#allocation2 + $0xa5] sm:$0xff] }
 0x21c   : > { %762 = vst.msk [vmem:[#allocation3 + $0x20] sm:$0xff] %vm7969_vm2, %v658_v22  ;;  %3360 = vmatmul.mubr.bf16.gmra.mrb[60].mxu1 %v3122_v1  ;;  %v3090_v34 = vsel %vm7983_vm5, %v2838_v41, %v4429_v47  ;;  %vm7984_vm2 = vmmov %vm7858_vm0  ;;  %v4465_v1 = vunpack.i.h.bf16 %v6858_v2  ;;  %v3129_v2 = vpack.c.bf16 %v2913_v51, %v2912_v46  ;;  %v2915_v47 = vld [vmem:[#allocation2 + $0xa3] sm:$0xff]  ;;  %v2916_v46 = vld [vmem:[#allocation2 + $0xab] sm:$0xff] }
 0x21d   : > { %4013 = vmatprep.mubr.msk.bf16.mxu1 %vm7972_vm10, %v3125_v21  ;;  %v3091_v55 = vsel %vm7984_vm2, %v2839_v7, %v4430_v0  ;;  %vm7987_vm10 = vmmov %vm7858_vm0  ;;  %v2914_v0 = vld [vmem:[#allocation2 + $0x9b] sm:$0xff]  ;;  %v8005_v51 = vld [vmem:[#allocation13_spill] sm:$0xff] }
 0x21e   : > { %v660_v58 = vpop.permute.xlu1 %659  ;;  %v3126_v21 = vpack.c.bf16 %v3091_v55, %v3090_v34  ;;  %vm7994_vm1 = vmmov %vm7858_vm0  ;;  %v3131_v49 = vpack.c.bf16 %v2915_v47, %v2914_v0  ;;  %v8018_v0 = vld [vmem:[#allocation12_spill] sm:$0xff] }
 0x21f   : > { %763 = vst.msk [vmem:[#allocation3 + $0x28] sm:$0xff] %vm7858_vm0, %v660_v58  ;;  %v662_v8 = vpop.permute.xlu0 %661  ;;  %v1577_v58 = vld [vmem:[#allocation2 + $0x95] sm:$0xff]  ;;  %vm7999_vm5 = vmmov %vm7858_vm0 }
 0x220   : > { %764 = vst.msk [vmem:[#allocation3 + $0x30] sm:$0xff] %vm7975_vm14, %v662_v8  ;;  %v1578_v8 = vld [vmem:[#allocation2 + $0x9d] sm:$0xff]  ;;  %v1829_v11 = vsel %vm7988_vm8, %v1577_v58, %v4464_v44  ;;  %vm7990_vm14 = vmmov %vm7858_vm0  ;;  %v4485_v44 = vunpack.i.h.bf16 %v6890_v40  ;;  %v4459_v58 = vunpack.i.l.bf16 %v6856_v18 }
 0x221   : > { %2740 = vmatmul.mubr.bf16.gmra.mrb[88].mxu0 %v1861_v38  ;;  %v1830_v27 = vsel %vm7989_vm11, %v1578_v8, %v4465_v1  ;;  %vm8000_vm2 = vmmov %vm7858_vm0 }
 0x222   : > { %3963 = vmatprep.mubr.msk.bf16.mxu0 %vm7976_vm4, %v1864_v24  ;;  %v664_v43 = vpop.permute.xlu1 %663  ;;  %vm7991_vm4 = vmmov %vm7858_vm0  ;;  %v1865_v10 = vpack.c.bf16 %v1830_v27, %v1829_v11  ;;  %v1581_v11 = vld [vmem:[#allocation2 + $0xb5] sm:$0xff]  ;;  %v1582_v27 = vld [vmem:[#allocation2 + $0xbd] sm:$0xff] }
 0x223   : > { %765 = vst.msk [vmem:[#allocation3 + $0x38] sm:$0xff] %vm7977_vm7, %v664_v43  ;;  %v666_v35 = vpop.permute.xlu0 %665  ;;  %vm7992_vm7 = vmmov %vm7858_vm0  ;;  %v7995_v43 = vld [vmem:[#allocation16_spill] sm:$0xff] }
 0x224   : > { %766 = vst.msk [vmem:[#allocation3 + $0x40] sm:$0xff] %vm7978_vm9, %v666_v35  ;;  %3368 = vmatmul.mubr.bf16.gmra.mrb[64].mxu1 %v3124_v20  ;;  %v3092_v42 = vsel %vm7992_vm7, %v2840_v53, %v4439_v56  ;;  %vm7993_vm9 = vmmov %vm7858_vm0  ;;  %v1868_v20 = vpack.c.bf16 %v7995_v43, %v6495_v33  ;;  %v1831_v33 = vsel %vm7999_vm5, %v1579_v15, %v4474_v13  ;;  %v4495_v13 = vunpack.i.h.bf16 %v6901_v31 }
 0x225   : > { %4014 = vmatprep.mubr.msk.bf16.mxu1 %vm7981_vm3, %v3127_v50  ;;  %v3093_v24 = vsel %vm7993_vm9, %v2841_v37, %v4440_v48  ;;  %vm7997_vm3 = vmmov %vm7858_vm0  ;;  %v2917_v48 = vld [vmem:[#allocation2 + $0xb3] sm:$0xff]  ;;  %v4494_v43 = vunpack.i.l.bf16 %v6901_v31 }
 0x226   : > { %v668_v28 = vpop.permute.xlu1 %667  ;;  %v3128_v50 = vpack.c.bf16 %v3093_v24, %v3092_v42  ;;  %vm8004_vm8 = vmmov %vm7858_vm0 }
 0x227   : > { %767 = vst.msk [vmem:[#allocation3 + $0x48] sm:$0xff] %vm7982_vm13, %v668_v28  ;;  %v670_v23 = vpop.permute.xlu0 %669  ;;  %v1580_v28 = vld [vmem:[#allocation2 + $0xad] sm:$0xff]  ;;  %vm7998_vm13 = vmmov %vm7858_vm0 }
 0x228   : > { %768 = vst.msk [vmem:[#allocation3 + $0x50] sm:$0xff] %vm7985_vm6, %v670_v23  ;;  %v1832_v41 = vsel %vm8000_vm2, %v1580_v28, %v4475_v32  ;;  %vm8001_vm6 = vmmov %vm7858_vm0  ;;  %v2842_v23 = vld [vmem:[#allocation2 + $0x99] sm:$0xff]  ;;  %v1583_v28 = vld [vmem:[#allocation2 + $0xc5] sm:$0xff] }
 0x229   : > { %2748 = vmatmul.mubr.bf16.gmra.mrb[92].mxu0 %v1863_v19  ;;  %v2843_v19 = vld [vmem:[#allocation2 + $0xa1] sm:$0xff]  ;;  %v1867_v34 = vpack.c.bf16 %v1832_v41, %v1831_v33  ;;  %vm8007_vm11 = vmmov %vm7858_vm0  ;;  %v1584_v33 = vld [vmem:[#allocation2 + $0xcd] sm:$0xff] }
 0x22a   : > { %3964 = vmatprep.mubr.msk.bf16.mxu0 %vm7986_vm15, %v1866_v62  ;;  %v672_v22 = vpop.permute.xlu1 %671  ;;  %vm8002_vm15 = vmmov %vm7858_vm0  ;;  %v3095_v1 = vsel %vm7858_vm0, %v2843_v19, %v4450_v39  ;;  %v4484_v62 = vunpack.i.l.bf16 %v6890_v40  ;;  %v3133_v40 = vpack.c.bf16 %v2917_v48, %v2916_v46  ;;  %v2846_v19 = vld [vmem:[#allocation2 + $0xb9] sm:$0xff]  ;;  %v2920_v46 = vld [vmem:[#allocation2 + $0xcb] sm:$0xff] }
 0x22b   : > { %769 = vst.msk [vmem:[#allocation3 + $0x58] sm:$0xff] %vm7987_vm10, %v672_v22  ;;  %v674_v26 = vpop.permute.xlu0 %673  ;;  %vm8003_vm10 = vmmov %vm7858_vm0  ;;  %v8006_v22 = vld [vmem:[#allocation10_spill] sm:$0xff] }
 0x22c   : > { %770 = vst.msk [vmem:[#allocation3 + $0x60] sm:$0xff] %vm7858_vm0, %v674_v26  ;;  %3376 = vmatmul.mubr.bf16.gmra.mrb[68].mxu1 %v3126_v21  ;;  %v3094_v55 = vsel %vm8003_vm10, %v2842_v23, %v4449_v14  ;;  %v1870_v21 = vpack.c.bf16 %v8006_v22, %v8005_v51  ;;  %vm8010_vm7 = vmmov %vm7858_vm0  ;;  %v8028_v51 = vld [vmem:[#allocation14_spill] sm:$0xff] }
 0x22d   : > { %4015 = vmatprep.mubr.msk.bf16.mxu1 %vm7990_vm14, %v3129_v2  ;;  %v3130_v26 = vpack.c.bf16 %v3095_v1, %v3094_v55  ;;  %v4460_v2 = vunpack.i.h.bf16 %v6856_v18  ;;  %vm8008_vm14 = vmmov %vm7858_vm0  ;;  %v8029_v22 = vld [vmem:[#allocation18_spill] sm:$0xff] }
 0x22e   : > { %v676_v38 = vpop.permute.xlu1 %675  ;;  %vm8011_vm9 = vmmov %vm7858_vm0  ;;  %v2921_v48 = vld [vmem:[#allocation2 + $0xd3] sm:$0xff] }
 0x22f   : > { %771 = vst.msk [vmem:[#allocation3 + $0x68] sm:$0xff] %vm7991_vm4, %v676_v38  ;;  %v678_v4 = vpop.permute.xlu0 %677  ;;  %vm8009_vm4 = vmmov %vm7858_vm0  ;;  %v1833_v38 = vsel %vm8010_vm7, %v1581_v11, %v4484_v62  ;;  %v1834_v53 = vsel %vm8011_vm9, %v1582_v27, %v4485_v44  ;;  %v4505_v44 = vunpack.i.h.bf16 %v6910_v3  ;;  %v4504_v62 = vunpack.i.l.bf16 %v6910_v3  ;;  %v1586_v11 = vld [vmem:[#allocation2 + $0xdd] sm:$0xff] }
 0x230   : > { %772 = vst.msk [vmem:[#allocation3 + $0x70] sm:$0xff] %vm7994_vm1, %v678_v4  ;;  %vm8012_vm1 = vmmov %vm7858_vm0  ;;  %v2844_v4 = vld [vmem:[#allocation2 + $0xa9] sm:$0xff]  ;;  %v1869_v42 = vpack.c.bf16 %v1834_v53, %v1833_v38  ;;  %v3137_v3 = vpack.c.bf16 %v2921_v48, %v2920_v46  ;;  %v4500_v46 = vunpack.i.h.bf16 %v6908_v36  ;;  %v4499_v48 = vunpack.i.l.bf16 %v6908_v36 }
 0x231   : > { %2756 = vmatmul.mubr.bf16.gmra.mrb[96].mxu0 %v1865_v10  ;;  %v2845_v10 = vld [vmem:[#allocation2 + $0xb1] sm:$0xff]  ;;  %vm8016_vm5 = vmmov %vm7858_vm0  ;;  %v4535_v36 = vunpack.i.h.bf16 %v6945_v6 }
 0x232   : > { %3965 = vmatprep.mubr.msk.bf16.mxu0 %vm7996_vm12, %v1868_v20  ;;  %v680_v35 = vpop.permute.xlu1 %679  ;;  %vm8013_vm12 = vmmov %vm7858_vm0  ;;  %v8017_v20 = vld [vmem:[#allocation17_spill] sm:$0xff] }
 0x233   : > { %773 = vst.msk [vmem:[#allocation3 + $0x78] sm:$0xff] %vm7997_vm3, %v680_v35  ;;  %v682_v5 = vpop.permute.xlu0 %681  ;;  %vm8014_vm3 = vmmov %vm7858_vm0  ;;  %v1872_v47 = vpack.c.bf16 %v8018_v0, %v8017_v20  ;;  %v2918_v35 = vld [vmem:[#allocation2 + $0xbb] sm:$0xff] }
 0x234   : > { %774 = vst.msk [vmem:[#allocation3 + $0x80] sm:$0xff] %vm7998_vm13, %v682_v5  ;;  %3384 = vmatmul.mubr.bf16.gmra.mrb[72].mxu1 %v3128_v50  ;;  %v3096_v24 = vsel %vm8014_vm3, %v2844_v4, %v4459_v58  ;;  %vm8015_vm13 = vmmov %vm7858_vm0  ;;  %v2919_v50 = vld [vmem:[#allocation2 + $0xc3] sm:$0xff]  ;;  %v4470_v5 = vunpack.i.h.bf16 %v6877_v17  ;;  %v4479_v58 = vunpack.i.l.bf16 %v6888_v30  ;;  %v2849_v4 = vld [vmem:[#allocation2 + $0xd1] sm:$0xff] }
 0x235   : > { %4016 = vmatprep.mubr.msk.bf16.mxu1 %vm8001_vm6, %v3131_v49  ;;  %v3097_v32 = vsel %vm8015_vm13, %v2845_v10, %v4460_v2  ;;  %vm8019_vm2 = vmmov %vm7858_vm0  ;;  %v4469_v49 = vunpack.i.l.bf16 %v6877_v17  ;;  %v3135_v31 = vpack.c.bf16 %v2919_v50, %v2918_v35  ;;  %v4480_v2 = vunpack.i.h.bf16 %v6888_v30  ;;  %v2922_v0 = vld [vmem:[#allocation2 + $0xdb] sm:$0xff] }
 0x236   : > { %v684_v7 = vpop.permute.xlu1 %683  ;;  %v3132_v14 = vpack.c.bf16 %v3097_v32, %v3096_v24  ;;  %vm8020_vm6 = vmmov %vm7858_vm0  ;;  %v4515_v24 = vunpack.i.h.bf16 %v6923_v60  ;;  %v4514_v32 = vunpack.i.l.bf16 %v6923_v60 }
 0x237   : > { %775 = vst.msk [vmem:[#allocation3 + $0x88] sm:$0xff] %vm8002_vm15, %v684_v7  ;;  %v686_v45 = vpop.permute.xlu0 %685  ;;  %vm8021_vm15 = vmmov %vm7858_vm0  ;;  %v1836_v7 = vsel %vm7858_vm0, %v1584_v33, %v4495_v13  ;;  %v8040_v13 = vld [vmem:[#allocation15_spill] sm:$0xff] }
 0x238   : > { %776 = vst.msk [vmem:[#allocation3 + $0x90] sm:$0xff] %vm8004_vm8, %v686_v45  ;;  %vm8022_vm10 = vmmov %vm7858_vm0  ;;  %v2847_v45 = vld [vmem:[#allocation2 + $0xc1] sm:$0xff] }
 0x239   : > { %2764 = vmatmul.mubr.bf16.gmra.mrb[100].mxu0 %v1867_v34  ;;  %v1835_v41 = vsel %vm8022_vm10, %v1583_v28, %v4494_v43  ;;  %vm8023_vm8 = vmmov %vm7858_vm0  ;;  %v8041_v43 = vld [vmem:[#allocation7_spill] sm:$0xff] }
 0x23a   : > { %3966 = vmatprep.mubr.msk.bf16.mxu0 %vm8007_vm11, %v1870_v21  ;;  %v688_v56 = vpop.permute.xlu1 %687  ;;  %vm8024_vm11 = vmmov %vm7858_vm0  ;;  %v1871_v34 = vpack.c.bf16 %v1836_v7, %v1835_v41  ;;  %v1874_v21 = vpack.c.bf16 %v8029_v22, %v8028_v51  ;;  %v1876_v20 = vpack.c.bf16 %v8041_v43, %v8040_v13  ;;  %v2850_v41 = vld [vmem:[#allocation2 + $0xd9] sm:$0xff]  ;;  %v2851_v7 = vld [vmem:[#allocation2 + $0xe1] sm:$0xff] }
 0x23b   : > { %777 = vst.msk [vmem:[#allocation3 + $0x98] sm:$0xff] %vm8008_vm14, %v688_v56  ;;  %v690_v8 = vpop.permute.xlu0 %689  ;;  %vm8025_vm14 = vmmov %vm7858_vm0  ;;  %v2925_v51 = vld [vmem:[#allocation2 + $0xf3] sm:$0xff] }
 0x23c   : > { %778 = vst.msk [vmem:[#allocation3 + $0xa0] sm:$0xff] %vm8009_vm4, %v690_v8  ;;  %3392 = vmatmul.mubr.bf16.gmra.mrb[76].mxu1 %v3130_v26  ;;  %v3098_v55 = vsel %vm8025_vm14, %v2846_v19, %v4469_v49  ;;  %vm8026_vm4 = vmmov %vm7858_vm0  ;;  %v1587_v49 = vld [vmem:[#allocation2 + $0xe5] sm:$0xff] }
 0x23d   : > { %4017 = vmatprep.mubr.msk.bf16.mxu1 %vm8012_vm1, %v3133_v40  ;;  %v3099_v1 = vsel %vm8026_vm4, %v2847_v45, %v4470_v5  ;;  %vm8027_vm7 = vmmov %vm7858_vm0  ;;  %v1585_v40 = vld [vmem:[#allocation2 + $0xd5] sm:$0xff] }
 0x23e   : > { %v692_v37 = vpop.permute.xlu1 %691  ;;  %vm8030_vm9 = vmmov %vm7858_vm0  ;;  %v3134_v26 = vpack.c.bf16 %v3099_v1, %v3098_v55  ;;  %v8051_v55 = vld [vmem:[#allocation9_spill] sm:$0xff]  ;;  %v8052_v1 = vld [vmem:[#allocation19_spill] sm:$0xff] }
 0x23f   : > { %779 = vst.msk [vmem:[#allocation3 + $0xa8] sm:$0xff] %vm8013_vm12, %v692_v37  ;;  %v694_v18 = vpop.permute.xlu0 %693  ;;  %vm8031_vm1 = vmmov %vm7858_vm0  ;;  %v2848_v37 = vld [vmem:[#allocation2 + $0xc9] sm:$0xff] }
 0x240   : > { %780 = vst.msk [vmem:[#allocation3 + $0xb0] sm:$0xff] %vm8016_vm5, %v694_v18  ;;  %vm8032_vm12 = vmmov %vm7858_vm0 }
 0x241   : > { %2772 = vmatmul.mubr.bf16.gmra.mrb[104].mxu0 %v1869_v42  ;;  %vm8033_vm3 = vmmov %vm7858_vm0 }
 0x242   : > { %3967 = vmatprep.mubr.msk.bf16.mxu0 %vm8019_vm2, %v1872_v47  ;;  %v696_v39 = vpop.permute.xlu1 %695  ;;  %v1837_v27 = vsel %vm8033_vm3, %v1585_v40, %v4504_v62  ;;  %vm8034_vm13 = vmmov %vm7858_vm0  ;;  %v2923_v47 = vld [vmem:[#allocation2 + $0xe3] sm:$0xff]  ;;  %v2924_v62 = vld [vmem:[#allocation2 + $0xeb] sm:$0xff] }
 0x243   : > { %781 = vst.msk [vmem:[#allocation3 + $0xb8] sm:$0xff] %vm8020_vm6, %v696_v39  ;;  %v698_v15 = vpop.permute.xlu0 %697  ;;  %v1838_v38 = vsel %vm8034_vm13, %v1586_v11, %v4505_v44  ;;  %vm8035_vm5 = vmmov %vm7858_vm0  ;;  %v4490_v39 = vunpack.i.h.bf16 %v6899_v16  ;;  %v3139_v60 = vpack.c.bf16 %v2923_v47, %v2922_v0  ;;  %v1878_v44 = vpack.c.bf16 %v8052_v1, %v8051_v55 }
 0x244   : > { %782 = vst.msk [vmem:[#allocation3 + $0xc0] sm:$0xff] %vm8021_vm15, %v698_v15  ;;  %3400 = vmatmul.mubr.bf16.gmra.mrb[80].mxu1 %v3132_v14  ;;  %vm8036_vm2 = vmmov %vm7858_vm0  ;;  %v1873_v10 = vpack.c.bf16 %v1838_v38, %v1837_v27  ;;  %v4489_v14 = vunpack.i.l.bf16 %v6899_v16  ;;  %v1588_v15 = vld [vmem:[#allocation2 + $0xed] sm:$0xff]  ;;  %v4534_v38 = vunpack.i.l.bf16 %v6945_v6  ;;  %v4545_v47 = vunpack.i.h.bf16 %v6954_v9 }
 0x245   : > { %4018 = vmatprep.mubr.msk.bf16.mxu1 %vm8023_vm8, %v3135_v31  ;;  %vm8037_vm6 = vmmov %vm7858_vm0 }
 0x246   : > { %v700_v23 = vpop.permute.xlu1 %699  ;;  %v3100_v18 = vsel %vm8037_vm6, %v2848_v37, %v4479_v58  ;;  %vm8038_vm15 = vmmov %vm7858_vm0  ;;  %v2926_v37 = vld [vmem:[#allocation2 + $0xfb] sm:$0xff] }
 0x247   : > { %783 = vst.msk [vmem:[#allocation3 + $0xc8] sm:$0xff] %vm8024_vm11, %v700_v23  ;;  %v702_v17 = vpop.permute.xlu0 %701  ;;  %v3101_v42 = vsel %vm8038_vm15, %v2849_v4, %v4480_v2  ;;  %vm8039_vm10 = vmmov %vm7858_vm0  ;;  %v2927_v4 = vld [vmem:[#allocation2 + $0x103] sm:$0xff] }
 0x248   : > { %784 = vst.msk [vmem:[#allocation3 + $0xd0] sm:$0xff] %vm8027_vm7, %v702_v17  ;;  %v3136_v50 = vpack.c.bf16 %v3101_v42, %v3100_v18  ;;  %vm8042_vm8 = vmmov %vm7858_vm0  ;;  %v4525_v17 = vunpack.i.h.bf16 %v6932_v25  ;;  %v4509_v18 = vunpack.i.l.bf16 %v6921_v61  ;;  %v3143_v42 = vpack.c.bf16 %v2927_v4, %v2926_v37 }
 0x249   : > { %2780 = vmatmul.mubr.bf16.gmra.mrb[108].mxu0 %v1871_v34  ;;  %vm8043_vm11 = vmmov %vm7858_vm0  ;;  %v4524_v34 = vunpack.i.l.bf16 %v6932_v25  ;;  %v1589_v25 = vld [vmem:[#allocation2 + $0xf5] sm:$0xff]  ;;  %v4550_v37 = vunpack.i.h.bf16 %v6965_v54 }
 0x24a   : > { %3968 = vmatprep.mubr.msk.bf16.mxu0 %vm8030_vm9, %v1874_v21  ;;  %v704_v56 = vpop.permute.xlu1 %703  ;;  %vm8044_vm14 = vmmov %vm7858_vm0 }
 0x24b   : > { %785 = vst.msk [vmem:[#allocation3 + $0xd8] sm:$0xff] %vm8031_vm1, %v704_v56  ;;  %v706_v8 = vpop.permute.xlu0 %705  ;;  %v1839_v31 = vsel %vm8044_vm14, %v1587_v49, %v4514_v32  ;;  %vm8045_vm4 = vmmov %vm7858_vm0  ;;  %v3141_v56 = vpack.c.bf16 %v2925_v51, %v2924_v62  ;;  %v1592_v32 = vld [vmem:[#allocation2 + $0x10d] sm:$0xff]  ;;  %v4519_v49 = vunpack.i.l.bf16 %v6930_v12  ;;  %v8079_v51 = vld [vmem:[#allocation23_spill] sm:$0xff] }
 0x24c   : > { %786 = vst.msk [vmem:[#allocation3 + $0xe0] sm:$0xff] %vm8032_vm12, %v706_v8  ;;  %3408 = vmatmul.mubr.bf16.gmra.mrb[84].mxu1 %v3134_v26  ;;  %v1840_v28 = vsel %vm8045_vm4, %v1588_v15, %v4515_v24  ;;  %vm8046_vm7 = vmmov %vm7858_vm0  ;;  %v1590_v26 = vld [vmem:[#allocation2 + $0xfd] sm:$0xff]  ;;  %v2852_v8 = vld [vmem:[#allocation2 + $0xe9] sm:$0xff] }
 0x24d   : > { %4019 = vmatprep.mubr.msk.bf16.mxu1 %vm8035_vm5, %v3137_v3  ;;  %vm8047_vm9 = vmmov %vm7858_vm0  ;;  %v1875_v23 = vpack.c.bf16 %v1840_v28, %v1839_v31  ;;  %v2853_v3 = vld [vmem:[#allocation2 + $0xf1] sm:$0xff]  ;;  %v1591_v24 = vld [vmem:[#allocation2 + $0x105] sm:$0xff] }
 0x24e   : > { %v708_v53 = vpop.permute.xlu1 %707  ;;  %vm8048_vm1 = vmmov %vm7858_vm0  ;;  %v3105_v27 = vsel %vm7858_vm0, %v2853_v3, %v4500_v46  ;;  %v1593_v31 = vld [vmem:[#allocation2 + $0x115] sm:$0xff]  ;;  %v1594_v28 = vld [vmem:[#allocation2 + $0x11d] sm:$0xff] }
 0x24f   : > { %787 = vst.msk [vmem:[#allocation3 + $0xe8] sm:$0xff] %vm8036_vm2, %v708_v53  ;;  %v710_v30 = vpop.permute.xlu0 %709  ;;  %v3102_v19 = vsel %vm8048_vm1, %v2850_v41, %v4489_v14  ;;  %vm8049_vm12 = vmmov %vm7858_vm0  ;;  %v1880_v53 = vpack.c.bf16 %v6828_v57, %v6826_v63  ;;  %v8063_v57 = vld [vmem:[#allocation11_spill] sm:$0xff]  ;;  %v8072_v41 = vld [vmem:[#allocation20_spill] sm:$0xff] }
 0x250   : > { %788 = vst.msk [vmem:[#allocation3 + $0xf0] sm:$0xff] %vm8039_vm10, %v710_v30  ;;  %v3103_v45 = vsel %vm8049_vm12, %v2851_v7, %v4490_v39  ;;  %vm8050_vm3 = vmmov %vm7858_vm0  ;;  %v2928_v39 = vld [vmem:[#allocation2 + $0x10b] sm:$0xff]  ;;  %v2929_v14 = vld [vmem:[#allocation2 + $0x113] sm:$0xff] }
 0x251   : > { %2788 = vmatmul.mubr.bf16.gmra.mrb[112].mxu0 %v1873_v10  ;;  %vm8053_vm13 = vmmov %vm7858_vm0  ;;  %v3138_v21 = vpack.c.bf16 %v3103_v45, %v3102_v19  ;;  %v4510_v10 = vunpack.i.h.bf16 %v6921_v61  ;;  %v4544_v61 = vunpack.i.l.bf16 %v6954_v9  ;;  %v3145_v15 = vpack.c.bf16 %v2929_v14, %v2928_v39  ;;  %v2930_v19 = vld [vmem:[#allocation2 + $0x11b] sm:$0xff]  ;;  %v2931_v45 = vld [vmem:[#allocation2 + $0x123] sm:$0xff] }
 0x252   : > { %3969 = vmatprep.mubr.msk.bf16.mxu0 %vm7858_vm0, %v1876_v20  ;;  %v712_v35 = vpop.permute.xlu1 %711  ;;  %vm8054_vm5 = vmmov %vm7858_vm0  ;;  %v8065_v20 = vld [vmem:[#allocation8_spill] sm:$0xff]  ;;  %v3147_v55 = vpack.c.bf16 %v2931_v45, %v2930_v19  ;;  %v2932_v46 = vld [vmem:[#allocation2 + $0x12b] sm:$0xff] }
 0x253   : > { %789 = vst.msk [vmem:[#allocation3 + $0xf8] sm:$0xff] %vm8042_vm8, %v712_v35  ;;  %v714_v5 = vpop.permute.xlu0 %713  ;;  %vm8055_vm2 = vmmov %vm7858_vm0  ;;  %v8067_v35 = vld [vmem:[#allocation24_spill] sm:$0xff] }
 0x254   : > { %790 = vst.msk [vmem:[#allocation3 + $0x100] sm:$0xff] %vm8043_vm11, %v714_v5  ;;  %3416 = vmatmul.mubr.bf16.gmra.mrb[88].mxu1 %v3136_v50  ;;  %v1841_v2 = vsel %vm8055_vm2, %v1589_v25, %v4524_v34  ;;  %vm8056_vm6 = vmmov %vm7858_vm0  ;;  %v1882_v50 = vpack.c.bf16 %v8067_v35, %v6860_v29  ;;  %v4529_v34 = vunpack.i.l.bf16 %v6943_v52  ;;  %v2935_v3 = vld [vmem:[#allocation2 + $0x143] sm:$0xff] }
 0x255   : > { %4020 = vmatprep.mubr.msk.bf16.mxu1 %vm8046_vm7, %v3139_v60  ;;  %v1842_v58 = vsel %vm8056_vm6, %v1590_v26, %v4525_v17  ;;  %vm8057_vm15 = vmmov %vm7858_vm0  ;;  %v4520_v60 = vunpack.i.h.bf16 %v6930_v12  ;;  %v4530_v17 = vunpack.i.h.bf16 %v6943_v52  ;;  %v4540_v52 = vunpack.i.h.bf16 %v6952_v59 }
 0x256   : > { %v716_v33 = vpop.permute.xlu1 %715  ;;  %v1877_v40 = vpack.c.bf16 %v1842_v58, %v1841_v2  ;;  %vm8058_vm10 = vmmov %vm7858_vm0  ;;  %v4539_v2 = vunpack.i.l.bf16 %v6952_v59  ;;  %v4549_v59 = vunpack.i.l.bf16 %v6965_v54 }
 0x257   : > { %791 = vst.msk [vmem:[#allocation3 + $0x108] sm:$0xff] %vm8047_vm9, %v716_v33  ;;  %v718_v16 = vpop.permute.xlu0 %717  ;;  %v3104_v11 = vsel %vm8058_vm10, %v2852_v8, %v4499_v48  ;;  %vm8059_vm8 = vmmov %vm7858_vm0  ;;  %v2933_v48 = vld [vmem:[#allocation2 + $0x133] sm:$0xff]  ;;  %v2934_v8 = vld [vmem:[#allocation2 + $0x13b] sm:$0xff] }
 0x258   : > { %792 = vst.msk [vmem:[#allocation3 + $0x110] sm:$0xff] %vm8050_vm3, %v718_v16  ;;  %v3140_v30 = vpack.c.bf16 %v3105_v27, %v3104_v11  ;;  %vm8060_vm11 = vmmov %vm7858_vm0  ;;  %v8074_v16 = vld [vmem:[#allocation21_spill] sm:$0xff]  ;;  %v3149_v58 = vpack.c.bf16 %v2933_v48, %v2932_v46 }
 0x259   : > { %2796 = vmatmul.mubr.bf16.gmra.mrb[116].mxu0 %v1875_v23  ;;  %v1843_v13 = vsel %vm8060_vm11, %v1591_v24, %v4534_v38  ;;  %vm8061_vm14 = vmmov %vm7858_vm0  ;;  %v8082_v11 = vld [vmem:[#allocation25_spill] sm:$0xff] }
 0x25a   : > { %3970 = vmatprep.mubr.msk.bf16.mxu0 %vm8053_vm13, %v1878_v44  ;;  %v720_v22 = vpop.permute.xlu1 %719  ;;  %v1844_v6 = vsel %vm8061_vm14, %v1592_v32, %v4535_v36  ;;  %vm8062_vm4 = vmmov %vm7858_vm0  ;;  %v8077_v44 = vld [vmem:[#allocation22_spill] sm:$0xff]  ;;  %v2863_v24 = vld [vmem:[#allocation2 + $0x141] sm:$0xff] }
 0x25b   : > { %793 = vst.msk [vmem:[#allocation3 + $0x118] sm:$0xff] %vm8054_vm5, %v720_v22  ;;  %v1879_v63 = vpack.c.bf16 %v1844_v6, %v1843_v13  ;;  %vm8064_vm7 = vmmov %vm7858_vm0  ;;  %v8084_v36 = vld [vmem:[#allocation26_spill] sm:$0xff] }
 0x25c   : > { %3424 = vmatmul.mubr.bf16.gmra.mrb[92].mxu1 %v3138_v21  ;;  %v3106_v43 = vsel %vm8064_vm7, %v8063_v57, %v4509_v18  ;;  %vm8066_vm9 = vmmov %vm7858_vm0 }
 0x25d   : > { %4021 = vmatprep.mubr.msk.bf16.mxu1 %vm8057_vm15, %v3141_v56  ;;  %v3107_v0 = vsel %vm8066_vm9, %v8065_v20, %v4510_v10  ;;  %vm8068_vm1 = vmmov %vm7858_vm0 }
 0x25e   : > { %v3142_v5 = vpack.c.bf16 %v3107_v0, %v3106_v43  ;;  %vm8069_vm12 = vmmov %vm7858_vm0 }
 0x25f   : > { %v1845_v33 = vsel %vm8069_vm12, %v1593_v31, %v4544_v61  ;;  %vm8070_vm3 = vmmov %vm7858_vm0 }
 0x260   : > { %v1846_v9 = vsel %vm8070_vm3, %v1594_v28, %v4545_v47  ;;  %vm8071_vm13 = vmmov %vm7858_vm0  ;;  %vm3706_vm3 = vcmask 523266  }
 0x261   : > { %2804 = vmatmul.mubr.bf16.gmra.mrb[120].mxu0 %v1877_v40  ;;  %v1881_v29 = vpack.c.bf16 %v1846_v9, %v1845_v33  ;;  %vm8073_vm5 = vmmov %vm7858_vm0 }
 0x262   : > { %3971 = vmatprep.mubr.msk.bf16.mxu0 %vm8059_vm8, %v1880_v53  ;;  %v3108_v7 = vsel %vm8073_vm5, %v8072_v41, %v4519_v49  ;;  %vm8075_vm2 = vmmov %vm7858_vm0  ;;  %vm3709_vm5 = vcmask 517120  }
 0x263   : > { %v3109_v23 = vsel %vm8075_vm2, %v8074_v16, %v4520_v60  ;;  %vm8076_vm6 = vmmov %vm7858_vm0  ;;  %vm3712_vm2 = vcmask 523268  }
 0x264   : > { %3432 = vmatmul.mubr.bf16.gmra.mrb[96].mxu1 %v3140_v30  ;;  %v3144_v12 = vpack.c.bf16 %v3109_v23, %v3108_v7  ;;  %vm8078_vm15 = vmmov %vm7858_vm0  ;;  %v3151_v30 = vpack.c.bf16 %v2935_v3, %v2934_v8 }
 0x265   : > { %4022 = vmatprep.mubr.msk.bf16.mxu1 %vm8062_vm4, %v3143_v42  ;;  %v3110_v62 = vsel %vm8078_vm15, %v8077_v44, %v4529_v34  ;;  %vm8080_vm10 = vmmov %vm7858_vm0  ;;  %vm1557_vm0 = vcmask 521216   ;;  %v2862_v42 = vld [vmem:[#allocation2 + $0x139] sm:$0xff]  ;;  %vm3715_vm15 = vcmask 519168  }
 0x266   : > { %v3111_v22 = vsel %vm8080_vm10, %v8079_v51, %v4530_v17  ;;  %vm8081_vm8 = vmmov %vm8068_vm1  ;;  %vm3718_vm10 = vcmask 523270  }
 0x267   : > { %v3146_v26 = vpack.c.bf16 %v3111_v22, %v3110_v62  ;;  %vm8083_vm11 = vmmov %vm8068_vm1 }
 0x268   : > { %v3112_v27 = vsel %vm8083_vm11, %v8082_v11, %v4539_v2  ;;  %vm8085_vm14 = vmmov %vm8068_vm1 }
 0x269   : > { %2812 = vmatmul.mubr.bf16.gmra.mrb[124].mxu0 %v1879_v63  ;;  %v3113_v38 = vsel %vm8085_vm14, %v8084_v36, %v4540_v52  ;;  %vm8086_vm4 = vmmov %vm8068_vm1 }
 0x26a   : > { %3972 = vmatprep.mubr.msk.bf16.mxu0 %vm8068_vm1, %v1882_v50  ;;  %v3148_v18 = vpack.c.bf16 %v3113_v38, %v3112_v27  ;;  %vm8087_vm7 = vmmov %vm8068_vm1 }
 0x26b   : > { %v3114_v32 = vsel %vm8087_vm7, %v2862_v42, %v4549_v59  ;;  %vm8088_vm9 = vmmov %vm8068_vm1 }
 0x26c   : > { %3440 = vmatmul.mubr.bf16.gmra.mrb[100].mxu1 %v3142_v5  ;;  %v3115_v13 = vsel %vm8088_vm9, %v2863_v24, %v4550_v37  ;;  %vm8089_vm12 = vmmov %vm8068_vm1 }
 0x26d   : > { %4023 = vmatprep.mubr.msk.bf16.mxu1 %vm8071_vm13, %v3145_v15  ;;  %v3150_v57 = vpack.c.bf16 %v3115_v13, %v3114_v32  ;;  %vm8090_vm13 = vmmov %vm8068_vm1 }
 0x26e   : > { %vm8093_vm11 = vmmov %vm8068_vm1 }
 0x26f   : > { %vm8094_vm14 = vmmov %vm8068_vm1 }
 0x270   : > { %vm8096_vm7 = vmmov %vm8068_vm1 }
 0x271   : > { %2820 = vmatmul.mubr.bf16.gmra.mrb[128].mxu0 %v1881_v29  ;;  %vm8097_vm9 = vmmov %vm8068_vm1 }
 0x274   : > { %3448 = vmatmul.mubr.bf16.gmra.mrb[104].mxu1 %v3144_v12 }
 0x275   : > { %4024 = vmatprep.mubr.msk.bf16.mxu1 %vm8076_vm6, %v3147_v55  ;;  %vm8091_vm6 = vmmov %vm8068_vm1 }
 0x276   : > { %v7153_v1 = vpop.f32.mrb[0].mxu1 }
 0x277   : > { %v2432_v21 = vpop.f32.mrb[1].mxu1 }
 0x278   : > { %v7159_v56 = vpop.f32.mrb[2].mxu1 }
 0x279   : > { %v2435_v25 = vpop.f32.mrb[3].mxu1 }
 0x27c   : > { %3456 = vmatmul.mubr.bf16.gmra.mrb[108].mxu1 %v3146_v26 }
 0x27d   : > { %4025 = vmatprep.mubr.msk.bf16.mxu1 %vm8081_vm8, %v3149_v58  ;;  %vm8092_vm8 = vmmov %vm8068_vm1 }
 0x27e   : > { %v7164_v40 = vpop.f32.mrb[4].mxu1 }
 0x27f   : > { %v2440_v53 = vpop.f32.mrb[5].mxu1 }
 0x280   : > { %v7172_v4 = vpop.f32.mrb[6].mxu1 }
 0x281   : > { %v2443_v10 = vpop.f32.mrb[7].mxu1 }
 0x284   : > { %3464 = vmatmul.mubr.bf16.gmra.mrb[112].mxu1 %v3148_v18 }
 0x285   : > { %4026 = vmatprep.mubr.msk.bf16.mxu1 %vm8086_vm4, %v3151_v30  ;;  %vm8095_vm4 = vmmov %vm8068_vm1 }
 0x286   : > { %v7177_v6 = vpop.f32.mrb[8].mxu1 }
 0x287   : > { %v2448_v63 = vpop.f32.mrb[9].mxu1 }
 0x288   : > { %v7179_v43 = vpop.f32.mrb[10].mxu1 }
 0x289   : > { %v2451_v54 = vpop.f32.mrb[11].mxu1 }
 0x28b   : > { %v2382_v20 = vpop.f32.mrb[36].mxu0 }
 0x28c   : > { %v2384_v0 = vpop.f32.mrb[37].mxu0  ;;  %3472 = vmatmul.mubr.bf16.gmra.mrb[116].mxu1 %v3150_v57 }
 0x28d   : > { %v2385_v47 = vpop.f32.mrb[38].mxu0 }
 0x28e   : > { %v2387_v61 = vpop.f32.mrb[39].mxu0 }
 0x28f   : > { %v7181_v35 = vpop.f32.mrb[12].mxu1 }
 0x290   : > { %v2456_v50 = vpop.f32.mrb[13].mxu1 }
 0x291   : > { %v7183_v39 = vpop.f32.mrb[14].mxu1 }
 0x292   : > { %v2459_v14 = vpop.f32.mrb[15].mxu1 }
 0x293   : > { %v2390_v5 = vpop.f32.mrb[40].mxu0 }
 0x294   : > { %v2392_v60 = vpop.f32.mrb[41].mxu0 }
 0x295   : > { %v2393_v49 = vpop.f32.mrb[42].mxu0 }
 0x296   : > { %v2395_v15 = vpop.f32.mrb[43].mxu0 }
 0x297   : > { %v7185_v31 = vpop.f32.mrb[16].mxu1 }
 0x298   : > { %v2464_v28 = vpop.f32.mrb[17].mxu1 }
 0x299   : > { %v7187_v33 = vpop.f32.mrb[18].mxu1 }
 0x29a   : > { %v2467_v9 = vpop.f32.mrb[19].mxu1 }
 0x29b   : > { %v2398_v29 = vpop.f32.mrb[44].mxu0 }
 0x29c   : > { %v2400_v41 = vpop.f32.mrb[45].mxu0 }
 0x29d   : > { %v2401_v7 = vpop.f32.mrb[46].mxu0 }
 0x29e   : > { %v2403_v16 = vpop.f32.mrb[47].mxu0 }
 0x29f   : > { %v7189_v23 = vpop.f32.mrb[20].mxu1 }
 0x2a0   : > { %v2472_v19 = vpop.f32.mrb[21].mxu1 }
 0x2a1   : > { %v7191_v45 = vpop.f32.mrb[22].mxu1 }
 0x2a2   : > { %v2475_v12 = vpop.f32.mrb[23].mxu1 }
 0x2a3   : > { %v2406_v17 = vpop.f32.mrb[48].mxu0 }
 0x2a4   : > { %v2408_v34 = vpop.f32.mrb[49].mxu0 }
 0x2a5   : > { %v2409_v55 = vpop.f32.mrb[50].mxu0 }
 0x2a6   : > { %v2411_v44 = vpop.f32.mrb[51].mxu0 }
 0x2a7   : > { %v7193_v62 = vpop.f32.mrb[24].mxu1 }
 0x2a8   : > { %v2480_v51 = vpop.f32.mrb[25].mxu1 }
 0x2a9   : > { %v7195_v22 = vpop.f32.mrb[26].mxu1 }
 0x2aa   : > { %v2483_v21 = vpop.f32.mrb[27].mxu1 }
 0x2ab   : > { %v7197_v46 = vpop.f32.mrb[52].mxu0 }
 0x2ac   : > { %v2416_v48 = vpop.f32.mrb[53].mxu0 }
 0x2ad   : > { %v7199_v25 = vpop.f32.mrb[54].mxu0 }
 0x2ae   : > { %v2419_v26 = vpop.f32.mrb[55].mxu0 }
 0x2af   : > { %v7201_v52 = vpop.f32.mrb[28].mxu1 }
 0x2b0   : > { %v2488_v2 = vpop.f32.mrb[29].mxu1 }
 0x2b1   : > { %v7203_v58 = vpop.f32.mrb[30].mxu1 }
 0x2b2   : > { %v2491_v8 = vpop.f32.mrb[31].mxu1 }
 0x2b3   : > { %v7205_v3 = vpop.f32.mrb[56].mxu0 }
 0x2b4   : > { %v2424_v11 = vpop.f32.mrb[57].mxu0 }
 0x2b5   : > { %v7207_v27 = vpop.f32.mrb[58].mxu0 }
 0x2b6   : > { %v2427_v36 = vpop.f32.mrb[59].mxu0 }
 0x2b7   : > { %v7209_v38 = vpop.f32.mrb[32].mxu1 }
 0x2b8   : > { %v2496_v53 = vpop.f32.mrb[33].mxu1 }
 0x2b9   : > { %v7211_v37 = vpop.f32.mrb[34].mxu1 }
 0x2ba   : > { %v2499_v59 = vpop.f32.mrb[35].mxu1 }
 0x2bc   : > { %v2685_v30 = vpop.f32.mrb[60].mxu0 }
 0x2bd   : > { %v2686_v10 = vadd.f32 %v2685_v30, %v2382_v20  ;;  %v2687_v18 = vpop.f32.mrb[61].mxu0 }
 0x2be   : > { %v2688_v42 = vpop.f32.mrb[62].mxu0 }
 0x2bf   : > { %v2689_v24 = vadd.f32 %v2688_v42, %v2385_v47  ;;  %v7213_v32 = vpop.f32.mrb[36].mxu1  ;;  %v2690_v13 = vpop.f32.mrb[63].mxu0 }
 0x2c0   : > { %v2504_v63 = vpop.f32.mrb[37].mxu1 }
 0x2c1   : > { %v7215_v57 = vpop.f32.mrb[38].mxu1 }
 0x2c2   : > { %v2507_v54 = vpop.f32.mrb[39].mxu1 }
 0x2c3   : > { %v3595_v54 = vld [vmem:[#allocation3] sm:$0xff] }
 0x2c4   : > { %v2693_v0 = vpop.f32.mrb[64].mxu0 }
 0x2c5   : > { %v2694_v61 = vadd.f32 %v2693_v0, %v2390_v5  ;;  %v2695_v50 = vpop.f32.mrb[65].mxu0 }
 0x2c6   : > { %v2696_v14 = vpop.f32.mrb[66].mxu0 }
 0x2c7   : > { %v2697_v60 = vadd.f32 %v2696_v14, %v2393_v49  ;;  %v2698_v15 = vpop.f32.mrb[67].mxu0  ;;  %v7217_v28 = vpop.f32.mrb[40].mxu1 }
 0x2c8   : > { %v2512_v9 = vpop.f32.mrb[41].mxu1 }
 0x2c9   : > { %v7219_v20 = vpop.f32.mrb[42].mxu1  ;;  %v3596_v9 = vld [vmem:[#allocation3 + $0x8] sm:$0xff] }
 0x2ca   : > { %v2515_v41 = vpop.f32.mrb[43].mxu1 }
 0x2cc   : > { %v2701_v47 = vpop.f32.mrb[68].mxu0 }
 0x2cd   : > { %v7221_v16 = vadd.f32 %v2701_v47, %v2398_v29  ;;  %v2703_v19 = vpop.f32.mrb[69].mxu0 }
 0x2ce   : > { %v2704_v12 = vpop.f32.mrb[70].mxu0 }
 0x2cf   : > { %v7223_v34 = vadd.f32 %v2704_v12, %v2401_v7  ;;  %v2706_v44 = vpop.f32.mrb[71].mxu0  ;;  %v7225_v5 = vpop.f32.mrb[44].mxu1  ;;  %v7236_v7 = vld [vmem:[%s7539_s4] ss:$0 sm:$0xff] }
 0x2d0   : > { %v2520_v51 = vpop.f32.mrb[45].mxu1 }
 0x2d1   : > { %v7227_v49 = vpop.f32.mrb[46].mxu1 }
 0x2d2   : > { %v2523_v21 = vpop.f32.mrb[47].mxu1 }
 0x2d4   : > { %v2709_v48 = vpop.f32.mrb[72].mxu0 }
 0x2d5   : > { %v7229_v26 = vadd.f32 %v2709_v48, %v2406_v17  ;;  %v2711_v2 = vpop.f32.mrb[73].mxu0 }
 0x2d6   : > { %v2712_v8 = vpop.f32.mrb[74].mxu0 }
 0x2d7   : > { %v7231_v29 = vadd.f32 %v2712_v8, %v2409_v55  ;;  %v2714_v11 = vpop.f32.mrb[75].mxu0  ;;  %v3337_v36 = vpop.f32.mrb[48].mxu1 }
 0x2d8   : > { %v3480_v53 = vadd.f32 %v3337_v36, %v2686_v10  ;;  %v3339_v59 = vpop.f32.mrb[49].mxu1 }
 0x2d9   : > { %v3340_v30 = vpop.f32.mrb[50].mxu1 }
 0x2da   : > { %v3523_v18 = vadd.f32 %v7236_v7, %v3480_v53  ;;  %v3481_v42 = vadd.f32 %v3340_v30, %v2689_v24  ;;  %v3342_v17 = vpop.f32.mrb[51].mxu1 }
 0x2db   : > { %v3598_v17 = vld [vmem:[#allocation3 + $0x18] sm:$0xff] }
 0x2dc   : > { %v3559_v13 = vmax.f32 %v3523_v18, 0.0  ;;  %v3524_v55 = vadd.f32 %v7236_v7, %v3481_v42  ;;  %v2717_v63 = vpop.f32.mrb[76].mxu0 }
 0x2dd   : > { %v7244_v0 = vadd.f32 %v2717_v63, %v7197_v46  ;;  %v2719_v50 = vpop.f32.mrb[77].mxu0 }
 0x2de   : > { %v3631_v14 = vadd.f32 %v3595_v54, %v3559_v13  ;;  %v3560_v10 = vmax.f32 %v3524_v55, 0.0  ;;  %v2720_v15 = vpop.f32.mrb[78].mxu0 }
 0x2df   : > { %v7247_v41 = vadd.f32 %v2720_v15, %v7199_v25  ;;  %v2722_v24 = vpop.f32.mrb[79].mxu0  ;;  %v3345_v47 = vpop.f32.mrb[52].mxu1 }
 0x2e0   : > { %v3667_v19 = vmax.f32 %v3631_v14, 0.0  ;;  %v3632_v12 = vadd.f32 %v3596_v9, %v3560_v10  ;;  %v3482_v44 = vadd.f32 %v3345_v47, %v2694_v61  ;;  %v3347_v51 = vpop.f32.mrb[53].mxu1  ;;  %v3597_v61 = vld [vmem:[#allocation3 + $0x10] sm:$0xff] }
 0x2e1   : > { %v3348_v21 = vpop.f32.mrb[54].mxu1 }
 0x2e2   : > { %3703 = vst.msk [vmem:[%s7249_s17] sm:$0xff] %vm8068_vm1, %v3667_v19  ;;  %v3668_v46 = vmax.f32 %v3632_v12, 0.0  ;;  %v3525_v48 = vadd.f32 %v7236_v7, %v3482_v44  ;;  %v3483_v2 = vadd.f32 %v3348_v21, %v2697_v60  ;;  %v3350_v8 = vpop.f32.mrb[55].mxu1  ;;  %v3599_v12 = vld [vmem:[#allocation3 + $0x20] sm:$0xff] }
 0x2e4   : > { %3704 = vst.msk [vmem:[%s7249_s17 + $0x8] sm:$0xff] %vm8089_vm12, %v3668_v46  ;;  %v3561_v25 = vmax.f32 %v3525_v48, 0.0  ;;  %v3526_v11 = vadd.f32 %v7236_v7, %v3483_v2  ;;  %v2725_v36 = vpop.f32.mrb[80].mxu0  ;;  %vm8098_vm12 = vmmov %vm8068_vm1 }
 0x2e5   : > { %v7258_v53 = vadd.f32 %v2725_v36, %v7205_v3  ;;  %v2727_v59 = vpop.f32.mrb[81].mxu0 }
 0x2e6   : > { %v3633_v30 = vadd.f32 %v3597_v61, %v3561_v25  ;;  %v3562_v18 = vmax.f32 %v3526_v11, 0.0  ;;  %v2728_v42 = vpop.f32.mrb[82].mxu0 }
 0x2e7   : > { %v7261_v60 = vadd.f32 %v2728_v42, %v7207_v27  ;;  %v2730_v13 = vpop.f32.mrb[83].mxu0  ;;  %v3353_v55 = vpop.f32.mrb[56].mxu1 }
 0x2e8   : > { %v3669_v63 = vmax.f32 %v3633_v30, 0.0  ;;  %v3634_v54 = vadd.f32 %v3598_v17, %v3562_v18  ;;  %v3484_v50 = vadd.f32 %v3353_v55, %v7221_v16  ;;  %v3355_v14 = vpop.f32.mrb[57].mxu1  ;;  %v3601_v55 = vld [vmem:[#allocation3 + $0x30] sm:$0xff] }
 0x2e9   : > { %v3356_v10 = vpop.f32.mrb[58].mxu1 }
 0x2ea   : > { %4028 = vst.msk [vmem:[%s7249_s17 + $0xe] sm:$0xfc] %vm3706_vm3, %v3669_v63  ;;  %v3670_v3 = vmax.f32 %v3634_v54, 0.0  ;;  %v3527_v15 = vadd.f32 %v7236_v7, %v3484_v50  ;;  %v3485_v9 = vadd.f32 %v3356_v10, %v7223_v34  ;;  %v3358_v24 = vpop.f32.mrb[59].mxu1  ;;  %v3600_v34 = vld [vmem:[#allocation3 + $0x28] sm:$0xff] }
 0x2ec   : > { %4029 = vst.msk [vmem:[%s7249_s17 + $0x16] sm:$0xff] %vm8090_vm13, %v3670_v3  ;;  %v3563_v27 = vmax.f32 %v3527_v15, 0.0  ;;  %v3528_v47 = vadd.f32 %v7236_v7, %v3485_v9  ;;  %v2733_v19 = vpop.f32.mrb[84].mxu0  ;;  %vm8099_vm13 = vmmov %vm8068_vm1 }
 0x2ed   : > { %v7272_v44 = vadd.f32 %v2733_v19, %v7153_v1  ;;  %v2735_v16 = vpop.f32.mrb[85].mxu0 }
 0x2ee   : > { %v3635_v51 = vadd.f32 %v3599_v12, %v3563_v27  ;;  %v3564_v21 = vmax.f32 %v3528_v47, 0.0  ;;  %v2736_v46 = vpop.f32.mrb[86].mxu0 }
 0x2ef   : > { %v7275_v48 = vadd.f32 %v2736_v46, %v7159_v56  ;;  %v2738_v2 = vpop.f32.mrb[87].mxu0  ;;  %v3361_v8 = vpop.f32.mrb[60].mxu1 }
 0x2f0   : > { %v3671_v25 = vmax.f32 %v3635_v51, 0.0  ;;  %v3636_v11 = vadd.f32 %v3600_v34, %v3564_v21  ;;  %v3486_v1 = vadd.f32 %v3361_v8, %v7229_v26  ;;  %v3363_v36 = vpop.f32.mrb[61].mxu1 }
 0x2f1   : > { %v3364_v61 = vpop.f32.mrb[62].mxu1 }
 0x2f2   : > { %4030 = vst.msk [vmem:[%s7249_s17 + $0x1e] sm:$0x3] %vm3709_vm5, %v3671_v25  ;;  %v3672_v59 = vmax.f32 %v3636_v11, 0.0  ;;  %v3529_v30 = vadd.f32 %v7236_v7, %v3486_v1  ;;  %v3487_v18 = vadd.f32 %v3364_v61, %v7231_v29  ;;  %v3366_v42 = vpop.f32.mrb[63].mxu1  ;;  %v3602_v29 = vld [vmem:[#allocation3 + $0x38] sm:$0xff]  ;;  %v3604_v1 = vld [vmem:[#allocation3 + $0x48] sm:$0xff] }
 0x2f3   : > { %4031 = vst.msk [vmem:[%s7249_s17 + $0x1c] sm:$0xf0] %vm3712_vm2, %v3671_v25 }
 0x2f4   : > { %4032 = vst.msk [vmem:[%s7249_s17 + $0x24] sm:$0xff] %vm8091_vm6, %v3672_v59  ;;  %v3565_v56 = vmax.f32 %v3529_v30, 0.0  ;;  %v3530_v17 = vadd.f32 %v7236_v7, %v3487_v18  ;;  %v2741_v13 = vpop.f32.mrb[88].mxu0  ;;  %vm8100_vm6 = vmmov %vm8068_vm1 }
 0x2f5   : > { %v7288_v26 = vadd.f32 %v2741_v13, %v7164_v40  ;;  %v2743_v63 = vpop.f32.mrb[89].mxu0 }
 0x2f6   : > { %v3637_v54 = vadd.f32 %v3601_v55, %v3565_v56  ;;  %v3566_v50 = vmax.f32 %v3530_v17, 0.0  ;;  %v2744_v14 = vpop.f32.mrb[90].mxu0 }
 0x2f7   : > { %v7291_v10 = vadd.f32 %v2744_v14, %v7172_v4  ;;  %v2746_v3 = vpop.f32.mrb[91].mxu0  ;;  %v3369_v15 = vpop.f32.mrb[64].mxu1 }
 0x2f8   : > { %v3673_v9 = vmax.f32 %v3637_v54, 0.0  ;;  %v3638_v24 = vadd.f32 %v3602_v29, %v3566_v50  ;;  %v3488_v40 = vadd.f32 %v3369_v15, %v7244_v0  ;;  %v3371_v27 = vpop.f32.mrb[65].mxu1  ;;  %v3603_v0 = vld [vmem:[#allocation3 + $0x40] sm:$0xff]  ;;  %v3605_v50 = vld [vmem:[#allocation3 + $0x50] sm:$0xff] }
 0x2f9   : > { %v3372_v47 = vpop.f32.mrb[66].mxu1 }
 0x2fa   : > { %4033 = vst.msk [vmem:[%s7249_s17 + $0x2c] sm:$0xf] %vm3715_vm15, %v3673_v9  ;;  %v3674_v19 = vmax.f32 %v3638_v24, 0.0  ;;  %v3531_v12 = vadd.f32 %v7236_v7, %v3488_v40  ;;  %v3489_v16 = vadd.f32 %v3372_v47, %v7247_v41  ;;  %v3374_v51 = vpop.f32.mrb[67].mxu1 }
 0x2fb   : > { %4034 = vst.msk [vmem:[%s7249_s17 + $0x2a] sm:$0xc0] %vm3718_vm10, %v3673_v9  ;;  %v3606_v9 = vld [vmem:[#allocation3 + $0x58] sm:$0xff] }
 0x2fc   : > { %4035 = vst.msk [vmem:[%s7249_s17 + $0x32] sm:$0xff] %vm8092_vm8, %v3674_v19  ;;  %v3567_v4 = vmax.f32 %v3531_v12, 0.0  ;;  %v3532_v21 = vadd.f32 %v7236_v7, %v3489_v16  ;;  %v2749_v46 = vpop.f32.mrb[92].mxu0  ;;  %vm8101_vm8 = vmmov %vm8068_vm1 }
 0x2fd   : > { %v7304_v34 = vadd.f32 %v2749_v46, %v7177_v6  ;;  %v2751_v2 = vpop.f32.mrb[93].mxu0 }
 0x2fe   : > { %v3639_v8 = vadd.f32 %v3603_v0, %v3567_v4  ;;  %v3568_v25 = vmax.f32 %v3532_v21, 0.0  ;;  %v2752_v11 = vpop.f32.mrb[94].mxu0  ;;  %v3607_v2 = vld [vmem:[#allocation3 + $0x60] sm:$0xff] }
 0x2ff   : > { %v7307_v41 = vadd.f32 %v2752_v11, %v7179_v43  ;;  %v2754_v36 = vpop.f32.mrb[95].mxu0  ;;  %v3377_v61 = vpop.f32.mrb[68].mxu1 }
 0x300   : > { %v3675_v59 = vmax.f32 %v3639_v8, 0.0  ;;  %v3640_v30 = vadd.f32 %v3604_v1, %v3568_v25  ;;  %v3490_v18 = vadd.f32 %v3377_v61, %v7258_v53  ;;  %v3379_v42 = vpop.f32.mrb[69].mxu1  ;;  %v3608_v36 = vld [vmem:[#allocation3 + $0x68] sm:$0xff] }
 0x301   : > { %v3380_v56 = vpop.f32.mrb[70].mxu1 }
 0x302   : > { %4036 = vst.msk [vmem:[%s7249_s17 + $0x3a] sm:$0x3f] %vm1557_vm0, %v3675_v59  ;;  %v3676_v6 = vmax.f32 %v3640_v30, 0.0  ;;  %v3533_v17 = vadd.f32 %v7236_v7, %v3490_v18  ;;  %v3491_v13 = vadd.f32 %v3380_v56, %v7261_v60  ;;  %v3382_v55 = vpop.f32.mrb[71].mxu1 }
 0x304   : > { %4037 = vst.msk [vmem:[%s7249_s17 + $0x40] sm:$0xff] %vm8093_vm11, %v3676_v6  ;;  %v3569_v43 = vmax.f32 %v3533_v17, 0.0  ;;  %v3534_v63 = vadd.f32 %v7236_v7, %v3491_v13  ;;  %v2757_v54 = vpop.f32.mrb[96].mxu0  ;;  %vm8102_vm11 = vmmov %vm8068_vm1 }
 0x305   : > { %v7318_v53 = vadd.f32 %v2757_v54, %v7181_v35  ;;  %v2759_v14 = vpop.f32.mrb[97].mxu0 }
 0x306   : > { %v3641_v29 = vadd.f32 %v3605_v50, %v3569_v43  ;;  %v3570_v3 = vmax.f32 %v3534_v63, 0.0  ;;  %v2760_v15 = vpop.f32.mrb[98].mxu0 }
 0x307   : > { %v7321_v60 = vadd.f32 %v2760_v15, %v7183_v39  ;;  %v2762_v24 = vpop.f32.mrb[99].mxu0  ;;  %v3385_v40 = vpop.f32.mrb[72].mxu1 }
 0x308   : > { %v3677_v27 = vmax.f32 %v3641_v29, 0.0  ;;  %v3642_v47 = vadd.f32 %v3606_v9, %v3570_v3  ;;  %v3492_v19 = vadd.f32 %v3385_v40, %v7272_v44  ;;  %v3387_v12 = vpop.f32.mrb[73].mxu1 }
 0x309   : > { %v3388_v16 = vpop.f32.mrb[74].mxu1 }
 0x30a   : > { %4038 = vst.msk [vmem:[%s7249_s17 + $0x48] sm:$0xff] %vm8094_vm14, %v3677_v27  ;;  %v3678_v35 = vmax.f32 %v3642_v47, 0.0  ;;  %v3535_v51 = vadd.f32 %v7236_v7, %v3492_v19  ;;  %v3493_v4 = vadd.f32 %v3388_v16, %v7275_v48  ;;  %v3390_v21 = vpop.f32.mrb[75].mxu1  ;;  %vm8103_vm14 = vmmov %vm8068_vm1 }
 0x30c   : > { %4039 = vst.msk [vmem:[%s7249_s17 + $0x4e] sm:$0xfc] %vm3706_vm3, %v3678_v35  ;;  %v3571_v39 = vmax.f32 %v3535_v51, 0.0  ;;  %v3536_v46 = vadd.f32 %v7236_v7, %v3493_v4  ;;  %v2765_v0 = vpop.f32.mrb[100].mxu0 }
 0x30d   : > { %v7332_v44 = vadd.f32 %v2765_v0, %v7185_v31  ;;  %v2767_v8 = vpop.f32.mrb[101].mxu0 }
 0x30e   : > { %v3643_v25 = vadd.f32 %v3607_v2, %v3571_v39  ;;  %v3572_v11 = vmax.f32 %v3536_v46, 0.0  ;;  %v2768_v1 = vpop.f32.mrb[102].mxu0 }
 0x30f   : > { %v7335_v48 = vadd.f32 %v2768_v1, %v7187_v33  ;;  %v2770_v61 = vpop.f32.mrb[103].mxu0  ;;  %v3393_v59 = vpop.f32.mrb[76].mxu1 }
 0x310   : > { %v3679_v30 = vmax.f32 %v3643_v25, 0.0  ;;  %v3644_v18 = vadd.f32 %v3608_v36, %v3572_v11  ;;  %v3494_v42 = vadd.f32 %v3393_v59, %v7288_v26  ;;  %v3395_v56 = vpop.f32.mrb[77].mxu1  ;;  %v3609_v26 = vld [vmem:[#allocation3 + $0x70] sm:$0xff] }
 0x311   : > { %v3396_v6 = vpop.f32.mrb[78].mxu1 }
 0x312   : > { %4040 = vst.msk [vmem:[%s7249_s17 + $0x56] sm:$0xff] %vm8095_vm4, %v3679_v30  ;;  %v3680_v31 = vmax.f32 %v3644_v18, 0.0  ;;  %v3537_v17 = vadd.f32 %v7236_v7, %v3494_v42  ;;  %v3495_v13 = vadd.f32 %v3396_v6, %v7291_v10  ;;  %v3398_v55 = vpop.f32.mrb[79].mxu1  ;;  %v3610_v10 = vld [vmem:[#allocation3 + $0x78] sm:$0xff]  ;;  %vm8104_vm4 = vmmov %vm8068_vm1 }
 0x314   : > { %4041 = vst.msk [vmem:[%s7249_s17 + $0x5e] sm:$0x3] %vm3709_vm5, %v3680_v31  ;;  %v3573_v33 = vmax.f32 %v3537_v17, 0.0  ;;  %v3538_v43 = vadd.f32 %v7236_v7, %v3495_v13  ;;  %v2773_v63 = vpop.f32.mrb[104].mxu0  ;;  %v3613_v13 = vld [vmem:[#allocation3 + $0x90] sm:$0xff] }
 0x315   : > { %4042 = vst.msk [vmem:[%s7249_s17 + $0x5c] sm:$0xf0] %vm3712_vm2, %v3680_v31  ;;  %v7348_v54 = vadd.f32 %v2773_v63, %v7189_v23  ;;  %v2775_v50 = vpop.f32.mrb[105].mxu0 }
 0x316   : > { %v3645_v14 = vadd.f32 %v3609_v26, %v3573_v33  ;;  %v3574_v29 = vmax.f32 %v3538_v43, 0.0  ;;  %v2776_v3 = vpop.f32.mrb[106].mxu0  ;;  %v3614_v26 = vld [vmem:[#allocation3 + $0x98] sm:$0xff] }
 0x317   : > { %v7351_v15 = vadd.f32 %v2776_v3, %v7191_v45  ;;  %v2778_v9 = vpop.f32.mrb[107].mxu0  ;;  %v3401_v24 = vpop.f32.mrb[80].mxu1 }
 0x318   : > { %v3681_v40 = vmax.f32 %v3645_v14, 0.0  ;;  %v3646_v27 = vadd.f32 %v3610_v10, %v3574_v29  ;;  %v3496_v47 = vadd.f32 %v3401_v24, %v7304_v34  ;;  %v3403_v19 = vpop.f32.mrb[81].mxu1  ;;  %v3611_v34 = vld [vmem:[#allocation3 + $0x80] sm:$0xff] }
 0x319   : > { %v3404_v12 = vpop.f32.mrb[82].mxu1 }
 0x31a   : > { %4043 = vst.msk [vmem:[%s7249_s17 + $0x64] sm:$0xff] %vm8096_vm7, %v3681_v40  ;;  %v3682_v23 = vmax.f32 %v3646_v27, 0.0  ;;  %v3539_v16 = vadd.f32 %v7236_v7, %v3496_v47  ;;  %v3497_v35 = vadd.f32 %v3404_v12, %v7307_v41  ;;  %v3406_v51 = vpop.f32.mrb[83].mxu1  ;;  %v3612_v41 = vld [vmem:[#allocation3 + $0x88] sm:$0xff] }
 0x31c   : > { %4044 = vst.msk [vmem:[%s7249_s17 + $0x6c] sm:$0xf] %vm3715_vm15, %v3682_v23  ;;  %v3575_v45 = vmax.f32 %v3539_v16, 0.0  ;;  %v3540_v4 = vadd.f32 %v7236_v7, %v3497_v35  ;;  %v2781_v21 = vpop.f32.mrb[108].mxu0 }
 0x31d   : > { %4045 = vst.msk [vmem:[%s7249_s17 + $0x6a] sm:$0xc0] %vm3718_vm10, %v3682_v23  ;;  %v7364_v39 = vadd.f32 %v2781_v21, %v7193_v62  ;;  %v2783_v46 = vpop.f32.mrb[109].mxu0  ;;  %v3615_v23 = vld [vmem:[#allocation3 + $0xa0] sm:$0xff] }
 0x31e   : > { %v3647_v0 = vadd.f32 %v3611_v34, %v3575_v45  ;;  %v3576_v2 = vmax.f32 %v3540_v4, 0.0  ;;  %v2784_v8 = vpop.f32.mrb[110].mxu0  ;;  %v3616_v4 = vld [vmem:[#allocation3 + $0xa8] sm:$0xff] }
 0x31f   : > { %v7367_v25 = vadd.f32 %v2784_v8, %v7195_v22  ;;  %v2786_v11 = vpop.f32.mrb[111].mxu0  ;;  %v3409_v1 = vpop.f32.mrb[84].mxu1 }
 0x320   : > { %v3683_v36 = vmax.f32 %v3647_v0, 0.0  ;;  %v3648_v61 = vadd.f32 %v3612_v41, %v3576_v2  ;;  %v3498_v59 = vadd.f32 %v3409_v1, %v7318_v53  ;;  %v3411_v30 = vpop.f32.mrb[85].mxu1 }
 0x321   : > { %v3412_v18 = vpop.f32.mrb[86].mxu1  ;;  %v3617_v30 = vld [vmem:[#allocation3 + $0xb0] sm:$0xff] }
 0x322   : > { %4046 = vst.msk [vmem:[%s7249_s17 + $0x72] sm:$0xff] %vm8097_vm9, %v3683_v36  ;;  %v3684_v62 = vmax.f32 %v3648_v61, 0.0  ;;  %v3541_v42 = vadd.f32 %v7236_v7, %v3498_v59  ;;  %v3499_v56 = vadd.f32 %v3412_v18, %v7321_v60  ;;  %v3414_v6 = vpop.f32.mrb[87].mxu1 }
 0x323   : > { %v3618_v6 = vld [vmem:[#allocation3 + $0xb8] sm:$0xff] }
 0x324   : > { %4047 = vst.msk [vmem:[%s7249_s17 + $0x7a] sm:$0x3f] %vm1557_vm0, %v3684_v62  ;;  %v3577_v22 = vmax.f32 %v3541_v42, 0.0  ;;  %v3542_v31 = vadd.f32 %v7236_v7, %v3499_v56  ;;  %v2789_v17 = vpop.f32.mrb[112].mxu0 }
 0x325   : > { %v7378_v53 = vadd.f32 %v2789_v17, %v7201_v52  ;;  %v2791_v55 = vpop.f32.mrb[113].mxu0 }
 0x326   : > { %v3649_v33 = vadd.f32 %v3613_v13, %v3577_v22  ;;  %v3578_v43 = vmax.f32 %v3542_v31, 0.0  ;;  %v2792_v63 = vpop.f32.mrb[114].mxu0 }
 0x327   : > { %v7381_v60 = vadd.f32 %v2792_v63, %v7203_v58  ;;  %v2794_v50 = vpop.f32.mrb[115].mxu0  ;;  %v3417_v14 = vpop.f32.mrb[88].mxu1 }
 0x328   : > { %v3685_v29 = vmax.f32 %v3649_v33, 0.0  ;;  %v3650_v3 = vadd.f32 %v3614_v26, %v3578_v43  ;;  %v3500_v10 = vadd.f32 %v3417_v14, %v7332_v44  ;;  %v3419_v9 = vpop.f32.mrb[89].mxu1 }
 0x329   : > { %v3420_v24 = vpop.f32.mrb[90].mxu1 }
 0x32a   : > { %4048 = vst.msk [vmem:[%s7249_s17 + $0x80] sm:$0xff] %vm8068_vm1, %v3685_v29  ;;  %v3686_v52 = vmax.f32 %v3650_v3, 0.0  ;;  %v3543_v40 = vadd.f32 %v7236_v7, %v3500_v10  ;;  %v3501_v27 = vadd.f32 %v3420_v24, %v7335_v48  ;;  %v3422_v47 = vpop.f32.mrb[91].mxu1 }
 0x32c   : > { %4049 = vst.msk [vmem:[%s7249_s17 + $0x88] sm:$0xff] %vm8098_vm12, %v3686_v52  ;;  %v3579_v58 = vmax.f32 %v3543_v40, 0.0  ;;  %v3544_v19 = vadd.f32 %v7236_v7, %v3501_v27  ;;  %v2797_v12 = vpop.f32.mrb[116].mxu0  ;;  %v3620_v40 = vld [vmem:[#allocation3 + $0xc8] sm:$0xff] }
 0x32d   : > { %v7392_v44 = vadd.f32 %v2797_v12, %v7209_v38  ;;  %v2799_v16 = vpop.f32.mrb[117].mxu0 }
 0x32e   : > { %v3651_v35 = vadd.f32 %v3615_v23, %v3579_v58  ;;  %v3580_v51 = vmax.f32 %v3544_v19, 0.0  ;;  %v2800_v45 = vpop.f32.mrb[118].mxu0 }
 0x32f   : > { %v7395_v48 = vadd.f32 %v2800_v45, %v7211_v37  ;;  %v2802_v21 = vpop.f32.mrb[119].mxu0  ;;  %v3425_v34 = vpop.f32.mrb[92].mxu1 }
 0x330   : > { %v3687_v46 = vmax.f32 %v3651_v35, 0.0  ;;  %v3652_v0 = vadd.f32 %v3616_v4, %v3580_v51  ;;  %v3502_v2 = vadd.f32 %v3425_v34, %v7348_v54  ;;  %v3427_v8 = vpop.f32.mrb[93].mxu1 }
 0x331   : > { %v3428_v41 = vpop.f32.mrb[94].mxu1 }
 0x332   : > { %4050 = vst.msk [vmem:[%s7249_s17 + $0x8e] sm:$0xfc] %vm3706_vm3, %v3687_v46  ;;  %v3688_v38 = vmax.f32 %v3652_v0, 0.0  ;;  %v3545_v11 = vadd.f32 %v7236_v7, %v3502_v2  ;;  %v3503_v1 = vadd.f32 %v3428_v41, %v7351_v15  ;;  %v3430_v36 = vpop.f32.mrb[95].mxu1  ;;  %v3622_v41 = vld [vmem:[#allocation3 + $0xd8] sm:$0xff] }
 0x334   : > { %4051 = vst.msk [vmem:[%s7249_s17 + $0x96] sm:$0xff] %vm8099_vm13, %v3688_v38  ;;  %v3581_v37 = vmax.f32 %v3545_v11, 0.0  ;;  %v3546_v61 = vadd.f32 %v7236_v7, %v3503_v1  ;;  %v2805_v59 = vpop.f32.mrb[120].mxu0 }
 0x335   : > { %v7406_v54 = vadd.f32 %v2805_v59, %v7213_v32  ;;  %v2807_v18 = vpop.f32.mrb[121].mxu0 }
 0x336   : > { %v3653_v62 = vadd.f32 %v3617_v30, %v3581_v37  ;;  %v3582_v42 = vmax.f32 %v3546_v61, 0.0  ;;  %v2808_v56 = vpop.f32.mrb[122].mxu0 }
 0x337   : > { %v7409_v15 = vadd.f32 %v2808_v56, %v7215_v57  ;;  %v2810_v22 = vpop.f32.mrb[123].mxu0  ;;  %v3433_v31 = vpop.f32.mrb[96].mxu1  ;;  %v3623_v56 = vld [vmem:[#allocation3 + $0xe0] sm:$0xff] }
 0x338   : > { %v3689_v17 = vmax.f32 %v3653_v62, 0.0  ;;  %v3654_v13 = vadd.f32 %v3618_v6, %v3582_v42  ;;  %v3504_v55 = vadd.f32 %v3433_v31, %v7364_v39  ;;  %v3435_v33 = vpop.f32.mrb[97].mxu1  ;;  %v3619_v39 = vld [vmem:[#allocation3 + $0xc0] sm:$0xff]  ;;  %v3624_v22 = vld [vmem:[#allocation3 + $0xe8] sm:$0xff] }
 0x339   : > { %v3436_v43 = vpop.f32.mrb[98].mxu1 }
 0x33a   : > { %4052 = vst.msk [vmem:[%s7249_s17 + $0x9e] sm:$0x3] %vm3709_vm5, %v3689_v17  ;;  %v3690_v32 = vmax.f32 %v3654_v13, 0.0  ;;  %v3547_v63 = vadd.f32 %v7236_v7, %v3504_v55  ;;  %v3505_v26 = vadd.f32 %v3436_v43, %v7367_v25  ;;  %v3438_v50 = vpop.f32.mrb[99].mxu1 }
 0x33b   : > { %4053 = vst.msk [vmem:[%s7249_s17 + $0x9c] sm:$0xf0] %vm3712_vm2, %v3689_v17 }
 0x33c   : > { %4054 = vst.msk [vmem:[%s7249_s17 + $0xa4] sm:$0xff] %vm8100_vm6, %v3690_v32  ;;  %v3583_v57 = vmax.f32 %v3547_v63, 0.0  ;;  %v3548_v14 = vadd.f32 %v7236_v7, %v3505_v26  ;;  %v2813_v29 = vpop.f32.mrb[124].mxu0 }
 0x33d   : > { %v7422_v3 = vadd.f32 %v2813_v29, %v7217_v28  ;;  %v2815_v10 = vpop.f32.mrb[125].mxu0 }
 0x33e   : > { %v3655_v9 = vadd.f32 %v3619_v39, %v3583_v57  ;;  %v3584_v24 = vmax.f32 %v3548_v14, 0.0  ;;  %v2816_v52 = vpop.f32.mrb[126].mxu0  ;;  %v3625_v14 = vld [vmem:[#allocation3 + $0xf0] sm:$0xff]  ;;  %v3626_v39 = vld [vmem:[#allocation3 + $0xf8] sm:$0xff] }
 0x33f   : > { %v7425_v25 = vadd.f32 %v2816_v52, %v7219_v20  ;;  %v2818_v27 = vpop.f32.mrb[127].mxu0  ;;  %v3441_v47 = vpop.f32.mrb[100].mxu1 }
 0x340   : > { %v3691_v58 = vmax.f32 %v3655_v9, 0.0  ;;  %v3656_v19 = vadd.f32 %v3620_v40, %v3584_v24  ;;  %v3506_v12 = vadd.f32 %v3441_v47, %v7378_v53  ;;  %v3443_v23 = vpop.f32.mrb[101].mxu1  ;;  %v3621_v53 = vld [vmem:[#allocation3 + $0xd0] sm:$0xff] }
 0x341   : > { %v3444_v16 = vpop.f32.mrb[102].mxu1 }
 0x342   : > { %4055 = vst.msk [vmem:[%s7249_s17 + $0xac] sm:$0xf] %vm3715_vm15, %v3691_v58  ;;  %v3692_v28 = vmax.f32 %v3656_v19, 0.0  ;;  %v3549_v35 = vadd.f32 %v7236_v7, %v3506_v12  ;;  %v3507_v51 = vadd.f32 %v3444_v16, %v7381_v60  ;;  %v3446_v45 = vpop.f32.mrb[103].mxu1 }
 0x343   : > { %4056 = vst.msk [vmem:[%s7249_s17 + $0xaa] sm:$0xc0] %vm3718_vm10, %v3691_v58 }
 0x344   : > { %4057 = vst.msk [vmem:[%s7249_s17 + $0xb2] sm:$0xff] %vm8101_vm8, %v3692_v28  ;;  %v3585_v20 = vmax.f32 %v3549_v35, 0.0  ;;  %v3550_v4 = vadd.f32 %v7236_v7, %v3507_v51  ;;  %v2821_v21 = vpop.f32.mrb[128].mxu0  ;;  %v3628_v35 = vld [vmem:[#allocation3 + $0x108] sm:$0xff] }
 0x345   : > { %v7438_v34 = vadd.f32 %v2821_v21, %v7225_v5  ;;  %v2823_v46 = vpop.f32.mrb[129].mxu0 }
 0x346   : > { %v3657_v0 = vadd.f32 %v3621_v53, %v3585_v20  ;;  %v3586_v2 = vmax.f32 %v3550_v4, 0.0  ;;  %v2824_v8 = vpop.f32.mrb[130].mxu0 }
 0x347   : > { %v7441_v60 = vadd.f32 %v2824_v8, %v7227_v49  ;;  %v2826_v38 = vpop.f32.mrb[131].mxu0  ;;  %v3449_v11 = vpop.f32.mrb[104].mxu1 }
 0x348   : > { %v3693_v1 = vmax.f32 %v3657_v0, 0.0  ;;  %v3658_v36 = vadd.f32 %v3622_v41, %v3586_v2  ;;  %v3508_v37 = vadd.f32 %v3449_v11, %v7392_v44  ;;  %v3451_v61 = vpop.f32.mrb[105].mxu1  ;;  %v3629_v41 = vld [vmem:[#allocation3 + $0x110] sm:$0xff] }
 0x349   : > { %v3452_v59 = vpop.f32.mrb[106].mxu1 }
 0x34a   : > { %4058 = vst.msk [vmem:[%s7249_s17 + $0xba] sm:$0x3f] %vm1557_vm0, %v3693_v1  ;;  %v3694_v5 = vmax.f32 %v3658_v36, 0.0  ;;  %v3551_v30 = vadd.f32 %v7236_v7, %v3508_v37  ;;  %v3509_v18 = vadd.f32 %v3452_v59, %v7395_v48  ;;  %v3454_v62 = vpop.f32.mrb[107].mxu1  ;;  %v3630_v1 = vld [vmem:[#allocation3 + $0x118] sm:$0xff] }
 0x34c   : > { %4059 = vst.msk [vmem:[%s7249_s17 + $0xc0] sm:$0xff] %vm8102_vm11, %v3694_v5  ;;  %v3587_v49 = vmax.f32 %v3551_v30, 0.0  ;;  %v3552_v42 = vadd.f32 %v7236_v7, %v3509_v18 }
 0x34e   : > { %v3659_v6 = vadd.f32 %v3623_v56, %v3587_v49  ;;  %v3588_v44 = vmax.f32 %v3552_v42, 0.0 }
 0x34f   : > { %v3457_v31 = vpop.f32.mrb[108].mxu1 }
 0x350   : > { %v3695_v17 = vmax.f32 %v3659_v6, 0.0  ;;  %v3660_v13 = vadd.f32 %v3624_v22, %v3588_v44  ;;  %v3510_v55 = vadd.f32 %v3457_v31, %v7406_v54  ;;  %v3459_v33 = vpop.f32.mrb[109].mxu1 }
 0x351   : > { %v3460_v43 = vpop.f32.mrb[110].mxu1 }
 0x352   : > { %4060 = vst.msk [vmem:[%s7249_s17 + $0xc8] sm:$0xff] %vm8103_vm14, %v3695_v17  ;;  %v3696_v48 = vmax.f32 %v3660_v13, 0.0  ;;  %v3553_v32 = vadd.f32 %v7236_v7, %v3510_v55  ;;  %v3511_v63 = vadd.f32 %v3460_v43, %v7409_v15  ;;  %v3462_v26 = vpop.f32.mrb[111].mxu1 }
 0x354   : > { %4061 = vst.msk [vmem:[%s7249_s17 + $0xce] sm:$0xfc] %vm3706_vm3, %v3696_v48  ;;  %v3589_v50 = vmax.f32 %v3553_v32, 0.0  ;;  %v3554_v57 = vadd.f32 %v7236_v7, %v3511_v63  ;;  %vm8105_vm3 = vmmov %vm8068_vm1 }
 0x356   : > { %v3661_v54 = vadd.f32 %v3625_v14, %v3589_v50  ;;  %v3590_v29 = vmax.f32 %v3554_v57, 0.0 }
 0x357   : > { %v3465_v10 = vpop.f32.mrb[112].mxu1 }
 0x358   : > { %v3697_v9 = vmax.f32 %v3661_v54, 0.0  ;;  %v3662_v24 = vadd.f32 %v3626_v39, %v3590_v29  ;;  %v3512_v52 = vadd.f32 %v3465_v10, %v7422_v3  ;;  %v3467_v40 = vpop.f32.mrb[113].mxu1  ;;  %v3627_v3 = vld [vmem:[#allocation3 + $0x100] sm:$0xff] }
 0x359   : > { %v3468_v27 = vpop.f32.mrb[114].mxu1 }
 0x35a   : > { %4062 = vst.msk [vmem:[%s7249_s17 + $0xd6] sm:$0xff] %vm8104_vm4, %v3697_v9  ;;  %v3698_v15 = vmax.f32 %v3662_v24, 0.0  ;;  %v3555_v47 = vadd.f32 %v7236_v7, %v3512_v52  ;;  %v3513_v58 = vadd.f32 %v3468_v27, %v7425_v25  ;;  %v3470_v19 = vpop.f32.mrb[115].mxu1 }
 0x35c   : > { %4063 = vst.msk [vmem:[%s7249_s17 + $0xde] sm:$0x3] %vm3709_vm5, %v3698_v15  ;;  %v3591_v12 = vmax.f32 %v3555_v47, 0.0  ;;  %v3556_v23 = vadd.f32 %v7236_v7, %v3513_v58  ;;  %vm8106_vm5 = vmmov %vm8068_vm1 }
 0x35d   : > { %4064 = vst.msk [vmem:[%s7249_s17 + $0xdc] sm:$0xf0] %vm3712_vm2, %v3698_v15 }
 0x35e   : > { %v3663_v16 = vadd.f32 %v3627_v3, %v3591_v12  ;;  %v3592_v28 = vmax.f32 %v3556_v23, 0.0 }
 0x35f   : > { %v3473_v51 = vpop.f32.mrb[116].mxu1 }
 0x360   : > { %v3699_v45 = vmax.f32 %v3663_v16, 0.0  ;;  %v3664_v20 = vadd.f32 %v3628_v35, %v3592_v28  ;;  %v3514_v25 = vadd.f32 %v3473_v51, %v7438_v34  ;;  %v3475_v4 = vpop.f32.mrb[117].mxu1 }
 0x361   : > { %v3476_v21 = vpop.f32.mrb[118].mxu1 }
 0x362   : > { %4065 = vst.msk [vmem:[%s7249_s17 + $0xe4] sm:$0xff] %vm8105_vm3, %v3699_v45  ;;  %v3700_v53 = vmax.f32 %v3664_v20, 0.0  ;;  %v3557_v46 = vadd.f32 %v7236_v7, %v3514_v25  ;;  %v3515_v0 = vadd.f32 %v3476_v21, %v7441_v60  ;;  %v3478_v2 = vpop.f32.mrb[119].mxu1 }
 0x364   : > { %4066 = vst.msk [vmem:[%s7249_s17 + $0xec] sm:$0xf] %vm3715_vm15, %v3700_v53  ;;  %v3593_v8 = vmax.f32 %v3557_v46, 0.0  ;;  %v3558_v34 = vadd.f32 %v7236_v7, %v3515_v0 }
 0x365   : > { %4067 = vst.msk [vmem:[%s7249_s17 + $0xea] sm:$0xc0] %vm3718_vm10, %v3700_v53 }
 0x366   : > { %v3665_v38 = vadd.f32 %v3629_v41, %v3593_v8  ;;  %v3594_v11 = vmax.f32 %v3558_v34, 0.0 }
 0x368   : > { %v3701_v36 = vmax.f32 %v3665_v38, 0.0  ;;  %v3666_v60 = vadd.f32 %v3630_v1, %v3594_v11 }
 0x36a   : > { %4068 = vst.msk [vmem:[%s7249_s17 + $0xf2] sm:$0xff] %vm8106_vm5, %v3701_v36  ;;  %v3702_v7 = vmax.f32 %v3666_v60, 0.0 }
 0x36c   : > { %4069 = vst.msk [vmem:[%s7249_s17 + $0xfa] sm:$0x3f] %vm1557_vm0, %v3702_v7 }
 0x36d   : > { %4621 = shalt.err (!%p4618_p3)
}
 0x36e   : > { %s4622_s12 = scalar_lea.hbm %s7484_s6, 4096  ;;  %s4626_s14 = scalar_lea.hbm %s7540_s5, 8192 }
 0x36f   : > { %p4623_p4 = scmp.ne.s32.totalorder %s7484_s6, %s4622_s12  ;;  %p4627_p9 = scmp.lt.u32.totalorder %s7484_s6, %s7540_s5 }
 0x370   : > { %p4628_p10 = scmp.lt.u32.totalorder %s4626_s14, %s4622_s12  ;;  %p4630_p12 = scmp.lt.u32.totalorder %s4622_s12, %s7484_s6 }
 0x371   : > { %p4624_p7 = pnand %p4623_p4, %p4746_p5 }
 0x372   : > { %p4629_p11 = por %p4628_p10, %p4627_p9 }
 0x373   : > { %p4625_p8 = pneg %p4624_p7 }
 0x374   : > { %p4631_p13 = por %p4630_p12, %p4629_p11 }
 0x376   : > { %p4632_p0 = pnand %p4631_p13, %p4625_p8 }
 0x378   : > { %4635 = shalt.err (!%p4632_p0)
}
 0x379   : > { %s4676_s17 = smov 128   ;;  %s4677_s23 = smov 8  }
 0x37a   : > { %4237 = dma.vmem_to_hbm [thread:$0]  (%p4746_p5), %s7486_s25, 4096, %s7484_s6, %s7494_s22, %s4676_s17, %s4676_s17, %s4677_s23  }
 0x37b PF: > { %p4243_p1 = scmp.ge.s32.totalorder %s4670_s21, 2  ;;  %s3796_s26 = sand.u32 1, %s4658_s18  }
 0x37c   : > { %s3797_s30 = scalar_lea.sflag [#allocation5], %s3796_s26 }
 0x37d   : > { %p4240_p2 = pnand %p4243_p1, %p4750_p6 }
 0x37f   : > { %4653 = dma.done.wait (!%p4240_p2), %s3797_s30, 4096  }
 0x380   : > { %4655 = vsyncadd (!%p4240_p2), %s3797_s30, 4294963200  ;;  %p15_p3 = scmp.ge.s32.totalorder %s4733_s24, 4   ;;  %s8107_s18 = smov %s4662_s19 }
 0x381   : > { %s8108_s19 = smov %s4666_s20  ;;  %s8109_s20 = smov %s4744_s27 }
 0x382   : > { %s8110_s21 = smov %s4733_s24  ;;  %17 = sbr.rel (!%p15_p3) target bundleno = 3 (0x3), region = 92 }
 0x389   :  { %3802 = vsyncpa [#allocation5], 1 }
 0x38a   :  { %3804 = vsyncpa [#allocation5 + $0x1], 1 }

</bundles_post_ra>
